<compile_context>
chip_gen: v7x
topology: tpu7x:2x2x1
jax: 0.10.0
libtpu: 0.0.40
codegen_flags: <defaults>
</compile_context>

<pallas_src>
import functools

import jax
import jax.numpy as jnp
from jax import lax
from jax.experimental import pallas as pl
from jax.experimental.pallas import tpu as pltpu

EPS = 1e-5


def resfpf_kernel(x_ref, mask_ref, w1p_ref, wp_ref, wout_ref, bias_ref, o_ref,
                  packed_ref, feat_ref, *, H, W, dc):
    hw = H * W
    c1 = x_ref.shape[-1]

    x_bf = x_ref[0].astype(jnp.bfloat16)                       # (HW, C1) bf16

    # conv_1 restricted to the dc channels that feed the 3x3 conv.
    y1p = jnp.dot(x_bf, w1p_ref[...],
                  preferred_element_type=jnp.float32)           # (HW, dc) f32

    m = mask_ref[...]                                           # (HW, 9) int32

    # Partial 3x3 conv ('split_cat'): stage the 9 shifted+masked taps side by
    # side on the lane axis -> ONE lane-dense (HW, 9*dc) x (9*dc, dc) MXU matmul.
    k = 0
    for dh in (-1, 0, 1):
        for dw in (-1, 0, 1):
            off = dh * W + dw
            if off == 0:
                tap = y1p                                       # centre: no shift / mask
            else:
                tap = pltpu.roll(y1p, shift=(-off) % hw, axis=0)
                tap = jnp.where(m[:, k:k + 1] > 0, tap, 0.0)
            packed_ref[:, k * dc:(k + 1) * dc] = tap.astype(jnp.bfloat16)
            k += 1
    acc = jnp.dot(packed_ref[...], wp_ref[...],
                  preferred_element_type=jnp.float32)           # (HW, dc) f32

    # conv_3 (BN folded) + untouched-channel bypass fused along K = C1 + dc.
    feat_ref[:, :c1] = x_bf
    feat_ref[:, c1:] = acc.astype(jnp.bfloat16)
    z = jnp.dot(feat_ref[...], wout_ref[...],
                preferred_element_type=jnp.float32) + bias_ref[...]   # (HW, C2)

    # Numerically stable SiLU: z * sigmoid(z); reciprocal on the EUP slot.
    e = jnp.exp(-jnp.abs(z))
    r = pl.reciprocal(1.0 + e, approx=True)
    sig = jnp.where(z >= 0, r, e * r)

    # Residual add.
    o_ref[0] = (x_ref[0] + z * sig).astype(o_ref.dtype)


def _fold_params(params):
    """Trace-time weight folding: BN -> conv_3 weight + bias; untouched-channel
    bypass folded into one (C1, C2) weight and stacked with conv_3's convolved
    part; partial-conv 3x3 weight flattened to a single (9*dc, dc) K-packed mat."""
    w1, w3, w_pc = params["w1"], params["w3"], params["w_pc"]
    dc = w_pc.shape[0]
    s = params["gamma"] * lax.rsqrt(params["var"] + EPS)        # (1, C2)
    w3s = w3 * s                                                # BN scale on output cols
    w1p = w1[:, :dc]                                            # (C1, dc)
    wbyp = w1[:, dc:] @ w3s[dc:, :]                             # (C1, C2)
    wout = jnp.concatenate([wbyp, w3s[:dc, :]], axis=0)         # (C1+dc, C2): [x | conv3x3]
    bias = params["beta"] - params["mean"] * s                  # (1, C2)
    wp = jnp.transpose(w_pc, (2, 3, 1, 0)).reshape(9 * dc, dc)  # (O,I,kh,kw)->(9*dc, dc)
    bf = jnp.bfloat16
    return (w1p.astype(bf), wp.astype(bf), wout.astype(bf),
            bias.astype(jnp.float32), dc)


def _tap_masks(H, W):
    """(H*W, 9) int32: column k = validity of 3x3 tap k (kh-major order) per pixel."""
    h = jnp.arange(H, dtype=jnp.int32)[:, None]
    w = jnp.arange(W, dtype=jnp.int32)[None, :]
    cols = []
    for dh in (-1, 0, 1):
        for dw in (-1, 0, 1):
            v = (h + dh >= 0) & (h + dh < H) & (w + dw >= 0) & (w + dw < W)
            cols.append(v.reshape(H * W))
    return jnp.stack(cols, axis=-1).astype(jnp.int32)


def _vmem_capacity_bytes():
    try:
        cap = getattr(pltpu.get_tpu_info(), "vmem_capacity_bytes", None)
        if cap:
            return int(cap)
    except Exception:
        pass
    return 64 << 20      # conservative fallback: v7x per-TensorCore VMEM


def _vmem_budget(HW, C1, C2, dc, itemsize):
    pad = lambda n: -(-n // 128) * 128                          # lane padding in VMEM
    io = 2 * 2 * HW * (pad(C1) + pad(C2)) * itemsize            # dbl-buffered in/out tiles
    wts = 2 * 2 * (C1 * pad(dc) + 9 * dc * pad(dc) + (C1 + dc) * pad(C2))  # bf16, x2 buf
    wts += 2 * 4 * (pad(C2) + HW * pad(9))                      # bias + tap masks (f32/i32)
    scratch = 2 * HW * (9 * dc + pad(C1 + dc))                  # bf16 staging buffers
    tmp = HW * (2 * 4 * pad(dc) + 4 * 4 * pad(C2))              # y1p/acc + z,e,sig,silu (f32)
    need = io + wts + scratch + 2 * tmp + (4 << 20)             # 2x temp headroom + slack
    cap = (100 << 20) if _vmem_capacity_bytes() >= (128 << 20) else (48 << 20)
    return int(min(max(need, 16 << 20), cap))


def resfpf_forward_nhwc(x_nhwc, params):
    """NHWC-native forward (preferred: no NCHW<->NHWC HBM round-trips)."""
    N, H, W, C1 = x_nhwc.shape
    C2 = params["w1"].shape[1]
    assert C1 == C2, "ResFPF residual add requires c1 == c2"
    w1p, wp, wout, bias, dc = _fold_params(params)
    mask = _tap_masks(H, W)
    HW = H * W
    x_flat = x_nhwc.reshape(N, HW, C1)

    itemsize = x_nhwc.dtype.itemsize
    vmem_limit = _vmem_budget(HW, C1, C2, dc, itemsize)

    cost = pl.CostEstimate(
        flops=2 * N * HW * (C1 * dc + 9 * dc * dc + (C1 + dc) * C2),
        transcendentals=N * HW * C2,
        bytes_accessed=(2 * N * HW * C1 * itemsize
                        + 2 * (w1p.size + wp.size + wout.size)
                        + 4 * (bias.size + mask.size)))

    kernel = functools.partial(resfpf_kernel, H=H, W=W, dc=dc)
    out_flat = pl.pallas_call(
        kernel,
        out_shape=jax.ShapeDtypeStruct((N, HW, C2), x_nhwc.dtype),
        grid_spec=pltpu.PrefetchScalarGridSpec(
            num_scalar_prefetch=0,
            grid=(N,),
            in_specs=[
                pl.BlockSpec((1, HW, C1), lambda n: (n, 0, 0)),    # x (one image)
                pl.BlockSpec((HW, 9), lambda n: (0, 0)),           # 3x3 tap validity masks
                pl.BlockSpec((C1, dc), lambda n: (0, 0)),          # conv_1[:, :dc]
                pl.BlockSpec((9 * dc, dc), lambda n: (0, 0)),      # K-packed 3x3 weight
                pl.BlockSpec((C1 + dc, C2), lambda n: (0, 0)),     # [bypass ; conv_3*BN]
                pl.BlockSpec((1, C2), lambda n: (0, 0)),           # folded BN bias
            ],
            out_specs=pl.BlockSpec((1, HW, C2), lambda n: (n, 0, 0)),
            scratch_shapes=[
                pltpu.VMEM((HW, 9 * dc), jnp.bfloat16),            # packed shifted taps
                pltpu.VMEM((HW, C1 + dc), jnp.bfloat16),           # [x | conv3x3] operand
            ],
        ),
        compiler_params=pltpu.CompilerParams(
            dimension_semantics=("parallel",),
            vmem_limit_bytes=vmem_limit),
        cost_estimate=cost,
    )(x_flat, mask, w1p, wp, wout, bias)
    return out_flat.reshape(N, H, W, C2)


def resfpf_forward(x_nchw, params):
    """NCHW wrapper matching the PyTorch module's layout (one transpose each way;
    keep the surrounding model NHWC and call resfpf_forward_nhwc to avoid them)."""
    out = resfpf_forward_nhwc(jnp.transpose(x_nchw, (0, 2, 3, 1)), params)
    return jnp.transpose(out, (0, 3, 1, 2))


def init_params(key, c1, c2):
    dc = c2 // 4
    k1, k2, k3, k4, k5, k6 = jax.random.split(key, 6)
    # conv_1.weight (c2, c1, 1, 1) stored transposed as (c1, c2)
    w1 = 0.05 * jax.random.normal(k1, (c1, c2), jnp.float32)
    # Partial_conv3.partial_conv3.weight (dc, dc, 3, 3)  [O, I, kh, kw]
    w_pc = 0.05 * jax.random.normal(k2, (dc, dc, 3, 3), jnp.float32)
    # conv_3.weight (c2, c2, 1, 1) stored transposed as (c2, c2)
    w3 = 0.05 * jax.random.normal(k3, (c2, c2), jnp.float32)
    gamma = 1.0 + 0.1 * jax.random.normal(k4, (1, c2), jnp.float32)
    beta = 0.1 * jax.random.normal(k5, (1, c2), jnp.float32)
    mean = 0.1 * jax.random.normal(k6, (1, c2), jnp.float32)
    var = jnp.linspace(0.5, 1.5, c2, dtype=jnp.float32).reshape(1, c2)
    return dict(w1=w1, w_pc=w_pc, w3=w3,
                gamma=gamma, beta=beta, mean=mean, var=var)


def ref_forward_nhwc(x, params):
    """Pure-JAX f32 reference matching the PyTorch forward (BN in eval mode)."""
    dc = params["w_pc"].shape[0]
    y1 = jnp.einsum('nhwc,cd->nhwd', x, params["w1"])
    w_hwio = jnp.transpose(params["w_pc"], (2, 3, 1, 0))
    conv = lax.conv_general_dilated(y1[..., :dc], w_hwio, (1, 1), 'SAME',
                                    dimension_numbers=('NHWC', 'HWIO', 'NHWC'))
    y2 = jnp.concatenate([conv, y1[..., dc:]], axis=-1)
    y3 = jnp.einsum('nhwc,cd->nhwd', y2, params["w3"])
    g, b = params["gamma"][0], params["beta"][0]
    m, v = params["mean"][0], params["var"][0]
    z = (y3 - m) / jnp.sqrt(v + EPS) * g + b
    return x + z * jax.nn.sigmoid(z)


if __name__ == "__main__":
    key = jax.random.PRNGKey(0)
    kx, kp = jax.random.split(key)
    # Residual x + f(x) requires c1 == c2; C chosen as a lane-dense multiple of 128.
    N, C, H, W = 2, 128, 16, 16
    x_nchw = jax.random.normal(kx, (N, C, H, W), jnp.float32)   # module's NCHW input
    params = init_params(kp, C, C)

    # Layout conversion done once here because the spec is NCHW; an NHWC model
    # would call resfpf_forward_nhwc directly with no transpose at all.
    x_nhwc = jnp.transpose(x_nchw, (0, 2, 3, 1))

    out = jax.block_until_ready(resfpf_forward_nhwc(x_nhwc, params))

    ref = ref_forward_nhwc(x_nhwc, params)
    assert out.shape == (N, H, W, C)
    if not bool(jnp.allclose(out, ref, rtol=2e-2, atol=2e-2)):
        err = float(jnp.max(jnp.abs(out - ref)))
        raise AssertionError(f"Pallas ResFPF kernel mismatch (max abs err {err})")
    print("KERNEL_OK")
</pallas_src>

<mosaic_0001>
module attributes {stable_mosaic.version = 11 : i64} {
  func.func @resfpf_kernel(%arg0: i32, %arg1: memref<1x256x128xf32, #tpu.memory_space<vmem>>, %arg2: memref<256x9xi32, #tpu.memory_space<vmem>>, %arg3: memref<128x32xbf16, #tpu.memory_space<vmem>>, %arg4: memref<288x32xbf16, #tpu.memory_space<vmem>>, %arg5: memref<160x128xbf16, #tpu.memory_space<vmem>>, %arg6: memref<1x128xf32, #tpu.memory_space<vmem>>, %arg7: memref<1x256x128xf32, #tpu.memory_space<vmem>>, %arg8: memref<256x288xbf16, #tpu.memory_space<vmem>>, %arg9: memref<256x160xbf16, #tpu.memory_space<vmem>>) attributes {dimension_semantics = [#tpu.dimension_semantics<parallel>], iteration_bounds = array<i64: 2>, scalar_prefetch = 0 : i64, scratch_operands = 2 : i64, tpu.core_type = #tpu.core_type<tc>, window_params = [{transform_indices = @transform_0, window_bounds = array<i64: 1, 256, 128>}, {pipeline_mode = #tpu.pipeline_mode<synchronous>, transform_indices = @transform_1, window_bounds = array<i64: 256, 9>}, {pipeline_mode = #tpu.pipeline_mode<synchronous>, transform_indices = @transform_2, window_bounds = array<i64: 128, 32>}, {pipeline_mode = #tpu.pipeline_mode<synchronous>, transform_indices = @transform_3, window_bounds = array<i64: 288, 32>}, {pipeline_mode = #tpu.pipeline_mode<synchronous>, transform_indices = @transform_4, window_bounds = array<i64: 160, 128>}, {pipeline_mode = #tpu.pipeline_mode<synchronous>, transform_indices = @transform_5, window_bounds = array<i64: 1, 128>}, {transform_indices = @transform_6, window_bounds = array<i64: 1, 256, 128>}]} {
    %c0 = arith.constant 0 : index
    %c0_0 = arith.constant 0 : index
    %c0_1 = arith.constant 0 : index
    %0 = vector.load %arg1[%c0, %c0_0, %c0_1] : memref<1x256x128xf32, #tpu.memory_space<vmem>>, vector<1x256x128xf32>
    %1 = vector.shape_cast %0 : vector<1x256x128xf32> to vector<256x128xf32>
    %2 = arith.truncf %1 : vector<256x128xf32> to vector<256x128xbf16>
    %c0_2 = arith.constant 0 : index
    %c0_3 = arith.constant 0 : index
    %3 = vector.load %arg3[%c0_2, %c0_3] : memref<128x32xbf16, #tpu.memory_space<vmem>>, vector<128x32xbf16>
    %cst = arith.constant dense<0.000000e+00> : vector<256x32xf32>
    %4 = tpu.matmul %2, %3, %cst {dimension_numbers = #tpu.dot_dimension_numbers<[1], [0], [0], [1], [0, 0, 1, 1], [], []>} : vector<256x128xbf16>, vector<128x32xbf16>, vector<256x32xf32> -> vector<256x32xf32>
    %c0_4 = arith.constant 0 : index
    %c0_5 = arith.constant 0 : index
    %5 = vector.load %arg2[%c0_4, %c0_5] : memref<256x9xi32, #tpu.memory_space<vmem>>, vector<256x9xi32>
    %c17_i32 = arith.constant 17 : i32
    %6 = tpu.dynamic_rotate %4 by %c17_i32 dim 0 : vector<256x32xf32>, i32 -> vector<256x32xf32>
    %7 = vector.extract_strided_slice %5 {offsets = [0, 0], sizes = [256, 1], strides = [1, 1]} : vector<256x9xi32> to vector<256x1xi32>
    %c0_i32 = arith.constant 0 : i32
    %8 = vector.broadcast %c0_i32 : i32 to vector<256x1xi32>
    %9 = arith.cmpi sgt, %7, %8 : vector<256x1xi32>
    %cst_6 = arith.constant 0.000000e+00 : f32
    %10 = vector.shape_cast %9 : vector<256x1xi1> to vector<256x1xi1>
    %11 = vector.broadcast %10 : vector<256x1xi1> to vector<256x32xi1>
    %12 = vector.broadcast %cst_6 : f32 to vector<256x32xf32>
    %13 = arith.select %11, %6, %12 : vector<256x32xi1>, vector<256x32xf32>
    %14 = arith.truncf %13 : vector<256x32xf32> to vector<256x32xbf16>
    %c0_7 = arith.constant 0 : index
    %c0_8 = arith.constant 0 : index
    %15 = vector.load %arg8[%c0_7, %c0_8] : memref<256x288xbf16, #tpu.memory_space<vmem>>, vector<256x32xbf16>
    tpu.vector_store %arg8[%c0_7, %c0_8], %14 {strides = array<i32>} : memref<256x288xbf16, #tpu.memory_space<vmem>>, vector<256x32xbf16>,
    %c16_i32 = arith.constant 16 : i32
    %16 = tpu.dynamic_rotate %4 by %c16_i32 dim 0 : vector<256x32xf32>, i32 -> vector<256x32xf32>
    %17 = vector.extract_strided_slice %5 {offsets = [0, 1], sizes = [256, 1], strides = [1, 1]} : vector<256x9xi32> to vector<256x1xi32>
    %c0_i32_9 = arith.constant 0 : i32
    %18 = vector.broadcast %c0_i32_9 : i32 to vector<256x1xi32>
    %19 = arith.cmpi sgt, %17, %18 : vector<256x1xi32>
    %cst_10 = arith.constant 0.000000e+00 : f32
    %20 = vector.shape_cast %19 : vector<256x1xi1> to vector<256x1xi1>
    %21 = vector.broadcast %20 : vector<256x1xi1> to vector<256x32xi1>
    %22 = vector.broadcast %cst_10 : f32 to vector<256x32xf32>
    %23 = arith.select %21, %16, %22 : vector<256x32xi1>, vector<256x32xf32>
    %24 = arith.truncf %23 : vector<256x32xf32> to vector<256x32xbf16>
    %c0_11 = arith.constant 0 : index
    %c32 = arith.constant 32 : index
    %25 = vector.load %arg8[%c0_11, %c32] : memref<256x288xbf16, #tpu.memory_space<vmem>>, vector<256x32xbf16>
    tpu.vector_store %arg8[%c0_11, %c32], %24 {strides = array<i32>} : memref<256x288xbf16, #tpu.memory_space<vmem>>, vector<256x32xbf16>,
    %c15_i32 = arith.constant 15 : i32
    %26 = tpu.dynamic_rotate %4 by %c15_i32 dim 0 : vector<256x32xf32>, i32 -> vector<256x32xf32>
    %27 = vector.extract_strided_slice %5 {offsets = [0, 2], sizes = [256, 1], strides = [1, 1]} : vector<256x9xi32> to vector<256x1xi32>
    %c0_i32_12 = arith.constant 0 : i32
    %28 = vector.broadcast %c0_i32_12 : i32 to vector<256x1xi32>
    %29 = arith.cmpi sgt, %27, %28 : vector<256x1xi32>
    %cst_13 = arith.constant 0.000000e+00 : f32
    %30 = vector.shape_cast %29 : vector<256x1xi1> to vector<256x1xi1>
    %31 = vector.broadcast %30 : vector<256x1xi1> to vector<256x32xi1>
    %32 = vector.broadcast %cst_13 : f32 to vector<256x32xf32>
    %33 = arith.select %31, %26, %32 : vector<256x32xi1>, vector<256x32xf32>
    %34 = arith.truncf %33 : vector<256x32xf32> to vector<256x32xbf16>
    %c0_14 = arith.constant 0 : index
    %c64 = arith.constant 64 : index
    %35 = vector.load %arg8[%c0_14, %c64] : memref<256x288xbf16, #tpu.memory_space<vmem>>, vector<256x32xbf16>
    tpu.vector_store %arg8[%c0_14, %c64], %34 {strides = array<i32>} : memref<256x288xbf16, #tpu.memory_space<vmem>>, vector<256x32xbf16>,
    %c1_i32 = arith.constant 1 : i32
    %36 = tpu.dynamic_rotate %4 by %c1_i32 dim 0 : vector<256x32xf32>, i32 -> vector<256x32xf32>
    %37 = vector.extract_strided_slice %5 {offsets = [0, 3], sizes = [256, 1], strides = [1, 1]} : vector<256x9xi32> to vector<256x1xi32>
    %c0_i32_15 = arith.constant 0 : i32
    %38 = vector.broadcast %c0_i32_15 : i32 to vector<256x1xi32>
    %39 = arith.cmpi sgt, %37, %38 : vector<256x1xi32>
    %cst_16 = arith.constant 0.000000e+00 : f32
    %40 = vector.shape_cast %39 : vector<256x1xi1> to vector<256x1xi1>
    %41 = vector.broadcast %40 : vector<256x1xi1> to vector<256x32xi1>
    %42 = vector.broadcast %cst_16 : f32 to vector<256x32xf32>
    %43 = arith.select %41, %36, %42 : vector<256x32xi1>, vector<256x32xf32>
    %44 = arith.truncf %43 : vector<256x32xf32> to vector<256x32xbf16>
    %c0_17 = arith.constant 0 : index
    %c96 = arith.constant 96 : index
    %45 = vector.load %arg8[%c0_17, %c96] : memref<256x288xbf16, #tpu.memory_space<vmem>>, vector<256x32xbf16>
    tpu.vector_store %arg8[%c0_17, %c96], %44 {strides = array<i32>} : memref<256x288xbf16, #tpu.memory_space<vmem>>, vector<256x32xbf16>,
    %46 = arith.truncf %4 : vector<256x32xf32> to vector<256x32xbf16>
    %c0_18 = arith.constant 0 : index
    %c128 = arith.constant 128 : index
    %47 = vector.load %arg8[%c0_18, %c128] : memref<256x288xbf16, #tpu.memory_space<vmem>>, vector<256x32xbf16>
    tpu.vector_store %arg8[%c0_18, %c128], %46 {strides = array<i32>} : memref<256x288xbf16, #tpu.memory_space<vmem>>, vector<256x32xbf16>,
    %c255_i32 = arith.constant 255 : i32
    %48 = tpu.dynamic_rotate %4 by %c255_i32 dim 0 : vector<256x32xf32>, i32 -> vector<256x32xf32>
    %49 = vector.extract_strided_slice %5 {offsets = [0, 5], sizes = [256, 1], strides = [1, 1]} : vector<256x9xi32> to vector<256x1xi32>
    %c0_i32_19 = arith.constant 0 : i32
    %50 = vector.broadcast %c0_i32_19 : i32 to vector<256x1xi32>
    %51 = arith.cmpi sgt, %49, %50 : vector<256x1xi32>
    %cst_20 = arith.constant 0.000000e+00 : f32
    %52 = vector.shape_cast %51 : vector<256x1xi1> to vector<256x1xi1>
    %53 = vector.broadcast %52 : vector<256x1xi1> to vector<256x32xi1>
    %54 = vector.broadcast %cst_20 : f32 to vector<256x32xf32>
    %55 = arith.select %53, %48, %54 : vector<256x32xi1>, vector<256x32xf32>
    %56 = arith.truncf %55 : vector<256x32xf32> to vector<256x32xbf16>
    %c0_21 = arith.constant 0 : index
    %c160 = arith.constant 160 : index
    %57 = vector.load %arg8[%c0_21, %c160] : memref<256x288xbf16, #tpu.memory_space<vmem>>, vector<256x32xbf16>
    tpu.vector_store %arg8[%c0_21, %c160], %56 {strides = array<i32>} : memref<256x288xbf16, #tpu.memory_space<vmem>>, vector<256x32xbf16>,
    %c241_i32 = arith.constant 241 : i32
    %58 = tpu.dynamic_rotate %4 by %c241_i32 dim 0 : vector<256x32xf32>, i32 -> vector<256x32xf32>
    %59 = vector.extract_strided_slice %5 {offsets = [0, 6], sizes = [256, 1], strides = [1, 1]} : vector<256x9xi32> to vector<256x1xi32>
    %c0_i32_22 = arith.constant 0 : i32
    %60 = vector.broadcast %c0_i32_22 : i32 to vector<256x1xi32>
    %61 = arith.cmpi sgt, %59, %60 : vector<256x1xi32>
    %cst_23 = arith.constant 0.000000e+00 : f32
    %62 = vector.shape_cast %61 : vector<256x1xi1> to vector<256x1xi1>
    %63 = vector.broadcast %62 : vector<256x1xi1> to vector<256x32xi1>
    %64 = vector.broadcast %cst_23 : f32 to vector<256x32xf32>
    %65 = arith.select %63, %58, %64 : vector<256x32xi1>, vector<256x32xf32>
    %66 = arith.truncf %65 : vector<256x32xf32> to vector<256x32xbf16>
    %c0_24 = arith.constant 0 : index
    %c192 = arith.constant 192 : index
    %67 = vector.load %arg8[%c0_24, %c192] : memref<256x288xbf16, #tpu.memory_space<vmem>>, vector<256x32xbf16>
    tpu.vector_store %arg8[%c0_24, %c192], %66 {strides = array<i32>} : memref<256x288xbf16, #tpu.memory_space<vmem>>, vector<256x32xbf16>,
    %c240_i32 = arith.constant 240 : i32
    %68 = tpu.dynamic_rotate %4 by %c240_i32 dim 0 : vector<256x32xf32>, i32 -> vector<256x32xf32>
    %69 = vector.extract_strided_slice %5 {offsets = [0, 7], sizes = [256, 1], strides = [1, 1]} : vector<256x9xi32> to vector<256x1xi32>
    %c0_i32_25 = arith.constant 0 : i32
    %70 = vector.broadcast %c0_i32_25 : i32 to vector<256x1xi32>
    %71 = arith.cmpi sgt, %69, %70 : vector<256x1xi32>
    %cst_26 = arith.constant 0.000000e+00 : f32
    %72 = vector.shape_cast %71 : vector<256x1xi1> to vector<256x1xi1>
    %73 = vector.broadcast %72 : vector<256x1xi1> to vector<256x32xi1>
    %74 = vector.broadcast %cst_26 : f32 to vector<256x32xf32>
    %75 = arith.select %73, %68, %74 : vector<256x32xi1>, vector<256x32xf32>
    %76 = arith.truncf %75 : vector<256x32xf32> to vector<256x32xbf16>
    %c0_27 = arith.constant 0 : index
    %c224 = arith.constant 224 : index
    %77 = vector.load %arg8[%c0_27, %c224] : memref<256x288xbf16, #tpu.memory_space<vmem>>, vector<256x32xbf16>
    tpu.vector_store %arg8[%c0_27, %c224], %76 {strides = array<i32>} : memref<256x288xbf16, #tpu.memory_space<vmem>>, vector<256x32xbf16>,
    %c239_i32 = arith.constant 239 : i32
    %78 = tpu.dynamic_rotate %4 by %c239_i32 dim 0 : vector<256x32xf32>, i32 -> vector<256x32xf32>
    %79 = vector.extract_strided_slice %5 {offsets = [0, 8], sizes = [256, 1], strides = [1, 1]} : vector<256x9xi32> to vector<256x1xi32>
    %c0_i32_28 = arith.constant 0 : i32
    %80 = vector.broadcast %c0_i32_28 : i32 to vector<256x1xi32>
    %81 = arith.cmpi sgt, %79, %80 : vector<256x1xi32>
    %cst_29 = arith.constant 0.000000e+00 : f32
    %82 = vector.shape_cast %81 : vector<256x1xi1> to vector<256x1xi1>
    %83 = vector.broadcast %82 : vector<256x1xi1> to vector<256x32xi1>
    %84 = vector.broadcast %cst_29 : f32 to vector<256x32xf32>
    %85 = arith.select %83, %78, %84 : vector<256x32xi1>, vector<256x32xf32>
    %86 = arith.truncf %85 : vector<256x32xf32> to vector<256x32xbf16>
    %c0_30 = arith.constant 0 : index
    %c256 = arith.constant 256 : index
    %87 = vector.load %arg8[%c0_30, %c256] : memref<256x288xbf16, #tpu.memory_space<vmem>>, vector<256x32xbf16>
    tpu.vector_store %arg8[%c0_30, %c256], %86 {strides = array<i32>} : memref<256x288xbf16, #tpu.memory_space<vmem>>, vector<256x32xbf16>,
    %c0_31 = arith.constant 0 : index
    %c0_32 = arith.constant 0 : index
    %88 = vector.load %arg8[%c0_31, %c0_32] : memref<256x288xbf16, #tpu.memory_space<vmem>>, vector<256x288xbf16>
    %c0_33 = arith.constant 0 : index
    %c0_34 = arith.constant 0 : index
    %89 = vector.load %arg4[%c0_33, %c0_34] : memref<288x32xbf16, #tpu.memory_space<vmem>>, vector<288x32xbf16>
    %cst_35 = arith.constant dense<0.000000e+00> : vector<256x32xf32>
    %90 = tpu.matmul %88, %89, %cst_35 {dimension_numbers = #tpu.dot_dimension_numbers<[1], [0], [0], [1], [0, 0, 1, 1], [], []>} : vector<256x288xbf16>, vector<288x32xbf16>, vector<256x32xf32> -> vector<256x32xf32>
    %c0_36 = arith.constant 0 : index
    %c0_37 = arith.constant 0 : index
    %91 = vector.load %arg9[%c0_36, %c0_37] : memref<256x160xbf16, #tpu.memory_space<vmem>>, vector<256x128xbf16>
    tpu.vector_store %arg9[%c0_36, %c0_37], %2 {strides = array<i32>} : memref<256x160xbf16, #tpu.memory_space<vmem>>, vector<256x128xbf16>,
    %92 = arith.truncf %90 : vector<256x32xf32> to vector<256x32xbf16>
    %c0_38 = arith.constant 0 : index
    %c128_39 = arith.constant 128 : index
    %93 = vector.load %arg9[%c0_38, %c128_39] : memref<256x160xbf16, #tpu.memory_space<vmem>>, vector<256x32xbf16>
    tpu.vector_store %arg9[%c0_38, %c128_39], %92 {strides = array<i32>} : memref<256x160xbf16, #tpu.memory_space<vmem>>, vector<256x32xbf16>,
    %c0_40 = arith.constant 0 : index
    %c0_41 = arith.constant 0 : index
    %94 = vector.load %arg9[%c0_40, %c0_41] : memref<256x160xbf16, #tpu.memory_space<vmem>>, vector<256x160xbf16>
    %c0_42 = arith.constant 0 : index
    %c0_43 = arith.constant 0 : index
    %95 = vector.load %arg5[%c0_42, %c0_43] : memref<160x128xbf16, #tpu.memory_space<vmem>>, vector<160x128xbf16>
    %cst_44 = arith.constant dense<0.000000e+00> : vector<256x128xf32>
    %96 = tpu.matmul %94, %95, %cst_44 {dimension_numbers = #tpu.dot_dimension_numbers<[1], [0], [0], [1], [0, 0, 1, 1], [], []>} : vector<256x160xbf16>, vector<160x128xbf16>, vector<256x128xf32> -> vector<256x128xf32>
    %c0_45 = arith.constant 0 : index
    %c0_46 = arith.constant 0 : index
    %97 = vector.load %arg6[%c0_45, %c0_46] : memref<1x128xf32, #tpu.memory_space<vmem>>, vector<1x128xf32>
    %98 = vector.broadcast %97 : vector<1x128xf32> to vector<256x128xf32>
    %99 = arith.addf %96, %98 : vector<256x128xf32>
    %100 = math.absf %99 : vector<256x128xf32>
    %cst_47 = arith.constant 0.000000e+00 : f32
    %101 = vector.broadcast %cst_47 : f32 to vector<256x128xf32>
    %102 = arith.subf %101, %100 : vector<256x128xf32>
    %103 = math.exp %102 : vector<256x128xf32>
    %cst_48 = arith.constant 1.000000e+00 : f32
    %104 = vector.broadcast %cst_48 : f32 to vector<256x128xf32>
    %105 = arith.addf %104, %103 : vector<256x128xf32>
    %106 = tpu.reciprocal %105 {approx = true} : vector<256x128xf32> -> vector<256x128xf32>
    %cst_49 = arith.constant 0.000000e+00 : f32
    %107 = vector.broadcast %cst_49 : f32 to vector<256x128xf32>
    %108 = arith.cmpf oge, %99, %107 : vector<256x128xf32>
    %109 = arith.mulf %103, %106 : vector<256x128xf32>
    %110 = arith.select %108, %106, %109 : vector<256x128xi1>, vector<256x128xf32>
    %c0_50 = arith.constant 0 : index
    %c0_51 = arith.constant 0 : index
    %c0_52 = arith.constant 0 : index
    %111 = vector.load %arg1[%c0_50, %c0_51, %c0_52] : memref<1x256x128xf32, #tpu.memory_space<vmem>>, vector<1x256x128xf32>
    %112 = vector.shape_cast %111 : vector<1x256x128xf32> to vector<256x128xf32>
    %113 = arith.mulf %99, %110 : vector<256x128xf32>
    %114 = arith.addf %112, %113 : vector<256x128xf32>
    %c0_53 = arith.constant 0 : index
    %c0_54 = arith.constant 0 : index
    %c0_55 = arith.constant 0 : index
    %115 = vector.load %arg7[%c0_53, %c0_54, %c0_55] : memref<1x256x128xf32, #tpu.memory_space<vmem>>, vector<1x256x128xf32>
    %116 = vector.shape_cast %115 : vector<1x256x128xf32> to vector<256x128xf32>
    %117 = vector.shape_cast %114 : vector<256x128xf32> to vector<1x256x128xf32>
    tpu.vector_store %arg7[%c0_53, %c0_54, %c0_55], %117 {strides = array<i32>} : memref<1x256x128xf32, #tpu.memory_space<vmem>>, vector<1x256x128xf32>,
    return
  }
  func.func @transform_0(%arg0: i32) -> (i32, i32, i32) {
    %c0_i32 = arith.constant 0 : i32
    %c0_i32_0 = arith.constant 0 : i32
    %c0_i32_1 = arith.constant 0 : i32
    return %arg0, %c0_i32, %c0_i32_0 : i32, i32, i32
  }
  func.func @transform_1(%arg0: i32) -> (i32, i32) {
    %c0_i32 = arith.constant 0 : i32
    %c0_i32_0 = arith.constant 0 : i32
    %c0_i32_1 = arith.constant 0 : i32
    return %c0_i32, %c0_i32_0 : i32, i32
  }
  func.func @transform_2(%arg0: i32) -> (i32, i32) {
    %c0_i32 = arith.constant 0 : i32
    %c0_i32_0 = arith.constant 0 : i32
    %c0_i32_1 = arith.constant 0 : i32
    return %c0_i32, %c0_i32_0 : i32, i32
  }
  func.func @transform_3(%arg0: i32) -> (i32, i32) {
    %c0_i32 = arith.constant 0 : i32
    %c0_i32_0 = arith.constant 0 : i32
    %c0_i32_1 = arith.constant 0 : i32
    return %c0_i32, %c0_i32_0 : i32, i32
  }
  func.func @transform_4(%arg0: i32) -> (i32, i32) {
    %c0_i32 = arith.constant 0 : i32
    %c0_i32_0 = arith.constant 0 : i32
    %c0_i32_1 = arith.constant 0 : i32
    return %c0_i32, %c0_i32_0 : i32, i32
  }
  func.func @transform_5(%arg0: i32) -> (i32, i32) {
    %c0_i32 = arith.constant 0 : i32
    %c0_i32_0 = arith.constant 0 : i32
    %c0_i32_1 = arith.constant 0 : i32
    return %c0_i32, %c0_i32_0 : i32, i32
  }
  func.func @transform_6(%arg0: i32) -> (i32, i32, i32) {
    %c0_i32 = arith.constant 0 : i32
    %c0_i32_0 = arith.constant 0 : i32
    %c0_i32_1 = arith.constant 0 : i32
    return %arg0, %c0_i32, %c0_i32_0 : i32, i32, i32
  }
}

</mosaic_0001>

<bundles_post_ra>
// kernel: tpu_custom_call.1
= control target key start
LH: loop header
LB: loop body
LE: loop exit
PB: predicated region body
PF: predicated region fallthrough
CT: control target
= control target key end

     0   :  { %11 = vsyncpa [#allocation5], 0  ;;  %s7943_s0 = inlined_call_operand.vmem [shape: f32[2,256,128], index: 0, kind: input, shape index: {}]   ;;  %s7944_s1 = inlined_call_operand.vmem [shape: s32[256,9], index: 1, kind: input, shape index: {}]   ;;  %s7945_s2 = inlined_call_operand.vmem [shape: bf16[128,32], index: 2, kind: input, shape index: {}]   ;;  %s7946_s3 = inlined_call_operand.vmem [shape: bf16[288,32], index: 3, kind: input, shape index: {}]   ;;  %s7947_s4 = inlined_call_operand.hbm [shape: bf16[160,128], index: 4, kind: input, shape index: {}]   ;;  %s7948_s5 = inlined_call_operand.vmem [shape: f32[1,128], index: 5, kind: input, shape index: {}]   ;;  %s7949_s6 = inlined_call_operand.hbm [shape: f32[2,256,128], index: 6, kind: output, shape index: {}]  }
   0x1   :  { %12 = vsyncpa [#allocation6], 0 }
   0x2   :  { %14 = vsyncpa [#allocation6 + $0x1], 0  ;;  %s4947_s21 = smov 0   ;;  %s4949_s22 = smov 0  }
   0x3   :  { %s4951_s23 = smov 0   ;;  %s4953_s24 = smov 0  }
   0x4 LB: > { %s4968_s25 = sadd.s32 4294967295, %s4893_s24   ;;  %s4165_s26 = sadd.s32 4294967294, %s4893_s24   ;;  %s4893_s24 = sphi %s4953_s24, %s8659_s24   ;;  %s4889_s23 = sphi %s4951_s23, %s8658_s23   ;;  %s4885_s22 = sphi %s4949_s22, %s8657_s22   ;;  %s4881_s21 = sphi %s4947_s21, %s8656_s21  }
   0x5   : > { %s4972_s27 = sadd.s32 1, %s4893_s24   ;;  %s158_s28 = sadd.s32 1, %s4889_s23 }
   0x6   : > { %s155_s29 = ssub.s32 %s4893_s24, %s4972_s27  ;;  %p168_p0 = scmp.ne.s32.totalorder %s4889_s23, %s4885_s22 }
   0x7   : > { %p156_p1 = scmp.eq.s32.totalorder %s155_s29, 0  ;;  %p169_p2 = scmp.eq.s32.totalorder %s4968_s25, 1 }
   0x8   : > { %p174_p3 = scmp.ne.s32.totalorder %s4885_s22, %s4881_s21  ;;  %p175_p4 = scmp.eq.s32.totalorder %s4165_s26, 1 }
   0x9   : > { %s4983_s30 = scalar_select %p156_p1, %s4889_s23, %s158_s28  }
   0xa   : > { %p4985_p5 = por %p169_p2, %p168_p0  ;;  %p4989_p6 = por %p175_p4, %p174_p3 }
   0xb   : > { %p4166_p7 = scmp.ge.s32.totalorder %s4893_s24, 1  ;;  %p182_p8 = scmp.lt.s32.totalorder %s4893_s24, 3 }
   0xc   : > { %s8213_s7 = scalar_select %p4985_p5, 1, 0 }
   0xd   : > { %s8214_s8 = scalar_select %p4989_p6, 1, 0 }
   0xe   : > { %p7950_p9 = scmp.eq.s32.totalorder %s4968_s25, 0  ;;  %p4996_p10 = pnand %p4166_p7, %p182_p8 }
   0xf   : > { %s4895_s10 = smov [#allocation4]   ;;  %s4799_s15 = scalar_lea.hbm %s7947_s4, 1280 }
  0x10   : > { %s8215_s9 = scalar_select %p4996_p10, 1, 0 }
  0x11   : > { %s203_s11 = sshll.u32 %s4895_s10, 4  ;;  %p4494_p11 = pneg %p4996_p10  ;;  %s204_s11 = int_to_ptr.vmem [resolvable:$true] %s203_s11 }
  0x12   : > { %p4800_p13 = scmp.ne.s32.totalorder %s7947_s4, %s4799_s15  ;;  %p4806_p3 = scmp.lt.u32.totalorder %s4799_s15, %s7947_s4 }
  0x13   : > { %p5004_p12 = pnand %p7950_p9, %p4494_p11 }
  0x15   : > { %p4801_p0 = pneg %p5004_p12 }
  0x17   : > { %p4802_p1 = pnand %p4801_p0, %p4800_p13 }
  0x19   : > { %p4803_p2 = pneg %p4802_p1 }
  0x1b   : > { %p4808_p4 = pnand %p4806_p3, %p4803_p2 }
  0x1d   : > { %4811 = shalt.err (!%p4808_p4)
}
  0x1e   : > { %s4812_s20 = scalar_lea.vmem %s204_s11, 1280  ;;  %p4820_p9 = scmp.lt.s32.totalorder %s204_s11, %s204_s11 }
  0x1f   : > { %p4813_p7 = scmp.ne.s32.totalorder %s204_s11, %s4812_s20  ;;  %p4821_p6 = scmp.lt.s32.totalorder %s4812_s20, %s4812_s20 }
  0x21   : > { %p4815_p8 = pnand %p4813_p7, %p4801_p0  ;;  %p4822_p5 = por %p4821_p6, %p4820_p9 }
  0x23   : > { %p4816_p11 = pneg %p4815_p8 }
  0x25   : > { %p4823_p10 = pnand %p4822_p5, %p4816_p11 }
  0x27   : > { %4826 = shalt.err (!%p4823_p10)
}
  0x28   : > { %s4896_s26 = smov 64   ;;  %s4897_s28 = smov 4  }
  0x29   : > { %4497 = dma.hbm_to_vmem [thread:$0]  (!%p5004_p12), %s7947_s4, 1280, %s204_s11, [#allocation5], %s4896_s26, %s4896_s26, %s4897_s28  }
  0x2a   : > { %p8217_p13 = scmp.ne.s32.totalorder %s8215_s9, 0 }
  0x2c   : > { %230 = sbr.rel (%p8217_p13) target bundleno = 1592 (0x638), region = 44 }
  0x33   : > { %p8218_p1 = scmp.eq.s32.totalorder %s4968_s25, 0 }
  0x35   : > { %4872 = dma.done.wait (%p8218_p1), [#allocation5], 1280   ;;  %p8219_p0 = pmov %p8218_p1 }
  0x36   : > { %v7953_v0 = vmov 0   ;;  %v541_v1 = vld [vmem:[%s7944_s1 + $0x10] sm:$0xff]  ;;  %v539_v2 = vld [vmem:[%s7944_s1] sm:$0xff]  ;;  %p260_p5 = scmp.lt.s32.totalorder %s4968_s25, 1  ;;  %v542_v4 = vld [vmem:[%s7944_s1 + $0x18] sm:$0xff]  ;;  %s4905_s29 = smov 32  }
  0x37   : > { %4874 = vsyncadd (%p8219_p0), [#allocation5], 4294966016  ;;  %4554 = vset.pattern.permute.xlu1 %v7953_v0  ;;  %4553 = vset.pattern.permute.xlu0 %v7953_v0  ;;  %vm640_vm0 = vcmp.gt.s32.totalorder %v541_v1, 0  ;;  %vm638_vm1 = vcmp.gt.s32.totalorder %v539_v2, 0  ;;  %v4634_v3 = vld [vmem:[%s7945_s2] sm:$0xff]   ;;  %vm641_vm2 = vcmp.gt.s32.totalorder %v542_v4, 0 }
  0x38   : > { %v5046_v5 = vsel %vm640_vm0, 1, %v7953_v0  ;;  %v5049_v6 = vsel %vm638_vm1, 1, %v7953_v0  ;;  %v540_v7 = vld [vmem:[%s7944_s1 + $0x8] sm:$0xff]  ;;  %4404 = vmatprep.subr.bf16.mxu1 %v4634_v3  ;;  %v5063_v10 = vsel %vm641_vm2, 1, %v7953_v0  ;;  %v543_v12 = vld [vmem:[%s7944_s1 + $0x20] sm:$0xff]  ;;  %v4636_v13 = vld [vmem:[%s7945_s2 + $0x10] sm:$0xff]  }
  0x39   : > { %8220 = vst [vmem:[#allocation10_spill] sm:$0xff] %v5046_v5  ;;  %8221 = vst [vmem:[#allocation11_spill] sm:$0xff] %v5049_v6  ;;  %709 = vperm.xlu1 %4554, %v5046_v5   ;;  %703 = vperm.xlu0 %4553, %v5049_v6   ;;  %vm639_vm3 = vcmp.gt.s32.totalorder %v540_v7, 0  ;;  %v4635_v8 = vld [vmem:[%s7945_s2 + $0x8] sm:$0xff]   ;;  %vm642_vm5 = vcmp.gt.s32.totalorder %v543_v12, 0  ;;  %s261_s14 = scalar_select %p260_p5, %s4968_s25, 1 }
  0x3a   : > { %v544_v9 = vld [vmem:[%s7944_s1 + $0x28] sm:$0xff]  ;;  %8222 = vst [vmem:[#allocation12_spill] sm:$0xff] %v5063_v10  ;;  %v5066_v11 = vsel %vm639_vm3, 1, %v7953_v0  ;;  %4405 = vmatpush3.bf16.msra.mxu1 %v4634_v3  ;;  %v546_v14 = vld [vmem:[%s7944_s1 + $0x38] sm:$0xff]  ;;  %v545_v15 = vld [vmem:[%s7944_s1 + $0x30] sm:$0xff]  ;;  %v5089_v17 = vsel %vm642_vm5, 1, %v7953_v0 }
  0x3b   : > { %8223 = vst [vmem:[#allocation13_spill] sm:$0xff] %v5066_v11  ;;  %vm643_vm4 = vcmp.gt.s32.totalorder %v544_v9, 0  ;;  %4406 = vmatprep.subr.bf16.mxu1 %v4635_v8  ;;  %8225 = vst [vmem:[#allocation15_spill] sm:$0xff] %v5089_v17  ;;  %vm645_vm6 = vcmp.gt.s32.totalorder %v546_v14, 0  ;;  %vm644_vm7 = vcmp.gt.s32.totalorder %v545_v15, 0  ;;  %v4637_v18 = vld [vmem:[%s7945_s2 + $0x18] sm:$0xff]  }
  0x3c   : > { %v5086_v16 = vsel %vm643_vm4, 1, %v7953_v0  ;;  %v548_v19 = vld [vmem:[%s7944_s1 + $0x48] sm:$0xff]  ;;  %s4248_s28 = sshll.u32 %s261_s14, 8  ;;  %v547_v20 = vld [vmem:[%s7944_s1 + $0x40] sm:$0xff]  ;;  %v5103_v21 = vsel %vm645_vm6, 1, %v7953_v0  ;;  %v5106_v22 = vsel %vm644_vm7, 1, %v7953_v0 }
  0x3d   : > { %712 = vperm.xlu1 %4554, %v5063_v10   ;;  %706 = vperm.xlu0 %4553, %v5066_v11   ;;  %8224 = vst [vmem:[#allocation14_spill] sm:$0xff] %v5086_v16  ;;  %8226 = vst [vmem:[#allocation16_spill] sm:$0xff] %v5103_v21  ;;  %s5111_s11 = scalar_lea.vmem %s7943_s0, %s4248_s28  ;;  %vm647_vm8 = vcmp.gt.s32.totalorder %v548_v19, 0  ;;  %vm646_vm9 = vcmp.gt.s32.totalorder %v547_v20, 0  ;;  %v4638_v23 = vld [vmem:[%s7945_s2 + $0x20] sm:$0xff]   ;;  %v550_v24 = vld [vmem:[%s7944_s1 + $0x58] sm:$0xff] }
  0x3e   : > { %4407 = vmatpush3.bf16.msra.mxu1 %v4635_v8  ;;  %8227 = vst [vmem:[#allocation17_spill] sm:$0xff] %v5106_v22  ;;  %v549_v25 = vld [vmem:[%s7944_s1 + $0x50] sm:$0xff]  ;;  %v266_v26 = vld [vmem:[%s5111_s11] sm:$0xff]  ;;  %v267_v27 = vld [vmem:[%s5111_s11 + $0x8] sm:$0xff]  ;;  %v5127_v28 = vsel %vm647_vm8, 1, %v7953_v0  ;;  %v5130_v29 = vsel %vm646_vm9, 1, %v7953_v0 }
  0x3f   : > { %4408 = vmatprep.subr.bf16.mxu1 %v4636_v13  ;;  %8228 = vst [vmem:[#allocation18_spill] sm:$0xff] %v5127_v28  ;;  %8229 = vst [vmem:[#allocation19_spill] sm:$0xff] %v5130_v29  ;;  %vm649_vm10 = vcmp.gt.s32.totalorder %v550_v24, 0  ;;  %v4639_v30 = vld [vmem:[%s7945_s2 + $0x28] sm:$0xff]   ;;  %v551_v32 = vld [vmem:[%s7944_s1 + $0x60] sm:$0xff]  ;;  %v298_v33 = vpack.c.bf16 %v267_v27, %v266_v26  ;;  %vm648_vm11 = vcmp.gt.s32.totalorder %v549_v25, 0 }
  0x40   : > { %v552_v31 = vld [vmem:[%s7944_s1 + $0x68] sm:$0xff]  ;;  %v268_v34 = vld [vmem:[%s5111_s11 + $0x10] sm:$0xff]  ;;  %v554_v35 = vld [vmem:[%s7944_s1 + $0x78] sm:$0xff]  ;;  %v5160_v42 = vsel %vm649_vm10, 1, %v7953_v0  ;;  %v5171_v47 = vsel %vm648_vm11, 1, %v7953_v0  ;;  %vm650_vm13 = vcmp.gt.s32.totalorder %v551_v32, 0 }
  0x41   : > { %718 = vperm.xlu1 %4554, %v5086_v16   ;;  %715 = vperm.xlu0 %4553, %v5089_v17   ;;  %v553_v36 = vld [vmem:[%s7944_s1 + $0x70] sm:$0xff]  ;;  %v269_v37 = vld [vmem:[%s5111_s11 + $0x18] sm:$0xff]  ;;  %3285 = vst [vmem:[#allocation3] sm:$0xff] %v298_v33  ;;  %v556_v38 = vld [vmem:[%s7944_s1 + $0x88] sm:$0xff]  ;;  %vm651_vm12 = vcmp.gt.s32.totalorder %v552_v31, 0  ;;  %vm653_vm14 = vcmp.gt.s32.totalorder %v554_v35, 0 }
  0x42   : > { %4409 = vmatpush3.bf16.msra.mxu1 %v4636_v13  ;;  %4420 = vmatprep.mubr.bf16.mxu1 %v298_v33  ;;  %v5152_v39 = vpack.c.bf16 %v269_v37, %v268_v34  ;;  %v270_v40 = vld [vmem:[%s5111_s11 + $0x20] sm:$0xff]  ;;  %v271_v41 = vld [vmem:[%s5111_s11 + $0x28] sm:$0xff]  ;;  %8230 = vst [vmem:[#allocation20_spill] sm:$0xff] %v5160_v42  ;;  %v272_v45 = vld [vmem:[%s5111_s11 + $0x30] sm:$0xff]  ;;  %vm652_vm15 = vcmp.gt.s32.totalorder %v553_v36, 0  ;;  %vm655_vm0 = vcmp.gt.s32.totalorder %v556_v38, 0 }
  0x43   : > { %4410 = vmatprep.subr.bf16.mxu1 %v4637_v18  ;;  %v555_v43 = vld [vmem:[%s7944_s1 + $0x80] sm:$0xff]  ;;  %v5165_v44 = vpack.c.bf16 %v271_v41, %v270_v40  ;;  %v273_v46 = vld [vmem:[%s5111_s11 + $0x38] sm:$0xff]  ;;  %8231 = vst [vmem:[#allocation21_spill] sm:$0xff] %v5171_v47  ;;  %v5176_v48 = vld [vmem:[%s7945_s2 + $0x30] sm:$0xff]   ;;  %v5205_v59 = vsel %vm651_vm12, 1, %v7953_v0  ;;  %v5209_v60 = vsel %vm650_vm13, 1, %v7953_v0 }
  0x44   : > { %3286 = vst [vmem:[#allocation3 + $0x10] sm:$0xff] %v5152_v39  ;;  %v558_v49 = vld [vmem:[%s7944_s1 + $0x98] sm:$0xff]  ;;  %v5182_v50 = vpack.c.bf16 %v273_v46, %v272_v45  ;;  %v274_v51 = vld [vmem:[%s5111_s11 + $0x40] sm:$0xff]  ;;  %v557_v52 = vld [vmem:[%s7944_s1 + $0x90] sm:$0xff]  ;;  %vm654_vm1 = vcmp.gt.s32.totalorder %v555_v43, 0  ;;  %v5220_v2 = vsel %vm653_vm14, 1, %v7953_v0 }
  0x45   : > { %724 = vperm.xlu1 %4554, %v5103_v21   ;;  %721 = vperm.xlu0 %4553, %v5106_v22   ;;  %3287 = vst [vmem:[#allocation3 + $0x20] sm:$0xff] %v5165_v44  ;;  %v560_v53 = vld [vmem:[%s7944_s1 + $0xa8] sm:$0xff]  ;;  %v559_v55 = vld [vmem:[%s7944_s1 + $0xa0] sm:$0xff]  ;;  %v276_v57 = vld [vmem:[%s5111_s11 + $0x50] sm:$0xff]  ;;  %v5224_v3 = vsel %vm652_vm15, 1, %v7953_v0  ;;  %vm657_vm2 = vcmp.gt.s32.totalorder %v558_v49, 0 }
  0x46   : > { %4411 = vmatpush3.bf16.msra.mxu1 %v4637_v18  ;;  %v275_v54 = vld [vmem:[%s5111_s11 + $0x48] sm:$0xff]  ;;  %3288 = vst [vmem:[#allocation3 + $0x30] sm:$0xff] %v5182_v50  ;;  %v277_v58 = vld [vmem:[%s5111_s11 + $0x58] sm:$0xff]  ;;  %8232 = vst [vmem:[#allocation22_spill] sm:$0xff] %v5205_v59  ;;  %v5241_v13 = vsel %vm655_vm0, 1, %v7953_v0  ;;  %v5245_v14 = vsel %vm654_vm1, 1, %v7953_v0 }
  0x47   : > { %4412 = vmatprep.subr.bf16.mxu1 %v4638_v23  ;;  %v5197_v56 = vpack.c.bf16 %v275_v54, %v274_v51  ;;  %8233 = vst [vmem:[#allocation23_spill] sm:$0xff] %v5209_v60  ;;  %v562_v61 = vld [vmem:[%s7944_s1 + $0xb8] sm:$0xff]  ;;  %v5214_v62 = vpack.c.bf16 %v277_v58, %v276_v57  ;;  %v278_v63 = vld [vmem:[%s5111_s11 + $0x60] sm:$0xff]  ;;  %v279_v1 = vld [vmem:[%s5111_s11 + $0x68] sm:$0xff]  ;;  %vm656_vm3 = vcmp.gt.s32.totalorder %v557_v52, 0  ;;  %vm659_vm4 = vcmp.gt.s32.totalorder %v560_v53, 0 }
  0x48   : > { %8234 = vst [vmem:[#allocation24_spill] sm:$0xff] %v5220_v2  ;;  %8235 = vst [vmem:[#allocation25_spill] sm:$0xff] %v5224_v3  ;;  %v561_v4 = vld [vmem:[%s7944_s1 + $0xb0] sm:$0xff]  ;;  %v564_v7 = vld [vmem:[%s7944_s1 + $0xc8] sm:$0xff]  ;;  %v5233_v8 = vpack.c.bf16 %v279_v1, %v278_v63  ;;  %vm658_vm5 = vcmp.gt.s32.totalorder %v559_v55, 0  ;;  %vm661_vm6 = vcmp.gt.s32.totalorder %v562_v61, 0 }
  0x49   : > { %730 = vperm.xlu1 %4554, %v5127_v28   ;;  %727 = vperm.xlu0 %4553, %v5130_v29   ;;  %3289 = vst [vmem:[#allocation3 + $0x40] sm:$0xff] %v5197_v56  ;;  %v280_v9 = vld [vmem:[%s5111_s11 + $0x70] sm:$0xff]  ;;  %v4641_v12 = vld [vmem:[%s7945_s2 + $0x38] sm:$0xff]   ;;  %8236 = vst [vmem:[#allocation26_spill] sm:$0xff] %v5241_v13  ;;  %v5263_v25 = vsel %vm657_vm2, 1, %v7953_v0  ;;  %vm660_vm7 = vcmp.gt.s32.totalorder %v561_v4, 0 }
  0x4a   : > { %4413 = vmatpush3.bf16.msra.mxu1 %v4638_v23  ;;  %8237 = vst [vmem:[#allocation27_spill] sm:$0xff] %v5245_v14  ;;  %v563_v15 = vld [vmem:[%s7944_s1 + $0xc0] sm:$0xff]  ;;  %3290 = vst [vmem:[#allocation3 + $0x50] sm:$0xff] %v5214_v62  ;;  %v281_v18 = vld [vmem:[%s5111_s11 + $0x78] sm:$0xff]  ;;  %vm663_vm8 = vcmp.gt.s32.totalorder %v564_v7, 0  ;;  %v5272_v32 = vsel %vm656_vm3, 1, %v7953_v0 }
  0x4b   : > { %4414 = vmatprep.subr.bf16.mxu1 %v4639_v30  ;;  %3291 = vst [vmem:[#allocation3 + $0x60] sm:$0xff] %v5233_v8  ;;  %v5254_v19 = vpack.c.bf16 %v281_v18, %v280_v9  ;;  %v282_v20 = vld [vmem:[%s5111_s11 + $0x80] sm:$0xff]  ;;  %v283_v23 = vld [vmem:[%s5111_s11 + $0x88] sm:$0xff]  ;;  %v284_v24 = vld [vmem:[%s5111_s11 + $0x90] sm:$0xff]  ;;  %vm662_vm9 = vcmp.gt.s32.totalorder %v563_v15, 0  ;;  %v5285_v38 = vsel %vm659_vm4, 1, %v7953_v0 }
  0x4c   : > { %8238 = vst [vmem:[#allocation28_spill] sm:$0xff] %v5263_v25  ;;  %v5265_v26 = vpack.c.bf16 %v283_v23, %v282_v20  ;;  %v285_v27 = vld [vmem:[%s5111_s11 + $0x98] sm:$0xff]  ;;  %v287_v31 = vld [vmem:[%s5111_s11 + $0xa8] sm:$0xff]  ;;  %8239 = vst [vmem:[#allocation29_spill] sm:$0xff] %v5272_v32  ;;  %v5289_v40 = vsel %vm658_vm5, 1, %v7953_v0  ;;  %v5293_v41 = vsel %vm661_vm6, 1, %v7953_v0 }
  0x4d   : > { %736 = vperm.xlu1 %4554, %v5160_v42   ;;  %733 = vperm.xlu0 %4553, %v5171_v47   ;;  %3292 = vst [vmem:[#allocation3 + $0x70] sm:$0xff] %v5254_v19  ;;  %v5275_v33 = vpack.c.bf16 %v285_v27, %v284_v24  ;;  %v288_v35 = vld [vmem:[%s5111_s11 + $0xb0] sm:$0xff]  ;;  %v289_v36 = vld [vmem:[%s5111_s11 + $0xb8] sm:$0xff]  ;;  %v290_v37 = vld [vmem:[%s5111_s11 + $0xc0] sm:$0xff]  ;;  %v5303_v49 = vsel %vm660_vm7, 1, %v7953_v0  ;;  %v5307_v51 = vsel %vm663_vm8, 1, %v7953_v0 }
  0x4e   : > { %4415 = vmatpush3.bf16.msra.mxu1 %v4639_v30  ;;  %v286_v30 = vld [vmem:[%s5111_s11 + $0xa0] sm:$0xff]  ;;  %8240 = vst [vmem:[#allocation30_spill] sm:$0xff] %v5285_v38  ;;  %8241 = vst [vmem:[#allocation31_spill] sm:$0xff] %v5289_v40  ;;  %v5296_v43 = vpack.c.bf16 %v289_v36, %v288_v35  ;;  %v291_v45 = vld [vmem:[%s5111_s11 + $0xc8] sm:$0xff]  ;;  %v5322_v58 = vsel %vm662_vm9, 1, %v7953_v0  ;;  %v4899_v20 = vmov 1  }
  0x4f   : > { %4416 = vmatprep.subr.bf16.mxu1 %v5176_v48  ;;  %v5277_v34 = vpack.c.bf16 %v287_v31, %v286_v30  ;;  %8242 = vst [vmem:[#allocation32_spill] sm:$0xff] %v5293_v41  ;;  %3293 = vst [vmem:[#allocation3 + $0x80] sm:$0xff] %v5265_v26  ;;  %v292_v46 = vld [vmem:[%s5111_s11 + $0xd0] sm:$0xff]  ;;  %v5311_v52 = vpack.c.bf16 %v291_v45, %v290_v37  ;;  %v294_v54 = vld [vmem:[%s5111_s11 + $0xe0] sm:$0xff]  ;;  %v4900_v24 = vmov 2   ;;  %vm878_vm4 = vcmask 261120  }
  0x50   : > { %8243 = vst [vmem:[#allocation33_spill] sm:$0xff] %v5303_v49  ;;  %8244 = vst [vmem:[#allocation34_spill] sm:$0xff] %v5307_v51  ;;  %v295_v55 = vld [vmem:[%s5111_s11 + $0xe8] sm:$0xff]  ;;  %v296_v57 = vld [vmem:[%s5111_s11 + $0xf0] sm:$0xff]  ;;  %s4906_s10 = smov 64   ;;  %s4908_s12 = smov 96  }
  0x51   : > { %742 = vperm.xlu1 %4554, %v5205_v59   ;;  %739 = vperm.xlu0 %4553, %v5209_v60   ;;  %3294 = vst [vmem:[#allocation3 + $0x90] sm:$0xff] %v5275_v33  ;;  %3295 = vst [vmem:[#allocation3 + $0xa0] sm:$0xff] %v5277_v34  ;;  %v5325_v61 = vpack.c.bf16 %v295_v55, %v294_v54  ;;  %v297_v63 = vld [vmem:[%s5111_s11 + $0xf8] sm:$0xff]  ;;  %v565_v7 = vld [vmem:[%s7944_s1 + $0xd0] sm:$0xff]  ;;  %s4249_s19 = sshll.u32 %s4968_s25, 12  ;;  %p8654_p9 = scmp.ne.s32.totalorder %s8213_s7, 0 }
  0x52   : > { %4417 = vmatpush3.bf16.msra.mxu1 %v5176_v48  ;;  %v293_v48 = vld [vmem:[%s5111_s11 + $0xd8] sm:$0xff]  ;;  %8245 = vst [vmem:[#allocation35_spill] sm:$0xff] %v5322_v58  ;;  %3296 = vst [vmem:[#allocation3 + $0xb0] sm:$0xff] %v5296_v43  ;;  %v5330_v1 = vpack.c.bf16 %v297_v63, %v296_v57  ;;  %vm664_vm11 = vcmp.gt.s32.totalorder %v565_v7, 0  ;;  %s7894_s13 = scalar_lea.hbm %s7949_s6, %s4249_s19 }
  0x53   : > { %4418 = vmatprep.subr.bf16.mxu1 %v4641_v12  ;;  %v5313_v53 = vpack.c.bf16 %v293_v48, %v292_v46  ;;  %3297 = vst [vmem:[#allocation3 + $0xc0] sm:$0xff] %v5311_v52  ;;  %3299 = vst [vmem:[#allocation3 + $0xe0] sm:$0xff] %v5325_v61  ;;  %v566_v4 = vld [vmem:[%s7944_s1 + $0xd8] sm:$0xff] }
  0x54   : > { %3300 = vst [vmem:[#allocation3 + $0xf0] sm:$0xff] %v5330_v1  ;;  %vm665_vm10 = vcmp.gt.s32.totalorder %v566_v4, 0  ;;  %v570_v9 = vld [vmem:[%s7944_s1 + $0xf8] sm:$0xff] }
  0x55   : > { %748 = vperm.xlu1 %4554, %v5220_v2   ;;  %745 = vperm.xlu0 %4553, %v5224_v3   ;;  %3298 = vst [vmem:[#allocation3 + $0xd0] sm:$0xff] %v5313_v53  ;;  %vm669_vm14 = vcmp.gt.s32.totalorder %v570_v9, 0 }
  0x56   : > { %4419 = vmatpush3.bf16.msra.mxu1 %v4641_v12  ;;  %v569_v12 = vld [vmem:[%s7944_s1 + $0xf0] sm:$0xff] }
  0x57   : > { %vm668_vm15 = vcmp.gt.s32.totalorder %v569_v12, 0 }
  0x58   : > { %v5389_v18 = vsel %vm668_vm15, 1, %v7953_v0 }
  0x59   : > { %754 = vperm.xlu1 %4554, %v5241_v13   ;;  %751 = vperm.xlu0 %4553, %v5245_v14   ;;  %8251 = vst [vmem:[#allocation41_spill] sm:$0xff] %v5389_v18 }
  0x5a   : > { %4421 = vmatmul.mubr.bf16.vlgmr.msra.gmra.mrb[0].mxu1 %v5152_v39  ;;  %v568_v39 = vld [vmem:[%s7944_s1 + $0xe8] sm:$0xff] }
  0x5b   : > { %4424 = vmatprep.mubr.bf16.mxu1 %v5165_v44  ;;  %v567_v44 = vld [vmem:[%s7944_s1 + $0xe0] sm:$0xff]  ;;  %vm667_vm12 = vcmp.gt.s32.totalorder %v568_v39, 0 }
  0x5c   : > { %vm666_vm13 = vcmp.gt.s32.totalorder %v567_v44, 0 }
  0x5d   : > { %760 = vperm.xlu1 %4554, %v5263_v25   ;;  %757 = vperm.xlu0 %4553, %v5272_v32   ;;  %v5380_v15 = vsel %vm666_vm13, 1, %v7953_v0 }
  0x5e   : > { %8249 = vst [vmem:[#allocation39_spill] sm:$0xff] %v5380_v15 }
  0x61   : > { %766 = vperm.xlu1 %4554, %v5285_v38   ;;  %763 = vperm.xlu0 %4553, %v5289_v40  }
  0x62   : > { %4425 = vmatmul.mubr.bf16.gmra.mrb[4].mxu1 %v5182_v50  ;;  %v5362_v50 = vsel %vm665_vm10, 1, %v7953_v0 }
  0x63   : > { %4428 = vmatprep.mubr.bf16.mxu1 %v5197_v56  ;;  %8246 = vst [vmem:[#allocation36_spill] sm:$0xff] %v5362_v50  ;;  %v5365_v56 = vsel %vm664_vm11, 1, %v7953_v0 }
  0x64   : > { %8247 = vst [vmem:[#allocation37_spill] sm:$0xff] %v5365_v56 }
  0x65   : > { %772 = vperm.xlu1 %4554, %v5293_v41   ;;  %769 = vperm.xlu0 %4553, %v5303_v49  }
  0x69   : > { %778 = vperm.xlu1 %4554, %v5307_v51   ;;  %775 = vperm.xlu0 %4553, %v5322_v58  }
  0x6a   : > { %4429 = vmatmul.mubr.bf16.gmra.mrb[8].mxu1 %v5214_v62  ;;  %v5377_v62 = vsel %vm667_vm12, 1, %v7953_v0 }
  0x6b   : > { %4432 = vmatprep.mubr.bf16.mxu1 %v5233_v8  ;;  %8248 = vst [vmem:[#allocation38_spill] sm:$0xff] %v5377_v62  ;;  %v5386_v8 = vsel %vm669_vm14, 1, %v7953_v0 }
  0x6c   : > { %8250 = vst [vmem:[#allocation40_spill] sm:$0xff] %v5386_v8 }
  0x6d   : > { %784 = vperm.xlu1 %4554, %v5362_v50   ;;  %781 = vperm.xlu0 %4553, %v5365_v56  }
  0x71   : > { %790 = vperm.xlu1 %4554, %v5377_v62   ;;  %787 = vperm.xlu0 %4553, %v5380_v15  }
  0x72   : > { %4433 = vmatmul.mubr.bf16.gmra.mrb[12].mxu1 %v5254_v19 }
  0x73   : > { %4436 = vmatprep.mubr.bf16.mxu1 %v5265_v26 }
  0x75   : > { %796 = vperm.xlu1 %4554, %v5386_v8   ;;  %793 = vperm.xlu0 %4553, %v5389_v18  }
  0x79   : > { %4556 = vset.pattern.permute.xlu1 %v4899_v20  ;;  %4555 = vset.pattern.permute.xlu0 %v4899_v20 }
  0x7a   : > { %4437 = vmatmul.mubr.bf16.gmra.mrb[16].mxu1 %v5275_v33  ;;  %899 = vperm.xlu1 %4556, %v5066_v11  }
  0x7b   : > { %896 = vperm.xlu0 %4555, %v5049_v6   ;;  %4440 = vmatprep.mubr.bf16.mxu1 %v5277_v34 }
  0x7e   : > { %902 = vperm.xlu1 %4556, %v5046_v5  }
  0x7f   : > { %905 = vperm.xlu0 %4555, %v5063_v10  }
  0x82   : > { %4441 = vmatmul.mubr.bf16.gmra.mrb[20].mxu1 %v5296_v43  ;;  %908 = vperm.xlu1 %4556, %v5089_v17  }
  0x83   : > { %911 = vperm.xlu0 %4555, %v5086_v16   ;;  %4444 = vmatprep.mubr.bf16.mxu1 %v5311_v52 }
  0x86   : > { %914 = vperm.xlu1 %4556, %v5106_v22  }
  0x87   : > { %917 = vperm.xlu0 %4555, %v5103_v21  }
  0x8a   : > { %4445 = vmatmul.mubr.bf16.gmra.mrb[24].mxu1 %v5313_v53  ;;  %920 = vperm.xlu1 %4556, %v5130_v29  }
  0x8b   : > { %923 = vperm.xlu0 %4555, %v5127_v28   ;;  %4448 = vmatprep.mubr.bf16.mxu1 %v5325_v61 }
  0x8e   : > { %926 = vperm.xlu1 %4556, %v5171_v47  }
  0x8f   : > { %929 = vperm.xlu0 %4555, %v5160_v42  }
  0x92   : > { %4449 = vmatmul.mubr.bf16.gmra.mrb[28].mxu1 %v5330_v1  ;;  %932 = vperm.xlu1 %4556, %v5209_v60  }
  0x93   : > { %935 = vperm.xlu0 %4555, %v5205_v59  }
  0x96   : > { %938 = vperm.xlu1 %4556, %v5224_v3  }
  0x97   : > { %941 = vperm.xlu0 %4555, %v5220_v2  }
  0x9a   : > { %944 = vperm.xlu1 %4556, %v5245_v14  }
  0x9b   : > { %947 = vperm.xlu0 %4555, %v5241_v13  }
  0x9e   : > { %950 = vperm.xlu1 %4556, %v5272_v32  }
  0x9f   : > { %953 = vperm.xlu0 %4555, %v5263_v25  }
  0xa2   : > { %956 = vperm.xlu1 %4556, %v5289_v40  }
  0xa3   : > { %959 = vperm.xlu0 %4555, %v5285_v38  }
  0xa6   : > { %962 = vperm.xlu1 %4556, %v5303_v49  }
  0xa7   : > { %965 = vperm.xlu0 %4555, %v5293_v41  }
  0xaa   : > { %968 = vperm.xlu1 %4556, %v5322_v58  }
  0xab   : > { %971 = vperm.xlu0 %4555, %v5307_v51  }
  0xae   : > { %974 = vperm.xlu1 %4556, %v5365_v56  }
  0xaf   : > { %977 = vperm.xlu0 %4555, %v5362_v50  }
  0xb2   : > { %980 = vperm.xlu1 %4556, %v5380_v15  }
  0xb3   : > { %983 = vperm.xlu0 %4555, %v5377_v62  }
  0xb6   : > { %986 = vperm.xlu1 %4556, %v5389_v18  }
  0xb7   : > { %989 = vperm.xlu0 %4555, %v5386_v8  }
  0xb8   : > { %v5433_v19 = vpop.permute.xlu1 %709  ;;  %v5435_v23 = vpop.permute.xlu0 %703 }
  0xb9   : > { %8252 = vst [vmem:[#allocation42_spill] sm:$0xff] %v5433_v19  ;;  %8253 = vst [vmem:[#allocation43_spill] sm:$0xff] %v5435_v23 }
  0xba   : > { %4557 = vset.pattern.permute.xlu1 %v4900_v24 }
  0xbb   : > { %4558 = vset.pattern.permute.xlu0 %v4900_v24  ;;  %1218 = vperm.xlu1 %4557, %v5049_v6  }
  0xbc   : > { %1221 = vperm.xlu0 %4558, %v5066_v11   ;;  %v5439_v26 = vpop.permute.xlu1 %712  ;;  %v5441_v27 = vpop.permute.xlu0 %706 }
  0xbd   : > { %8254 = vst [vmem:[#allocation44_spill] sm:$0xff] %v5441_v27  ;;  %vm801_vm11 = vcmp.eq.s32.totalorder %v5439_v26, 1 }
  0xbf   : > { %1224 = vperm.xlu1 %4557, %v5046_v5  }
  0xc0   : > { %1230 = vperm.xlu0 %4558, %v5089_v17   ;;  %v5445_v30 = vpop.permute.xlu1 %718  ;;  %v5447_v31 = vpop.permute.xlu0 %715 }
  0xc1   : > { %vm803_vm1 = vcmp.eq.s32.totalorder %v5445_v30, 1  ;;  %vm802_vm8 = vcmp.eq.s32.totalorder %v5447_v31, 1 }
  0xc3   : > { %1227 = vperm.xlu1 %4557, %v5063_v10  }
  0xc4   : > { %1236 = vperm.xlu0 %4558, %v5106_v22   ;;  %v5451_v33 = vpop.permute.xlu1 %724  ;;  %v5453_v34 = vpop.permute.xlu0 %721 }
  0xc5   : > { %vm805_vm9 = vcmp.eq.s32.totalorder %v5451_v33, 1  ;;  %vm804_vm10 = vcmp.eq.s32.totalorder %v5453_v34, 1 }
  0xc7   : > { %1233 = vperm.xlu1 %4557, %v5086_v16  }
  0xc8   : > { %1242 = vperm.xlu0 %4558, %v5130_v29   ;;  %v5457_v35 = vpop.permute.xlu1 %730  ;;  %v5459_v36 = vpop.permute.xlu0 %727  ;;  %v8013_v29 = vmov 7  }
  0xc9   : > { %8255 = vst [vmem:[#allocation45_spill] sm:$0xff] %v5459_v36  ;;  %vm807_vm12 = vcmp.eq.s32.totalorder %v5457_v35, 1 }
  0xcb   : > { %1239 = vperm.xlu1 %4557, %v5103_v21  }
  0xcc   : > { %1248 = vperm.xlu0 %4558, %v5171_v47   ;;  %v5463_v37 = vpop.permute.xlu1 %736  ;;  %v5465_v43 = vpop.permute.xlu0 %733  ;;  %v603_v47 = vlaneseq }
  0xcd   : > { %8256 = vst [vmem:[#allocation46_spill] sm:$0xff] %v5463_v37  ;;  %8257 = vst [vmem:[#allocation47_spill] sm:$0xff] %v5465_v43 }
  0xce   : > { %v5596_v27 = vshrl.u32 %v603_v47, 7 }
  0xcf   : > { %1245 = vperm.xlu1 %4557, %v5127_v28  }
  0xd0   : > { %1254 = vperm.xlu0 %4558, %v5209_v60   ;;  %v5469_v45 = vpop.permute.xlu1 %742  ;;  %v5471_v46 = vpop.permute.xlu0 %739  ;;  %vm605_vm0 = vcmp.lt.s32.totalorder %v5596_v27, 1  ;;  %vm1184_vm3 = vcmp.lt.s32.totalorder %v5596_v27, 7 }
  0xd1   : > { %8258 = vst [vmem:[#allocation48_spill] sm:$0xff] %v5469_v45  ;;  %8259 = vst [vmem:[#allocation49_spill] sm:$0xff] %v5471_v46 }
  0xd3   : > { %1251 = vperm.xlu1 %4557, %v5160_v42  }
  0xd4   : > { %1260 = vperm.xlu0 %4558, %v5224_v3   ;;  %v5475_v48 = vpop.permute.xlu1 %748  ;;  %v5477_v52 = vpop.permute.xlu0 %745 }
  0xd5   : > { %8260 = vst [vmem:[#allocation50_spill] sm:$0xff] %v5475_v48  ;;  %8261 = vst [vmem:[#allocation51_spill] sm:$0xff] %v5477_v52 }
  0xd7   : > { %1257 = vperm.xlu1 %4557, %v5205_v59  }
  0xd8   : > { %1266 = vperm.xlu0 %4558, %v5245_v14   ;;  %v5481_v53 = vpop.permute.xlu1 %754  ;;  %v5483_v54 = vpop.permute.xlu0 %751 }
  0xd9   : > { %8262 = vst [vmem:[#allocation52_spill] sm:$0xff] %v5481_v53  ;;  %8263 = vst [vmem:[#allocation53_spill] sm:$0xff] %v5483_v54 }
  0xdb   : > { %1263 = vperm.xlu1 %4557, %v5220_v2  }
  0xdc   : > { %1272 = vperm.xlu0 %4558, %v5272_v32   ;;  %v5487_v55 = vpop.permute.xlu1 %760  ;;  %v5489_v57 = vpop.permute.xlu0 %757 }
  0xdd   : > { %8264 = vst [vmem:[#allocation54_spill] sm:$0xff] %v5487_v55  ;;  %8265 = vst [vmem:[#allocation55_spill] sm:$0xff] %v5489_v57 }
  0xdf   : > { %1269 = vperm.xlu1 %4557, %v5241_v13  }
  0xe0   : > { %1278 = vperm.xlu0 %4558, %v5289_v40   ;;  %v5493_v61 = vpop.permute.xlu1 %766  ;;  %v5495_v63 = vpop.permute.xlu0 %763 }
  0xe1   : > { %8266 = vst [vmem:[#allocation56_spill] sm:$0xff] %v5493_v61  ;;  %8267 = vst [vmem:[#allocation57_spill] sm:$0xff] %v5495_v63 }
  0xe3   : > { %1275 = vperm.xlu1 %4557, %v5263_v25   ;;  %v8005_v25 = vmov 6  }
  0xe4   : > { %1284 = vperm.xlu0 %4558, %v5303_v49   ;;  %v5499_v1 = vpop.permute.xlu1 %772  ;;  %v5501_v4 = vpop.permute.xlu0 %769 }
  0xe5   : > { %8268 = vst [vmem:[#allocation58_spill] sm:$0xff] %v5499_v1  ;;  %8269 = vst [vmem:[#allocation59_spill] sm:$0xff] %v5501_v4 }
  0xe7   : > { %1281 = vperm.xlu1 %4557, %v5285_v38   ;;  %v8279_v38 = vmov 5  }
  0xe8   : > { %1290 = vperm.xlu0 %4558, %v5322_v58   ;;  %v5505_v7 = vpop.permute.xlu1 %778  ;;  %v5507_v39 = vpop.permute.xlu0 %775  ;;  %v7967_v58 = vmov 5  }
  0xe9   : > { %8270 = vst [vmem:[#allocation60_spill] sm:$0xff] %v5505_v7  ;;  %8271 = vst [vmem:[#allocation61_spill] sm:$0xff] %v5507_v39  ;;  %v8282_v39 = vmov 7  }
  0xeb   : > { %1287 = vperm.xlu1 %4557, %v5293_v41  }
  0xec   : > { %1296 = vperm.xlu0 %4558, %v5365_v56   ;;  %v5511_v44 = vpop.permute.xlu1 %784  ;;  %v5513_v9 = vpop.permute.xlu0 %781 }
  0xed   : > { %8272 = vst [vmem:[#allocation62_spill] sm:$0xff] %v5511_v44  ;;  %8273 = vst [vmem:[#allocation63_spill] sm:$0xff] %v5513_v9 }
  0xef   : > { %1293 = vperm.xlu1 %4557, %v5307_v51   ;;  %v7979_v51 = vmov 3  }
  0xf0   : > { %1302 = vperm.xlu0 %4558, %v5380_v15   ;;  %v5517_v12 = vpop.permute.xlu1 %790  ;;  %v5519_v20 = vpop.permute.xlu0 %787 }
  0xf1   : > { %8274 = vst [vmem:[#allocation64_spill] sm:$0xff] %v5517_v12  ;;  %8275 = vst [vmem:[#allocation65_spill] sm:$0xff] %v5519_v20 }
  0xf3   : > { %1299 = vperm.xlu1 %4557, %v5362_v50  }
  0xf4   : > { %1308 = vperm.xlu0 %4558, %v5389_v18   ;;  %v5523_v24 = vpop.permute.xlu1 %796  ;;  %v5525_v0 = vpop.permute.xlu0 %793 }
  0xf5   : > { %8276 = vst [vmem:[#allocation66_spill] sm:$0xff] %v5523_v24  ;;  %8277 = vst [vmem:[#allocation67_spill] sm:$0xff] %v5525_v0 }
  0xf7   : > { %1305 = vperm.xlu1 %4557, %v5377_v62  }
  0xf8   : > { %4560 = vset.pattern.permute.xlu0 %v7967_v58 }
  0xf9   : > { %1764 = vperm.xlu0 %4560, %v5049_v6   ;;  %v5530_v49 = vpop.permute.xlu1 %899 }
  0xfa   : > { %v5532_v15 = vpop.permute.xlu0 %896 }
  0xfb   : > { %8278 = vst [vmem:[#allocation68_spill] sm:$0xff] %v5532_v15  ;;  %1311 = vperm.xlu1 %4557, %v5386_v8  }
  0xfd   : > { %1770 = vperm.xlu0 %4560, %v5046_v5   ;;  %v5536_v18 = vpop.permute.xlu1 %902 }
  0xfe   : > { %v5538_v56 = vpop.permute.xlu0 %905  ;;  %vm993_vm2 = vcmp.eq.s32.totalorder %v5536_v18, 1 }
  0xff   : > { %4559 = vset.pattern.permute.xlu1 %v7979_v51  ;;  %vm994_vm5 = vcmp.eq.s32.totalorder %v5538_v56, 1 }
 0x100   : > { %1478 = vperm.xlu1 %4559, %v5066_v11  }
 0x101   : > { %1776 = vperm.xlu0 %4560, %v5089_v17   ;;  %v5543_v58 = vpop.permute.xlu1 %908 }
 0x102   : > { %v5545_v41 = vpop.permute.xlu0 %911  ;;  %vm995_vm6 = vcmp.eq.s32.totalorder %v5543_v58, 1 }
 0x103   : > { %vm996_vm7 = vcmp.eq.s32.totalorder %v5545_v41, 1 }
 0x104   : > { %1481 = vperm.xlu1 %4559, %v5046_v5  }
 0x105   : > { %v5548_v8 = vpop.permute.xlu1 %914 }
 0x106   : > { %v5550_v40 = vpop.permute.xlu0 %917  ;;  %vm997_vm13 = vcmp.eq.s32.totalorder %v5548_v8, 1 }
 0x107   : > { %vm998_vm14 = vcmp.eq.s32.totalorder %v5550_v40, 1 }
 0x108   : > { %1487 = vperm.xlu1 %4559, %v5089_v17  }
 0x109   : > { %v5553_v62 = vpop.permute.xlu1 %920 }
 0x10a   : > { %v5555_v50 = vpop.permute.xlu0 %923  ;;  %vm999_vm15 = vcmp.eq.s32.totalorder %v5553_v62, 1 }
 0x10c   : > { %1493 = vperm.xlu1 %4559, %v5106_v22  }
 0x10d   : > { %v5558_v51 = vpop.permute.xlu1 %926 }
 0x10e   : > { %v5560_v32 = vpop.permute.xlu0 %929 }
 0x110   : > { %4561 = vset.pattern.permute.xlu1 %v8279_v38 }
 0x111   : > { %v5563_v13 = vpop.permute.xlu1 %932  ;;  %1767 = vperm.xlu1 %4561, %v5066_v11  }
 0x112   : > { %v5566_v14 = vpop.permute.xlu0 %935 }
 0x115   : > { %v5568_v2 = vpop.permute.xlu1 %938  ;;  %4562 = vset.pattern.permute.xlu1 %v8005_v25 }
 0x116   : > { %v5571_v3 = vpop.permute.xlu0 %941  ;;  %2020 = vperm.xlu1 %4562, %v5049_v6  }
 0x119   : > { %v5574_v42 = vpop.permute.xlu1 %944 }
 0x11a   : > { %v5576_v59 = vpop.permute.xlu0 %947  ;;  %4563 = vset.pattern.permute.xlu1 %v8013_v29 }
 0x11b   : > { %2276 = vperm.xlu1 %4563, %v5049_v6   ;;  %v8280_v6 = vmov 6  }
 0x11d   : > { %v5580_v60 = vpop.permute.xlu1 %950 }
 0x11e   : > { %v5582_v28 = vpop.permute.xlu0 %953 }
 0x11f   : > { %2279 = vperm.xlu1 %4563, %v5066_v11  }
 0x121   : > { %v5585_v25 = vpop.permute.xlu1 %956 }
 0x122   : > { %v5587_v21 = vpop.permute.xlu0 %959 }
 0x123   : > { %4564 = vset.pattern.permute.xlu1 %v8279_v38 }
 0x124   : > { %1773 = vperm.xlu1 %4564, %v5063_v10  }
 0x125   : > { %v5591_v22 = vpop.permute.xlu1 %962 }
 0x126   : > { %v5593_v29 = vpop.permute.xlu0 %965 }
 0x128   : > { %4565 = vset.pattern.permute.xlu1 %v8280_v6 }
 0x129   : > { %v5598_v12 = vpop.permute.xlu1 %968  ;;  %2026 = vperm.xlu1 %4565, %v5046_v5  }
 0x12a   : > { %v5601_v11 = vpop.permute.xlu0 %971 }
 0x12d   : > { %v5606_v23 = vpop.f32.mrb[0].mxu1  ;;  %v5608_v20 = vpop.permute.xlu1 %974  ;;  %4566 = vset.pattern.permute.xlu1 %v8282_v39 }
 0x12e   : > { %8281 = vst [vmem:[#allocation69_spill] sm:$0xff] %v5606_v23  ;;  %v573_v47 = vrot.slane %v5606_v23, 7  ;;  %v1154_v7 = vrot.slane %v5606_v23, 1  ;;  %v5616_v0 = vpop.permute.xlu0 %977  ;;  %v5618_v24 = vpop.f32.mrb[1].mxu1  ;;  %2282 = vperm.xlu1 %4566, %v5046_v5   ;;  %v5663_v56 = vsel %vm995_vm6, %v5606_v23, 0.0  ;;  %vm1003_vm6 = vcmp.eq.s32.totalorder %v5563_v13, 1 }
 0x12f   : > { %8283 = vst [vmem:[#allocation70_spill] sm:$0xff] %v5618_v24  ;;  %v5624_v44 = vpop.f32.mrb[2].mxu1  ;;  %v1025_v63 = vsel %vm993_vm2, %v5618_v24, 0.0  ;;  %v8292_v58 = vrot.slane %v5618_v24, 7  ;;  %vm1000_vm2 = vcmp.eq.s32.totalorder %v5555_v50, 1 }
 0x130   : > { %8284 = vst [vmem:[#allocation71_spill] sm:$0xff] %v5624_v44  ;;  %v1155_v4 = vrot.slane %v5624_v44, 1  ;;  %v1732_v1 = vpack.c.bf16 %v5624_v44, %v5606_v23  ;;  %v5633_v5 = vpop.f32.mrb[3].mxu1  ;;  %v5636_v41 = vsel %vm996_vm7, %v5624_v44, 0.0  ;;  %v8286_v55 = vrot.slane %v5624_v44, 7 }
 0x131   : > { %8285 = vst [vmem:[#allocation72_spill] sm:$0xff] %v5633_v5  ;;  %v572_v61 = vrot.slane %v5633_v5, 7  ;;  %v1153_v9 = vrot.slane %v5633_v5, 1  ;;  %v1731_v18 = vpack.c.bf16 %v5633_v5, %v5618_v24  ;;  %v5642_v54 = vpop.permute.xlu1 %980  ;;  %v1026_v53 = vsel %vm994_vm5, %v5633_v5, 0.0 }
 0x132   : > { %v5651_v46 = vsel %vm605_vm0, %v573_v47, %v8286_v55  ;;  %v5653_v45 = vpop.permute.xlu0 %983  ;;  %2285 = vperm.xlu1 %4566, %v5063_v10   ;;  %v1056_v57 = vpack.c.bf16 %v1026_v53, %v1025_v63  ;;  %v5658_v52 = vsel %vm1184_vm3, %v1154_v7, %v1155_v4  ;;  %1748 = vst.msk [vmem:[#allocation2 + $0x20] sm:$0xff] %vm878_vm4, %v1732_v1  ;;  %v8289_v55 = vrot.slane %v5618_v24, 1 }
 0x133   : > { %8287 = vst [vmem:[#allocation73_spill] sm:$0xff] %v5651_v46  ;;  %8288 = vst [vmem:[#allocation74_spill] sm:$0xff] %v5658_v52  ;;  %v5675_v53 = vsel %vm1184_vm3, %v1153_v9, %v1154_v7  ;;  %v5687_v1 = vsel %vm605_vm0, %v8292_v58, %v572_v61  ;;  %v5691_v7 = vsel %vm605_vm0, %v572_v61, %v573_v47  ;;  %v835_v58 = vsel %vm803_vm1, %v5651_v46, 0.0 }
 0x134   : > { %v5671_v5 = vsel %vm1184_vm3, %v8289_v55, %v1153_v9  ;;  %8291 = vst [vmem:[#allocation76_spill] sm:$0xff] %v5675_v53  ;;  %1747 = vst.msk [vmem:[#allocation2 + $0x8] sm:$0xff] %vm878_vm4, %v1731_v18  ;;  %1089 = vrot.lane.b32.xlu0 %v1056_v57, %s4905_s29  ;;  %vm1001_vm5 = vcmp.eq.s32.totalorder %v5558_v51, 1  ;;  %vm1002_vm1 = vcmp.eq.s32.totalorder %v5560_v32, 1  ;;  %vm1004_vm7 = vcmp.eq.s32.totalorder %v5566_v14, 1 }
 0x135   : > { %8290 = vst [vmem:[#allocation75_spill] sm:$0xff] %v5671_v5  ;;  %8293 = vst [vmem:[#allocation77_spill] sm:$0xff] %v5687_v1  ;;  %v5698_v57 = vpop.f32.mrb[4].mxu1  ;;  %v5700_v9 = vpop.permute.xlu1 %986 }
 0x136   : > { %8294 = vst [vmem:[#allocation78_spill] sm:$0xff] %v5691_v7  ;;  %8295 = vst [vmem:[#allocation79_spill] sm:$0xff] %v5698_v57  ;;  %v577_v18 = vrot.slane %v5698_v57, 7  ;;  %v1158_v61 = vrot.slane %v5698_v57, 1  ;;  %v5705_v47 = vpop.permute.xlu0 %989  ;;  %v5707_v55 = vpop.f32.mrb[5].mxu1  ;;  %4567 = vset.pattern.permute.xlu1 %v8279_v38  ;;  %v834_v38 = vsel %vm802_vm8, %v5691_v7, 0.0 }
 0x137   : > { %8296 = vst [vmem:[#allocation80_spill] sm:$0xff] %v5707_v55  ;;  %v575_v63 = vrot.slane %v5707_v55, 7  ;;  %v1156_v23 = vrot.slane %v5707_v55, 1  ;;  %v5716_v10 = vpop.f32.mrb[6].mxu1  ;;  %1779 = vperm.xlu1 %4567, %v5086_v16   ;;  %v1029_v48 = vsel %vm997_vm13, %v5707_v55, 0.0  ;;  %vm1006_vm13 = vcmp.eq.s32.totalorder %v5571_v3, 1 }
 0x138   : > { %8297 = vst [vmem:[#allocation81_spill] sm:$0xff] %v5716_v10  ;;  %v578_v30 = vrot.slane %v5716_v10, 7  ;;  %v1734_v43 = vpack.c.bf16 %v5716_v10, %v5698_v57  ;;  %v5729_v37 = vpop.f32.mrb[7].mxu1  ;;  %v5734_v16 = vsel %vm1000_vm2, %v5716_v10, 0.0  ;;  %v8301_v15 = vrot.slane %v5716_v10, 1 }
 0x139   : > { %8298 = vst [vmem:[#allocation82_spill] sm:$0xff] %v5729_v37  ;;  %v576_v8 = vrot.slane %v5729_v37, 7  ;;  %v1157_v36 = vrot.slane %v5729_v37, 1  ;;  %v1733_v31 = vpack.c.bf16 %v5729_v37, %v5707_v55  ;;  %v1030_v46 = vsel %vm998_vm14, %v5729_v37, 0.0 }
 0x13a   : > { %v5745_v7 = vsel %vm605_vm0, %v577_v18, %v578_v30  ;;  %v5747_v24 = vpop.permute.xlu1 %1218  ;;  %v1058_v50 = vpack.c.bf16 %v1030_v46, %v1029_v48  ;;  %v5751_v19 = vsel %vm1184_vm3, %v1155_v4, %v1156_v23  ;;  %v5757_v55 = vsel %vm1184_vm3, %v1158_v61, %v8301_v15  ;;  %1750 = vst.msk [vmem:[#allocation2 + $0x50] sm:$0xff] %vm878_vm4, %v1734_v43 }
 0x13b   : > { %8299 = vst [vmem:[#allocation83_spill] sm:$0xff] %v5745_v7  ;;  %8300 = vst [vmem:[#allocation84_spill] sm:$0xff] %v5751_v19  ;;  %v5763_v40 = vsel %vm605_vm0, %v575_v63, %v576_v8  ;;  %v5765_v37 = vpop.permute.xlu0 %1221  ;;  %4568 = vset.pattern.permute.xlu1 %v8280_v6  ;;  %v5770_v46 = vsel %vm1184_vm3, %v1156_v23, %v1157_v36  ;;  %v5774_v15 = vsel %vm1184_vm3, %v1157_v36, %v1158_v61 }
 0x13c   : > { %8302 = vst [vmem:[#allocation85_spill] sm:$0xff] %v5757_v55  ;;  %8303 = vst [vmem:[#allocation86_spill] sm:$0xff] %v5763_v40  ;;  %v5779_v43 = vsel %vm999_vm15, %v5698_v57, 0.0  ;;  %1093 = vrot.lane.b32.xlu0 %v1058_v50, %s4905_s29  ;;  %2032 = vperm.xlu1 %4568, %v5089_v17   ;;  %v864_v48 = vpack.c.bf16 %v835_v58, %v834_v38  ;;  %v8306_v36 = vrot.slane %v5624_v44, 7  ;;  %v5817_v33 = vsel %vm807_vm12, %v5745_v7, 0.0 }
 0x13d   : > { %8304 = vst [vmem:[#allocation87_spill] sm:$0xff] %v5770_v46  ;;  %8305 = vst [vmem:[#allocation88_spill] sm:$0xff] %v5774_v15  ;;  %v5794_v62 = vpop.f32.mrb[8].mxu1  ;;  %v5804_v38 = vsel %vm605_vm0, %v576_v8, %v577_v18  ;;  %v8313_v57 = vrot.slane %v5716_v10, 1  ;;  %vm1005_vm12 = vcmp.eq.s32.totalorder %v5568_v2, 1  ;;  %vm1008_vm15 = vcmp.eq.s32.totalorder %v5576_v59, 1 }
 0x13e   : > { %1749 = vst.msk [vmem:[#allocation2 + $0x38] sm:$0xff] %vm878_vm4, %v1733_v31  ;;  %v5791_v4 = vsel %vm605_vm0, %v8306_v36, %v575_v63  ;;  %8308 = vst [vmem:[#allocation90_spill] sm:$0xff] %v5794_v62  ;;  %v837_v31 = vsel %vm805_vm9, %v5763_v40, 0.0  ;;  %v581_v58 = vrot.slane %v5794_v62, 7  ;;  %v5807_v63 = vpop.f32.mrb[9].mxu1  ;;  %v1225_v50 = vpop.permute.xlu1 %1224  ;;  %v5812_v36 = vsel %vm801_vm11, %v5687_v1, 0.0 }
 0x13f   : > { %8307 = vst [vmem:[#allocation89_spill] sm:$0xff] %v5791_v4  ;;  %v836_v61 = vsel %vm804_vm10, %v5791_v4, 0.0  ;;  %8309 = vst [vmem:[#allocation91_spill] sm:$0xff] %v5807_v63  ;;  %v1162_v18 = vrot.slane %v5794_v62, 1  ;;  %v579_v8 = vrot.slane %v5807_v63, 7  ;;  %v1160_v23 = vrot.slane %v5807_v63, 1  ;;  %v1231_v40 = vpop.permute.xlu0 %1230 }
 0x140   : > { %v865_v34 = vpack.c.bf16 %v837_v31, %v836_v61  ;;  %881 = vst.msk [vmem:[#allocation2 + $0x30] sm:$0xff] %vm878_vm4, %v864_v48  ;;  %v5823_v4 = vpop.f32.mrb[10].mxu1  ;;  %v5828_v26 = vsel %vm1003_vm6, %v5794_v62, 0.0  ;;  %vm1315_vm8 = vcmp.eq.s32.totalorder %v1225_v50, 1  ;;  %4569 = vset.pattern.permute.xlu1 %v8282_v39  ;;  %v5838_v31 = vsel %vm1001_vm5, %v5807_v63, 0.0 }
 0x141   : > { %8310 = vst [vmem:[#allocation92_spill] sm:$0xff] %v5823_v4  ;;  %v582_v35 = vrot.slane %v5823_v4, 7  ;;  %v5832_v48 = vpop.f32.mrb[11].mxu1  ;;  %v5843_v13 = vsel %vm605_vm0, %v578_v30, %v579_v8  ;;  %vm1317_vm9 = vcmp.eq.s32.totalorder %v1231_v40, 1  ;;  %v1736_v7 = vpack.c.bf16 %v5823_v4, %v5794_v62  ;;  %2288 = vperm.xlu1 %4569, %v5089_v17  }
 0x142   : > { %8311 = vst [vmem:[#allocation93_spill] sm:$0xff] %v5832_v48  ;;  %882 = vst.msk [vmem:[#allocation2 + $0x48] sm:$0xff] %vm878_vm4, %v865_v34  ;;  %v580_v61 = vrot.slane %v5832_v48, 7  ;;  %vm1007_vm10 = vcmp.eq.s32.totalorder %v5574_v42, 1  ;;  %v1161_v34 = vrot.slane %v5832_v48, 1  ;;  %v1735_v30 = vpack.c.bf16 %v5832_v48, %v5807_v63  ;;  %v1228_v1 = vpop.permute.xlu1 %1227 }
 0x143   : > { %v5852_v51 = vsel %vm605_vm0, %v581_v58, %v582_v35  ;;  %v5861_v62 = vsel %vm1184_vm3, %v8313_v57, %v1160_v23  ;;  %vm1316_vm11 = vcmp.eq.s32.totalorder %v1228_v1, 1  ;;  %v1237_v6 = vpop.permute.xlu0 %1236  ;;  %v8316_v39 = vrot.slane %v5823_v4, 1  ;;  %1752 = vst.msk [vmem:[#allocation2 + $0x80] sm:$0xff] %vm878_vm4, %v1736_v7 }
 0x144   : > { %8312 = vst [vmem:[#allocation94_spill] sm:$0xff] %v5852_v51  ;;  %8314 = vst [vmem:[#allocation95_spill] sm:$0xff] %v5861_v62  ;;  %v5865_v17 = vsel %vm605_vm0, %v580_v61, %v581_v58  ;;  %v5869_v44 = vsel %vm605_vm0, %v579_v8, %v580_v61  ;;  %v1347_v57 = vsel %vm1315_vm8, %v5671_v5, 0.0  ;;  %v1348_v58 = vsel %vm1316_vm11, %v5675_v53, 0.0 }
 0x145   : > { %8315 = vst [vmem:[#allocation96_spill] sm:$0xff] %v5865_v17  ;;  %v5875_v63 = vsel %vm1184_vm3, %v1162_v18, %v8316_v39  ;;  %v5885_v1 = vsel %vm1184_vm3, %v1160_v23, %v1161_v34  ;;  %v5890_v39 = vsel %vm1002_vm1, %v5832_v48, 0.0  ;;  %1751 = vst.msk [vmem:[#allocation2 + $0x68] sm:$0xff] %vm878_vm4, %v1735_v30  ;;  %v1349_v7 = vsel %vm1317_vm9, %v5658_v52, 0.0  ;;  %v5895_v8 = vpop.f32.mrb[12].mxu1 }
 0x146   : > { %8317 = vst [vmem:[#allocation97_spill] sm:$0xff] %v5875_v63  ;;  %8318 = vst [vmem:[#allocation98_spill] sm:$0xff] %v5885_v1  ;;  %vm1319_vm14 = vcmp.eq.s32.totalorder %v1237_v6, 1  ;;  %v8320_v50 = vpack.c.bf16 %v5636_v41, %v5663_v56  ;;  %v1060_v23 = vpack.c.bf16 %v5890_v39, %v5838_v31  ;;  %v5905_v32 = vsel %vm1184_vm3, %v1161_v34, %v1162_v18  ;;  %v5909_v52 = vpop.f32.mrb[13].mxu1  ;;  %v1234_v5 = vpop.permute.xlu1 %1233 }
 0x147   : > { %8319 = vst [vmem:[#allocation99_spill] sm:$0xff] %v5895_v8  ;;  %8321 = vst [vmem:[#allocation100_spill] sm:$0xff] %v5905_v32  ;;  %v1378_v61 = vpack.c.bf16 %v1348_v58, %v1347_v57  ;;  %v585_v30 = vrot.slane %v5895_v8, 7  ;;  %v1166_v40 = vrot.slane %v5895_v8, 1  ;;  %v5914_v41 = vsel %vm1004_vm7, %v5823_v4, 0.0  ;;  %v1243_v31 = vpop.permute.xlu0 %1242  ;;  %v5919_v34 = vpop.f32.mrb[14].mxu1 }
 0x148   : > { %1091 = vrot.lane.b32.xlu1 %v8320_v50, %s4905_s29  ;;  %8322 = vst [vmem:[#allocation101_spill] sm:$0xff] %v5909_v52  ;;  %v583_v56 = vrot.slane %v5909_v52, 7  ;;  %v1164_v18 = vrot.slane %v5909_v52, 1  ;;  %vm1318_vm2 = vcmp.eq.s32.totalorder %v1234_v5, 1  ;;  %8323 = vst [vmem:[#allocation102_spill] sm:$0xff] %v5919_v34  ;;  %v1351_v58 = vsel %vm1319_vm14, %v5770_v46, 0.0 }
 0x149   : > { %v1350_v14 = vsel %vm1318_vm2, %v5751_v19, 0.0  ;;  %v586_v39 = vrot.slane %v5919_v34, 7  ;;  %v5928_v53 = vpop.f32.mrb[15].mxu1  ;;  %vm1321_vm5 = vcmp.eq.s32.totalorder %v1243_v31, 1  ;;  %v1738_v57 = vpack.c.bf16 %v5919_v34, %v5895_v8 }
 0x14a   : > { %8324 = vst [vmem:[#allocation103_spill] sm:$0xff] %v5928_v53  ;;  %v5932_v5 = vsel %vm605_vm0, %v582_v35, %v583_v56  ;;  %v1379_v48 = vpack.c.bf16 %v1350_v14, %v1349_v7  ;;  %v584_v50 = vrot.slane %v5928_v53, 7  ;;  %v1165_v46 = vrot.slane %v5928_v53, 1  ;;  %v1240_v19 = vpop.permute.xlu1 %1239 }
 0x14b   : > { %v5939_v6 = vsel %vm605_vm0, %v585_v30, %v586_v39  ;;  %v1737_v35 = vpack.c.bf16 %v5928_v53, %v5909_v52  ;;  %vm1320_vm1 = vcmp.eq.s32.totalorder %v1240_v19, 1  ;;  %v1249_v7 = vpop.permute.xlu0 %1248  ;;  %v8326_v14 = vrot.slane %v5823_v4, 1  ;;  %1754 = vst.msk [vmem:[#allocation2 + $0xb0] sm:$0xff] %vm878_vm4, %v1738_v57 }
 0x14c   : > { %1411 = vrot.lane.b32.xlu1 %v1378_v61, %s4906_s10  ;;  %8325 = vst [vmem:[#allocation104_spill] sm:$0xff] %v5939_v6  ;;  %1413 = vrot.lane.b32.xlu0 %v1379_v48, %s4906_s10  ;;  %v8328_v10 = vrot.slane %v5919_v34, 1  ;;  %v5961_v51 = vsel %vm1007_vm10, %v5895_v8, 0.0  ;;  %v1353_v19 = vsel %vm1321_vm5, %v5757_v55, 0.0  ;;  %v5968_v48 = vsel %vm605_vm0, %v584_v50, %v585_v30 }
 0x14d   : > { %v5950_v61 = vsel %vm1184_vm3, %v8326_v14, %v1164_v18  ;;  %v5972_v14 = vsel %vm605_vm0, %v583_v56, %v584_v50  ;;  %1753 = vst.msk [vmem:[#allocation2 + $0x98] sm:$0xff] %vm878_vm4, %v1737_v35  ;;  %vm1009_vm6 = vcmp.eq.s32.totalorder %v5580_v60, 1  ;;  %vm1010_vm7 = vcmp.eq.s32.totalorder %v5582_v28, 1  ;;  %v5978_v42 = vpop.f32.mrb[16].mxu1 }
 0x14e   : > { %8327 = vst [vmem:[#allocation105_spill] sm:$0xff] %v5950_v61  ;;  %v5956_v6 = vsel %vm1184_vm3, %v1166_v40, %v8328_v10  ;;  %v1352_v10 = vsel %vm1320_vm1, %v5774_v15, 0.0  ;;  %vm1323_vm8 = vcmp.eq.s32.totalorder %v1249_v7, 1  ;;  %8330 = vst [vmem:[#allocation107_spill] sm:$0xff] %v5978_v42  ;;  %v8331_v30 = vpack.c.bf16 %v5734_v16, %v5779_v43  ;;  %v5997_v55 = vpop.f32.mrb[17].mxu1  ;;  %v1246_v16 = vpop.permute.xlu1 %1245 }
 0x14f   : > { %8329 = vst [vmem:[#allocation106_spill] sm:$0xff] %v5956_v6  ;;  %v5986_v56 = vsel %vm1184_vm3, %v1164_v18, %v1165_v46  ;;  %v5991_v31 = vsel %vm1005_vm12, %v5909_v52, 0.0  ;;  %v1038_v57 = vsel %vm1006_vm13, %v5928_v53, 0.0  ;;  %v1380_v50 = vpack.c.bf16 %v1352_v10, %v1351_v58  ;;  %8333 = vst [vmem:[#allocation109_spill] sm:$0xff] %v5997_v55  ;;  %v1255_v3 = vpop.permute.xlu0 %1254  ;;  %v6007_v58 = vpop.f32.mrb[18].mxu1 }
 0x150   : > { %1095 = vrot.lane.b32.xlu1 %v8331_v30, %s4905_s29  ;;  %8332 = vst [vmem:[#allocation108_spill] sm:$0xff] %v5986_v56  ;;  %v589_v35 = vrot.slane %v5978_v42, 7  ;;  %v1062_v43 = vpack.c.bf16 %v1038_v57, %v5991_v31  ;;  %v6002_v18 = vsel %vm1184_vm3, %v1165_v46, %v1166_v40  ;;  %v1170_v2 = vrot.slane %v5978_v42, 1  ;;  %8335 = vst [vmem:[#allocation111_spill] sm:$0xff] %v6007_v58  ;;  %v6013_v46 = vpop.f32.mrb[19].mxu1 }
 0x151   : > { %8334 = vst [vmem:[#allocation110_spill] sm:$0xff] %v6002_v18  ;;  %v587_v30 = vrot.slane %v5997_v55, 7  ;;  %v1168_v15 = vrot.slane %v5997_v55, 1  ;;  %vm1322_vm9 = vcmp.eq.s32.totalorder %v1246_v16, 1  ;;  %1097 = vrot.lane.b32.xlu0 %v1060_v23, %s4905_s29  ;;  %v590_v31 = vrot.slane %v6007_v58, 7  ;;  %8336 = vst [vmem:[#allocation112_spill] sm:$0xff] %v6013_v46 }
 0x152   : > { %v1354_v10 = vsel %vm1322_vm9, %v5861_v62, 0.0  ;;  %v6018_v40 = vsel %vm1008_vm15, %v5919_v34, 0.0  ;;  %vm1325_vm10 = vcmp.eq.s32.totalorder %v1255_v3, 1  ;;  %v1740_v23 = vpack.c.bf16 %v6007_v58, %v5978_v42 }
 0x153   : > { %v6022_v16 = vsel %vm605_vm0, %v586_v39, %v587_v30  ;;  %v1381_v8 = vpack.c.bf16 %v1354_v10, %v1353_v19  ;;  %vm1011_vm11 = vcmp.eq.s32.totalorder %v5585_v25, 1  ;;  %vm1012_vm12 = vcmp.eq.s32.totalorder %v5587_v21, 1  ;;  %v1252_v10 = vpop.permute.xlu1 %1251  ;;  %v1261_v62 = vpop.permute.xlu0 %1260 }
 0x154   : > { %8337 = vst [vmem:[#allocation113_spill] sm:$0xff] %v6022_v16  ;;  %1415 = vrot.lane.b32.xlu1 %v1380_v50, %s4906_s10  ;;  %v6031_v59 = vsel %vm605_vm0, %v589_v35, %v590_v31  ;;  %v588_v57 = vrot.slane %v6013_v46, 7  ;;  %v1169_v39 = vrot.slane %v6013_v46, 1  ;;  %v1739_v19 = vpack.c.bf16 %v6013_v46, %v5997_v55  ;;  %1756 = vst.msk [vmem:[#allocation2 + $0xe0] sm:$0xff] %vm878_vm4, %v1740_v23 }
 0x155   : > { %8338 = vst [vmem:[#allocation114_spill] sm:$0xff] %v6031_v59  ;;  %vm1324_vm13 = vcmp.eq.s32.totalorder %v1252_v10, 1  ;;  %1417 = vrot.lane.b32.xlu0 %v1381_v8, %s4906_s10  ;;  %v1063_v50 = vpack.c.bf16 %v6018_v40, %v5961_v51  ;;  %v8339_v53 = vrot.slane %v5919_v34, 1  ;;  %v8341_v4 = vrot.slane %v6007_v58, 1  ;;  %v6067_v23 = vpop.f32.mrb[20].mxu1  ;;  %v8390_v34 = vld [vmem:[#allocation45_spill] sm:$0xff] }
 0x156   : > { %v1355_v8 = vsel %vm1323_vm8, %v5885_v1, 0.0  ;;  %v6057_v51 = vsel %vm605_vm0, %v588_v57, %v589_v35  ;;  %v6061_v40 = vsel %vm605_vm0, %v587_v30, %v588_v57  ;;  %1755 = vst.msk [vmem:[#allocation2 + $0xc8] sm:$0xff] %vm878_vm4, %v1739_v19  ;;  %vm1327_vm14 = vcmp.eq.s32.totalorder %v1261_v62, 1  ;;  %8345 = vst [vmem:[#allocation119_spill] sm:$0xff] %v6067_v23  ;;  %v6079_v57 = vpop.f32.mrb[21].mxu1 }
 0x157   : > { %v6044_v52 = vsel %vm1184_vm3, %v8339_v53, %v1168_v15  ;;  %v6050_v59 = vsel %vm1184_vm3, %v1170_v2, %v8341_v4  ;;  %8343 = vst [vmem:[#allocation117_spill] sm:$0xff] %v6057_v51  ;;  %8344 = vst [vmem:[#allocation118_spill] sm:$0xff] %v6061_v40  ;;  %v1356_v53 = vsel %vm1324_vm13, %v5905_v32, 0.0  ;;  %v1357_v4 = vsel %vm1325_vm10, %v5875_v63, 0.0  ;;  %v1258_v3 = vpop.permute.xlu1 %1257 }
 0x158   : > { %8340 = vst [vmem:[#allocation115_spill] sm:$0xff] %v6044_v52  ;;  %8342 = vst [vmem:[#allocation116_spill] sm:$0xff] %v6050_v59  ;;  %v1382_v10 = vpack.c.bf16 %v1356_v53, %v1355_v8  ;;  %v8346_v7 = vpack.c.bf16 %v5914_v41, %v5828_v26  ;;  %v6075_v35 = vsel %vm1184_vm3, %v1168_v15, %v1169_v39  ;;  %vm1013_vm15 = vcmp.eq.s32.totalorder %v5591_v22, 1  ;;  %v1267_v53 = vpop.permute.xlu0 %1266 }
 0x159   : > { %8347 = vst [vmem:[#allocation120_spill] sm:$0xff] %v6075_v35  ;;  %v593_v30 = vrot.slane %v6067_v23, 7  ;;  %8348 = vst [vmem:[#allocation121_spill] sm:$0xff] %v6079_v57  ;;  %v1041_v19 = vsel %vm1009_vm6, %v5997_v55, 0.0  ;;  %v1042_v26 = vsel %vm1010_vm7, %v6013_v46, 0.0  ;;  %v6089_v41 = vsel %vm1184_vm3, %v1169_v39, %v1170_v2  ;;  %1101 = vrot.lane.b32.xlu0 %v1062_v43, %s4905_s29 }
 0x15a   : > { %1099 = vrot.lane.b32.xlu1 %v8346_v7, %s4905_s29  ;;  %8349 = vst [vmem:[#allocation122_spill] sm:$0xff] %v6089_v41  ;;  %vm1014_vm2 = vcmp.eq.s32.totalorder %v5593_v29, 1  ;;  %v591_v15 = vrot.slane %v6079_v57, 7  ;;  %v1172_v8 = vrot.slane %v6079_v57, 1  ;;  %vm1326_vm5 = vcmp.eq.s32.totalorder %v1258_v3, 1  ;;  %v6094_v7 = vpop.f32.mrb[22].mxu1 }
 0x15b   : > { %8350 = vst [vmem:[#allocation123_spill] sm:$0xff] %v6094_v7  ;;  %v1064_v60 = vpack.c.bf16 %v1042_v26, %v1041_v19  ;;  %v1358_v46 = vsel %vm1326_vm5, %v5950_v61, 0.0  ;;  %vm1329_vm1 = vcmp.eq.s32.totalorder %v1267_v53, 1  ;;  %v594_v2 = vrot.slane %v6094_v7, 7  ;;  %v6100_v39 = vpop.f32.mrb[23].mxu1  ;;  %v1264_v61 = vpop.permute.xlu1 %1263 }
 0x15c   : > { %8351 = vst [vmem:[#allocation124_spill] sm:$0xff] %v6100_v39  ;;  %v6104_v55 = vsel %vm605_vm0, %v590_v31, %v591_v15  ;;  %v1383_v3 = vpack.c.bf16 %v1358_v46, %v1357_v4  ;;  %v1742_v43 = vpack.c.bf16 %v6094_v7, %v6067_v23  ;;  %v592_v26 = vrot.slane %v6100_v39, 7  ;;  %v1273_v46 = vpop.permute.xlu0 %1272 }
 0x15d   : > { %8352 = vst [vmem:[#allocation125_spill] sm:$0xff] %v6104_v55  ;;  %v6112_v19 = vsel %vm605_vm0, %v593_v30, %v594_v2  ;;  %v1173_v28 = vrot.slane %v6100_v39, 1  ;;  %v1741_v31 = vpack.c.bf16 %v6100_v39, %v6079_v57  ;;  %vm1328_vm6 = vcmp.eq.s32.totalorder %v1264_v61, 1 }
 0x15e   : > { %1419 = vrot.lane.b32.xlu1 %v1382_v10, %s4906_s10  ;;  %8353 = vst [vmem:[#allocation126_spill] sm:$0xff] %v6112_v19  ;;  %1421 = vrot.lane.b32.xlu0 %v1383_v3, %s4906_s10  ;;  %v6122_v4 = vsel %vm1011_vm11, %v5978_v42, 0.0  ;;  %v1044_v10 = vsel %vm1012_vm12, %v6007_v58, 0.0  ;;  %v8354_v63 = vrot.slane %v6007_v58, 1  ;;  %1758 = vst.msk [vmem:[#allocation2 + $0x110] sm:$0xff] %vm878_vm4, %v1742_v43  ;;  %vm1015_vm7 = vcmp.eq.s32.totalorder %v5598_v12, 1 }
 0x15f   : > { %vm1016_vm8 = vcmp.eq.s32.totalorder %v5601_v11, 1  ;;  %v6138_v25 = vsel %vm605_vm0, %v592_v26, %v593_v30  ;;  %v6142_v21 = vsel %vm605_vm0, %v591_v15, %v592_v26  ;;  %v1360_v61 = vsel %vm1328_vm6, %v6002_v18, 0.0  ;;  %1757 = vst.msk [vmem:[#allocation2 + $0xf8] sm:$0xff] %vm878_vm4, %v1741_v31  ;;  %v6150_v43 = vpop.f32.mrb[24].mxu1  ;;  %v1270_v53 = vpop.permute.xlu1 %1269 }
 0x160   : > { %v6131_v1 = vsel %vm1184_vm3, %v8354_v63, %v1172_v8  ;;  %8356 = vst [vmem:[#allocation128_spill] sm:$0xff] %v6138_v25  ;;  %8357 = vst [vmem:[#allocation129_spill] sm:$0xff] %v6142_v21  ;;  %vm1331_vm9 = vcmp.eq.s32.totalorder %v1273_v46, 1  ;;  %v1359_v63 = vsel %vm1327_vm14, %v5986_v56, 0.0  ;;  %v1361_v3 = vsel %vm1329_vm1, %v5956_v6, 0.0  ;;  %v6162_v31 = vpop.f32.mrb[25].mxu1 }
 0x161   : > { %8355 = vst [vmem:[#allocation127_spill] sm:$0xff] %v6131_v1  ;;  %8358 = vst [vmem:[#allocation130_spill] sm:$0xff] %v6150_v43  ;;  %v6155_v30 = vsel %vm1184_vm3, %v1172_v8, %v1173_v28  ;;  %v1065_v15 = vpack.c.bf16 %v1044_v10, %v6122_v4  ;;  %v1384_v26 = vpack.c.bf16 %v1360_v61, %v1359_v63  ;;  %v6159_v46 = vsel %vm1331_vm9, %v6075_v35, 0.0  ;;  %v1279_v10 = vpop.permute.xlu0 %1278  ;;  %v6174_v61 = vpop.f32.mrb[26].mxu1  ;;  %v8395_v25 = vld [vmem:[#allocation50_spill] sm:$0xff] }
 0x162   : > { %1103 = vrot.lane.b32.xlu1 %v1063_v50, %s4905_s29  ;;  %8359 = vst [vmem:[#allocation131_spill] sm:$0xff] %v6155_v30  ;;  %v597_v62 = vrot.slane %v6150_v43, 7  ;;  %8360 = vst [vmem:[#allocation132_spill] sm:$0xff] %v6162_v31  ;;  %v8361_v6 = vrot.slane %v6094_v7, 1  ;;  %v8362_v56 = vrot.slane %v6067_v23, 1  ;;  %v595_v4 = vrot.slane %v6162_v31, 7  ;;  %1105 = vrot.lane.b32.xlu0 %v1064_v60, %s4905_s29 }
 0x163   : > { %vm1330_vm10 = vcmp.eq.s32.totalorder %v1270_v53, 1  ;;  %8364 = vst [vmem:[#allocation134_spill] sm:$0xff] %v6174_v61  ;;  %v1045_v63 = vsel %vm1013_vm15, %v6079_v57, 0.0  ;;  %v1176_v35 = vrot.slane %v6162_v31, 1  ;;  %v1046_v53 = vsel %vm1014_vm2, %v6100_v39, 0.0 }
 0x164   : > { %v6170_v50 = vsel %vm1184_vm3, %v8362_v56, %v8361_v6  ;;  %v1362_v18 = vsel %vm1330_vm10, %v6044_v52, 0.0  ;;  %v598_v6 = vrot.slane %v6174_v61, 7  ;;  %v6183_v56 = vpop.f32.mrb[27].mxu1  ;;  %v6190_v8 = vsel %vm605_vm0, %v594_v2, %v595_v4 }
 0x165   : > { %8363 = vst [vmem:[#allocation133_spill] sm:$0xff] %v6170_v50  ;;  %8365 = vst [vmem:[#allocation135_spill] sm:$0xff] %v6183_v56  ;;  %v1385_v60 = vpack.c.bf16 %v1362_v18, %v1361_v3  ;;  %vm1333_vm11 = vcmp.eq.s32.totalorder %v1279_v10, 1  ;;  %v1744_v22 = vpack.c.bf16 %v6174_v61, %v6150_v43  ;;  %vm1018_vm12 = vcmp.eq.s32.totalorder %v5616_v0, 1  ;;  %v1276_v18 = vpop.permute.xlu1 %1275  ;;  %v8394_v0 = vld [vmem:[#allocation47_spill] sm:$0xff] }
 0x166   : > { %8366 = vst [vmem:[#allocation136_spill] sm:$0xff] %v6190_v8  ;;  %1423 = vrot.lane.b32.xlu1 %v1384_v26, %s4906_s10  ;;  %v6198_v52 = vsel %vm605_vm0, %v597_v62, %v598_v6  ;;  %v596_v29 = vrot.slane %v6183_v56, 7  ;;  %v1743_v2 = vpack.c.bf16 %v6183_v56, %v6162_v31  ;;  %vm1017_vm13 = vcmp.eq.s32.totalorder %v5608_v20, 1  ;;  %v1285_v26 = vpop.permute.xlu0 %1284 }
 0x167   : > { %8367 = vst [vmem:[#allocation137_spill] sm:$0xff] %v6198_v52  ;;  %vm1332_vm14 = vcmp.eq.s32.totalorder %v1276_v18, 1  ;;  %1425 = vrot.lane.b32.xlu0 %v1385_v60, %s4906_s10  ;;  %v1066_v58 = vpack.c.bf16 %v1046_v53, %v1045_v63  ;;  %v8368_v39 = vrot.slane %v6067_v23, 1  ;;  %1760 = vst.msk [vmem:[#allocation2 + $0x140] sm:$0xff] %vm878_vm4, %v1744_v22  ;;  %vm1335_vm15 = vcmp.eq.s32.totalorder %v1285_v26, 1  ;;  %v8382_v26 = vld [vmem:[#allocation68_spill] sm:$0xff] }
 0x168   : > { %v6216_v42 = vsel %vm605_vm0, %v596_v29, %v597_v62  ;;  %v6220_v3 = vsel %vm605_vm0, %v595_v4, %v596_v29  ;;  %v1364_v18 = vsel %vm1332_vm14, %v6089_v41, 0.0  ;;  %1759 = vst.msk [vmem:[#allocation2 + $0x128] sm:$0xff] %vm878_vm4, %v1743_v2  ;;  %vm1019_vm2 = vcmp.eq.s32.totalorder %v5642_v54, 1  ;;  %v8384_v41 = vld [vmem:[#allocation42_spill] sm:$0xff] }
 0x169   : > { %v6211_v57 = vsel %vm1184_vm3, %v1173_v28, %v8368_v39  ;;  %8370 = vst [vmem:[#allocation139_spill] sm:$0xff] %v6216_v42  ;;  %8371 = vst [vmem:[#allocation140_spill] sm:$0xff] %v6220_v3  ;;  %vm1020_vm5 = vcmp.eq.s32.totalorder %v5653_v45, 1  ;;  %v1365_v28 = vsel %vm1333_vm11, %v6050_v59, 0.0  ;;  %v6228_v39 = vpop.f32.mrb[28].mxu1  ;;  %v8373_v62 = vrot.slane %v6183_v56, 1  ;;  %v1282_v22 = vpop.permute.xlu1 %1281 }
 0x16a   : > { %8369 = vst [vmem:[#allocation138_spill] sm:$0xff] %v6211_v57  ;;  %8372 = vst [vmem:[#allocation141_spill] sm:$0xff] %v6228_v39  ;;  %1107 = vrot.lane.b32.xlu1 %v1065_v15, %s4905_s29  ;;  %v1047_v63 = vsel %vm1015_vm7, %v6067_v23, 0.0  ;;  %v1048_v53 = vsel %vm1016_vm8, %v6094_v7, 0.0  ;;  %vm1021_vm1 = vcmp.eq.s32.totalorder %v5700_v9, 1  ;;  %vm1022_vm6 = vcmp.eq.s32.totalorder %v5705_v47, 1 }
 0x16b   : > { %v6235_v4 = vsel %vm1184_vm3, %v1176_v35, %v8373_v62  ;;  %v1386_v15 = vpack.c.bf16 %v1364_v18, %v6159_v46  ;;  %v601_v10 = vrot.slane %v6228_v39, 7  ;;  %v6247_v60 = vpop.f32.mrb[29].mxu1  ;;  %v1067_v29 = vpack.c.bf16 %v1048_v53, %v1047_v63  ;;  %v1291_v46 = vpop.permute.xlu0 %1290  ;;  %1109 = vrot.lane.b32.xlu0 %v1066_v58, %s4905_s29  ;;  %v8411_v9 = vld [vmem:[#allocation59_spill] sm:$0xff] }
 0x16c   : > { %8374 = vst [vmem:[#allocation142_spill] sm:$0xff] %v6235_v4  ;;  %8375 = vst [vmem:[#allocation143_spill] sm:$0xff] %v6247_v60  ;;  %v8376_v2 = vrot.slane %v6094_v7, 1  ;;  %v6257_v11 = vsel %vm1335_vm15, %v6155_v30, 0.0  ;;  %v599_v62 = vrot.slane %v6247_v60, 7  ;;  %vm1334_vm7 = vcmp.eq.s32.totalorder %v1282_v22, 1 }
 0x16d   : > { %v6260_v18 = vpop.f32.mrb[30].mxu1  ;;  %v8379_v63 = vrot.slane %v6174_v61, 1  ;;  %v8380_v53 = vrot.slane %v6150_v43, 1  ;;  %vm992_vm8 = vcmp.eq.s32.totalorder %v5530_v49, 1  ;;  %vm991_vm9 = vcmp.eq.s32.totalorder %v8382_v26, 1 }
 0x16e   : > { %v6253_v12 = vsel %vm1184_vm3, %v8376_v2, %v1176_v35  ;;  %8378 = vst [vmem:[#allocation145_spill] sm:$0xff] %v6260_v18  ;;  %v1180_v22 = vrot.slane %v6247_v60, 1  ;;  %v1366_v30 = vsel %vm1334_vm7, %v6131_v1, 0.0  ;;  %v602_v58 = vrot.slane %v6260_v18, 7  ;;  %v6277_v59 = vpop.f32.mrb[31].mxu1  ;;  %1427 = vrot.lane.b32.xlu1 %v1386_v15, %s4906_s10  ;;  %v8387_v1 = vld [vmem:[#allocation70_spill] sm:$0xff] }
 0x16f   : > { %8377 = vst [vmem:[#allocation144_spill] sm:$0xff] %v6253_v12  ;;  %v6269_v35 = vsel %vm1184_vm3, %v8380_v53, %v8379_v63  ;;  %8383 = vst [vmem:[#allocation68_spill] sm:$0xff] %v6277_v59  ;;  %v6282_v63 = vsel %vm605_vm0, %v598_v6, %v599_v62  ;;  %v1387_v53 = vpack.c.bf16 %v1366_v30, %v1365_v28  ;;  %vm1337_vm11 = vcmp.eq.s32.totalorder %v1291_v46, 1  ;;  %v1288_v28 = vpop.permute.xlu1 %1287 }
 0x170   : > { %8381 = vst [vmem:[#allocation146_spill] sm:$0xff] %v6269_v35  ;;  %8385 = vst [vmem:[#allocation42_spill] sm:$0xff] %v6282_v63  ;;  %v1746_v7 = vpack.c.bf16 %v6260_v18, %v6228_v39  ;;  %v6289_v2 = vsel %vm605_vm0, %v601_v10, %v602_v58  ;;  %v8388_v23 = vrot.slane %v8387_v1, 7  ;;  %v600_v6 = vrot.slane %v6277_v59, 7 }
 0x171   : > { %8386 = vst [vmem:[#allocation147_spill] sm:$0xff] %v6289_v2  ;;  %v1181_v30 = vrot.slane %v6277_v59, 1  ;;  %v1183_v52 = vrot.slane %v6260_v18, 1  ;;  %v1745_v15 = vpack.c.bf16 %v6277_v59, %v6247_v60  ;;  %vm1336_vm15 = vcmp.eq.s32.totalorder %v1288_v28, 1  ;;  %v1297_v2 = vpop.permute.xlu0 %1296  ;;  %1429 = vrot.lane.b32.xlu0 %v1387_v53, %s4906_s10  ;;  %v8393_v28 = vld [vmem:[#allocation46_spill] sm:$0xff] }
 0x172   : > { %v6295_v32 = vsel %vm605_vm0, %v602_v58, %v8388_v23  ;;  %v1050_v23 = vsel %vm1018_vm12, %v6183_v56, 0.0  ;;  %1762 = vst.msk [vmem:[#allocation2 + $0x170] sm:$0xff] %vm878_vm4, %v1746_v7  ;;  %v6310_v58 = vsel %vm605_vm0, %v600_v6, %v601_v10  ;;  %v6314_v42 = vsel %vm605_vm0, %v599_v62, %v600_v6  ;;  %v8396_v7 = vld [vmem:[#allocation51_spill] sm:$0xff]  ;;  %1111 = vrot.lane.b32.xlu1 %v1067_v29, %s4905_s29 }
 0x173   : > { %8389 = vst [vmem:[#allocation148_spill] sm:$0xff] %v6295_v32  ;;  %8391 = vst [vmem:[#allocation45_spill] sm:$0xff] %v6310_v58  ;;  %v1368_v19 = vsel %vm1336_vm15, %v6211_v57, 0.0  ;;  %v1049_v53 = vsel %vm1017_vm13, %v6162_v31, 0.0  ;;  %vm809_vm7 = vcmp.eq.s32.totalorder %v8393_v28, 1  ;;  %vm808_vm12 = vcmp.eq.s32.totalorder %v8394_v0, 1 }
 0x174   : > { %8392 = vst [vmem:[#allocation149_spill] sm:$0xff] %v6314_v42  ;;  %vm813_vm14 = vcmp.eq.s32.totalorder %v8395_v25, 1  ;;  %vm812_vm10 = vcmp.eq.s32.totalorder %v8396_v7, 1  ;;  %v1369_v10 = vsel %vm1337_vm11, %v6170_v50, 0.0  ;;  %v1388_v62 = vpack.c.bf16 %v1368_v19, %v6257_v11  ;;  %1761 = vst.msk [vmem:[#allocation2 + $0x158] sm:$0xff] %vm878_vm4, %v1745_v15  ;;  %v8400_v58 = vld [vmem:[#allocation55_spill] sm:$0xff]  ;;  %v1294_v42 = vpop.permute.xlu1 %1293 }
 0x175   : > { %v1068_v6 = vpack.c.bf16 %v1050_v23, %v1049_v53  ;;  %v8397_v57 = vrot.slane %v6150_v43, 1  ;;  %v8398_v20 = vrot.slane %v6183_v56, 1  ;;  %v6340_v46 = vsel %vm1184_vm3, %v1180_v22, %v1181_v30  ;;  %v8404_v15 = vld [vmem:[#allocation48_spill] sm:$0xff]  ;;  %v8405_v23 = vld [vmem:[#allocation49_spill] sm:$0xff]  ;;  %v8406_v53 = vld [vmem:[#allocation54_spill] sm:$0xff] }
 0x176   : > { %8401 = vst [vmem:[#allocation47_spill] sm:$0xff] %v6340_v46  ;;  %v1051_v19 = vsel %vm1019_vm2, %v6150_v43, 0.0  ;;  %v1052_v29 = vsel %vm1020_vm5, %v6174_v61, 0.0  ;;  %vm817_vm15 = vcmp.eq.s32.totalorder %v8406_v53, 1  ;;  %vm1338_vm0 = vcmp.eq.s32.totalorder %v1294_v42, 1  ;;  %1431 = vrot.lane.b32.xlu1 %v1388_v62, %s4906_s10  ;;  %v8486_v43 = vld [vmem:[#allocation93_spill] sm:$0xff] }
 0x177   : > { %v6334_v31 = vsel %vm1184_vm3, %v8398_v20, %v8397_v57  ;;  %v8402_v57 = vrot.slane %v6174_v61, 1  ;;  %v1303_v20 = vpop.permute.xlu0 %1302  ;;  %1113 = vrot.lane.b32.xlu0 %v1068_v6, %s4905_s29  ;;  %v1069_v54 = vpack.c.bf16 %v1052_v29, %v1051_v19  ;;  %v1053_v45 = vsel %vm1021_vm1, %v6247_v60, 0.0  ;;  %v8409_v6 = vld [vmem:[#allocation53_spill] sm:$0xff]  ;;  %v8410_v19 = vld [vmem:[#allocation58_spill] sm:$0xff] }
 0x178   : > { %8399 = vst [vmem:[#allocation46_spill] sm:$0xff] %v6334_v31  ;;  %vm1339_vm2 = vcmp.eq.s32.totalorder %v1297_v2, 1  ;;  %v8407_v61 = vrot.slane %v6228_v39, 1  ;;  %vm1341_vm11 = vcmp.eq.s32.totalorder %v1303_v20, 1  ;;  %v6378_v47 = vsel %vm991_vm9, %v6228_v39, 0.0 }
 0x179   : > { %v6352_v11 = vsel %vm1184_vm3, %v8402_v57, %v1180_v22  ;;  %v1054_v22 = vsel %vm1022_vm6, %v6277_v59, 0.0  ;;  %v1370_v57 = vsel %vm1338_vm0, %v6253_v12, 0.0  ;;  %vm8413_vm0 = vcmp.eq.s32.totalorder %v8384_v41, 1  ;;  %v8419_v12 = vld [vmem:[#allocation62_spill] sm:$0xff] }
 0x17a   : > { %8403 = vst [vmem:[#allocation50_spill] sm:$0xff] %v6352_v11  ;;  %v1070_v50 = vpack.c.bf16 %v1054_v22, %v1053_v45  ;;  %v6369_v42 = vsel %vm1184_vm3, %v1181_v30, %v8407_v61  ;;  %v1389_v29 = vpack.c.bf16 %v1370_v57, %v1369_v10  ;;  %v6383_v61 = vsel %vm992_vm8, %v6260_v18, 0.0  ;;  %v8412_v30 = vld [vmem:[#allocation52_spill] sm:$0xff]  ;;  %v1300_v45 = vpop.permute.xlu1 %1299  ;;  %v8418_v18 = vld [vmem:[#allocation57_spill] sm:$0xff]  ;;  %v8420_v22 = vld [vmem:[#allocation63_spill] sm:$0xff]  ;;  %1115 = vrot.lane.b32.xlu1 %v1069_v54, %s4905_s29 }
 0x17b   : > { %8408 = vst [vmem:[#allocation51_spill] sm:$0xff] %v6369_v42  ;;  %v832_v10 = vsel %vm8413_vm0, %v6295_v32, 0.0  ;;  %v8414_v62 = vrot.slane %v6228_v39, 1  ;;  %v8416_v49 = vrot.slane %v8387_v1, 1  ;;  %vm824_vm6 = vcmp.eq.s32.totalorder %v8420_v22, 1  ;;  %v8423_v39 = vld [vmem:[#allocation66_spill] sm:$0xff] }
 0x17c   : > { %vm1313_vm0 = vcmp.eq.s32.totalorder %v5747_v24, 1  ;;  %vm1340_vm5 = vcmp.eq.s32.totalorder %v1300_v45, 1  ;;  %1433 = vrot.lane.b32.xlu0 %v1389_v29, %s4906_s10  ;;  %v863_v41 = vpack.c.bf16 %v5812_v36, %v832_v10  ;;  %vm1314_vm1 = vcmp.eq.s32.totalorder %v5765_v37, 1  ;;  %v8424_v24 = vld [vmem:[#allocation67_spill] sm:$0xff]  ;;  %v8425_v10 = vld [vmem:[#allocation60_spill] sm:$0xff] }
 0x17d   : > { %v6395_v26 = vsel %vm1184_vm3, %v8414_v62, %v1183_v52  ;;  %v6401_v57 = vsel %vm1184_vm3, %v1183_v52, %v8416_v49  ;;  %v8421_v62 = vld [vmem:[#allocation56_spill] sm:$0xff]  ;;  %v1371_v27 = vsel %vm1339_vm2, %v6235_v4, 0.0  ;;  %v1372_v52 = vsel %vm1340_vm5, %v6334_v31, 0.0  ;;  %v8427_v31 = vld [vmem:[#allocation65_spill] sm:$0xff] }
 0x17e   : > { %8415 = vst [vmem:[#allocation55_spill] sm:$0xff] %v6395_v26  ;;  %8417 = vst [vmem:[#allocation48_spill] sm:$0xff] %v6401_v57  ;;  %vm819_vm13 = vcmp.eq.s32.totalorder %v8421_v62, 1  ;;  %vm8422_vm3 = vcmp.eq.s32.totalorder %v8390_v34, 1  ;;  %vm829_vm8 = vcmp.eq.s32.totalorder %v8423_v39, 1  ;;  %vm828_vm9 = vcmp.eq.s32.totalorder %v8424_v24, 1  ;;  %v1306_v4 = vpop.permute.xlu1 %1305 }
 0x17f   : > { %v838_v49 = vsel %vm8422_vm3, %v5804_v38, 0.0  ;;  %v1373_v36 = vsel %vm1341_vm11, %v6269_v35, 0.0  ;;  %v1390_v29 = vpack.c.bf16 %v1372_v52, %v1371_v27  ;;  %v1345_v45 = vsel %vm1313_vm0, %v6395_v26, 0.0  ;;  %880 = vst.msk [vmem:[#allocation2 + $0x18] sm:$0xff] %vm878_vm4, %v863_v41  ;;  %v8426_v34 = vld [vmem:[#allocation61_spill] sm:$0xff]  ;;  %v8428_v27 = vld [vmem:[#allocation43_spill] sm:$0xff] }
 0x180   : > { %v866_v2 = vpack.c.bf16 %v5817_v33, %v838_v49  ;;  %vm823_vm2 = vcmp.eq.s32.totalorder %v8425_v10, 1  ;;  %vm822_vm5 = vcmp.eq.s32.totalorder %v8426_v34, 1  ;;  %v840_v20 = vsel %vm808_vm12, %v5843_v13, 0.0  ;;  %v8429_v52 = vld [vmem:[#allocation64_spill] sm:$0xff]  ;;  %v1309_v49 = vpop.permute.xlu0 %1308  ;;  %1117 = vrot.lane.b32.xlu0 %v1070_v50, %s4905_s29  ;;  %v8432_v35 = vld [vmem:[#allocation94_spill] sm:$0xff] }
 0x181   : > { %v841_v54 = vsel %vm809_vm7, %v5869_v44, 0.0  ;;  %v844_v33 = vsel %vm812_vm10, %v5932_v5, 0.0  ;;  %v845_v41 = vsel %vm813_vm14, %v5972_v14, 0.0  ;;  %vm798_vm11 = vcmp.eq.s32.totalorder %v8428_v27, 1  ;;  %1435 = vrot.lane.b32.xlu1 %v1390_v29, %s4906_s10  ;;  %v8437_v29 = vld [vmem:[#allocation104_spill] sm:$0xff]  ;;  %v8453_v27 = vld [vmem:[#allocation14_spill] sm:$0xff] }
 0x182   : > { %vm827_vm0 = vcmp.eq.s32.totalorder %v8429_v52, 1  ;;  %vm1342_vm3 = vcmp.eq.s32.totalorder %v1306_v4, 1  ;;  %883 = vst.msk [vmem:[#allocation2 + $0x60] sm:$0xff] %vm878_vm4, %v866_v2  ;;  %v867_v28 = vpack.c.bf16 %v841_v54, %v840_v20  ;;  %v869_v0 = vpack.c.bf16 %v845_v41, %v844_v33 }
 0x183   : > { %vm8430_vm7 = vcmp.eq.s32.totalorder %v8400_v58, 1  ;;  %v1374_v26 = vsel %vm1342_vm3, %v6352_v11, 0.0  ;;  %v849_v25 = vsel %vm817_vm15, %v6061_v40, 0.0  ;;  %vm8431_vm10 = vcmp.eq.s32.totalorder %v8405_v23, 1  ;;  %v1312_v23 = vpop.permute.xlu1 %1311 }
 0x184   : > { %v848_v7 = vsel %vm8430_vm7, %v6022_v16, 0.0  ;;  %v842_v4 = vsel %vm8431_vm10, %v5865_v17, 0.0  ;;  %vm8433_vm14 = vcmp.eq.s32.totalorder %v8404_v15, 1  ;;  %v1391_v2 = vpack.c.bf16 %v1374_v26, %v1373_v36  ;;  %884 = vst.msk [vmem:[#allocation2 + $0x78] sm:$0xff] %vm878_vm4, %v867_v28  ;;  %886 = vst.msk [vmem:[#allocation2 + $0xa8] sm:$0xff] %vm878_vm4, %v869_v0  ;;  %v8484_v16 = vld [vmem:[#allocation91_spill] sm:$0xff] }
 0x185   : > { %v843_v50 = vsel %vm8433_vm14, %v8432_v35, 0.0  ;;  %v1346_v58 = vsel %vm1314_vm1, %v6401_v57, 0.0  ;;  %v871_v53 = vpack.c.bf16 %v849_v25, %v848_v7  ;;  %vm1343_vm12 = vcmp.eq.s32.totalorder %v1309_v49, 1  ;;  %v8442_v7 = vld [vmem:[#allocation114_spill] sm:$0xff]  ;;  %v8498_v17 = vld [vmem:[#allocation73_spill] sm:$0xff] }
 0x186   : > { %v868_v20 = vpack.c.bf16 %v843_v50, %v842_v4  ;;  %vm8434_vm15 = vcmp.eq.s32.totalorder %v8411_v9, 1  ;;  %vm8435_vm3 = vcmp.eq.s32.totalorder %v8410_v19, 1  ;;  %vm8436_vm7 = vcmp.eq.s32.totalorder %v8409_v6, 1  ;;  %1437 = vrot.lane.b32.xlu0 %v1391_v2, %s4906_s10  ;;  %v8443_v4 = vld [vmem:[#allocation149_spill] sm:$0xff]  ;;  %v8445_v2 = vld [vmem:[#allocation126_spill] sm:$0xff] }
 0x187   : > { %v852_v15 = vsel %vm8434_vm15, %v6104_v55, 0.0  ;;  %v853_v26 = vsel %vm8435_vm3, %v6142_v21, 0.0  ;;  %v846_v37 = vsel %vm8436_vm7, %v5968_v48, 0.0  ;;  %vm1344_vm1 = vcmp.eq.s32.totalorder %v1312_v23, 1  ;;  %888 = vst.msk [vmem:[#allocation2 + $0xd8] sm:$0xff] %vm878_vm4, %v871_v53  ;;  %v8448_v53 = vld [vmem:[#allocation44_spill] sm:$0xff] }
 0x188   : > { %885 = vst.msk [vmem:[#allocation2 + $0x90] sm:$0xff] %vm878_vm4, %v868_v20  ;;  %v873_v36 = vpack.c.bf16 %v853_v26, %v852_v15  ;;  %vm8438_vm10 = vcmp.eq.s32.totalorder %v8412_v30, 1  ;;  %v856_v19 = vsel %vm824_vm6, %v6190_v8, 0.0  ;;  %v1376_v54 = vsel %vm1344_vm1, %v6369_v42, 0.0  ;;  %v8449_v23 = vld [vmem:[#allocation137_spill] sm:$0xff]  ;;  %v8468_v42 = vld [vmem:[#allocation80_spill] sm:$0xff] }
 0x189   : > { %v847_v9 = vsel %vm8438_vm10, %v8437_v29, 0.0  ;;  %vm8439_vm14 = vcmp.eq.s32.totalorder %v8419_v12, 1  ;;  %vm8440_vm15 = vcmp.eq.s32.totalorder %v8418_v18, 1  ;;  %v1375_v28 = vsel %vm1343_vm12, %v6340_v46, 0.0  ;;  %v8450_v26 = vld [vmem:[#allocation45_spill] sm:$0xff]  ;;  %v8483_v55 = vld [vmem:[#allocation26_spill] sm:$0xff] }
 0x18a   : > { %v870_v6 = vpack.c.bf16 %v847_v9, %v846_v37  ;;  %v857_v33 = vsel %vm8439_vm14, %v6220_v3, 0.0  ;;  %v850_v41 = vsel %vm8440_vm15, %v6057_v51, 0.0  ;;  %v8441_v30 = vpack.c.bf16 %v6383_v61, %v6378_v47  ;;  %890 = vst.msk [vmem:[#allocation2 + $0x108] sm:$0xff] %vm878_vm4, %v873_v36  ;;  %v6505_v61 = vpop.permute.xlu1 %1478  ;;  %v8480_v3 = vld [vmem:[#allocation10_spill] sm:$0xff] }
 0x18b   : > { %v1377_v22 = vpack.c.bf16 %v1346_v58, %v1345_v45  ;;  %v875_v0 = vpack.c.bf16 %v857_v33, %v856_v19  ;;  %v851_v12 = vsel %vm819_vm13, %v8442_v7, 0.0  ;;  %v1392_v25 = vpack.c.bf16 %v1376_v54, %v1375_v28  ;;  %v8444_v45 = vld [vmem:[#allocation128_spill] sm:$0xff]  ;;  %v8446_v58 = vld [vmem:[#allocation139_spill] sm:$0xff]  ;;  %v8452_v19 = vld [vmem:[#allocation17_spill] sm:$0xff] }
 0x18c   : > { %1087 = vrot.lane.b32.xlu1 %v8441_v30, %s4905_s29  ;;  %887 = vst.msk [vmem:[#allocation2 + $0xc0] sm:$0xff] %vm878_vm4, %v870_v6  ;;  %v872_v18 = vpack.c.bf16 %v851_v12, %v850_v41  ;;  %v860_v49 = vsel %vm828_vm9, %v6282_v63, 0.0  ;;  %v861_v47 = vsel %vm829_vm8, %v8443_v4, 0.0  ;;  %v854_v50 = vsel %vm822_vm5, %v8444_v45, 0.0  ;;  %v8454_v54 = vld [vmem:[#allocation21_spill] sm:$0xff]  ;;  %v8456_v33 = vld [vmem:[#allocation16_spill] sm:$0xff] }
 0x18d   : > { %1409 = vrot.lane.b32.xlu0 %v1377_v22, %s4906_s10  ;;  %892 = vst.msk [vmem:[#allocation2 + $0x138] sm:$0xff] %vm878_vm4, %v875_v0  ;;  %v877_v62 = vpack.c.bf16 %v861_v47, %v860_v49  ;;  %v855_v24 = vsel %vm823_vm2, %v8445_v2, 0.0  ;;  %vm8447_vm13 = vcmp.eq.s32.totalorder %v8427_v31, 1  ;;  %vm799_vm6 = vcmp.eq.s32.totalorder %v8448_v53, 1  ;;  %v8451_v31 = vld [vmem:[#allocation147_spill] sm:$0xff]  ;;  %v8458_v30 = vld [vmem:[#allocation18_spill] sm:$0xff]  ;;  %v6556_v47 = vpop.permute.xlu0 %1764 }
 0x18e   : > { %v858_v39 = vsel %vm8447_vm13, %v8446_v58, 0.0  ;;  %889 = vst.msk [vmem:[#allocation2 + $0xf0] sm:$0xff] %vm878_vm4, %v872_v18  ;;  %v874_v20 = vpack.c.bf16 %v855_v24, %v854_v50  ;;  %v859_v15 = vsel %vm827_vm0, %v8449_v23, 0.0  ;;  %v830_v34 = vsel %vm798_vm11, %v8450_v26, 0.0  ;;  %v6530_v9 = vpop.permute.xlu1 %1481  ;;  %v8460_v12 = vld [vmem:[#allocation23_spill] sm:$0xff]  ;;  %v4648_v51 = vld [vmem:[%s7946_s3 + $0x50] sm:$0xff]  }
 0x18f   : > { %894 = vst.msk [vmem:[#allocation2 + $0x168] sm:$0xff] %vm878_vm4, %v877_v62  ;;  %v876_v10 = vpack.c.bf16 %v859_v15, %v858_v39  ;;  %v831_v37 = vsel %vm799_vm6, %v8451_v31, 0.0  ;;  %v8455_v6 = vmov 5   ;;  %v8457_v28 = vmov 7   ;;  %v8462_v49 = vld [vmem:[#allocation11_spill] sm:$0xff]  ;;  %v8463_v62 = vld [vmem:[#allocation12_spill] sm:$0xff] }
 0x190   : > { %1439 = vrot.lane.b32.xlu1 %v1392_v25, %s4906_s10  ;;  %891 = vst.msk [vmem:[#allocation2 + $0x120] sm:$0xff] %vm878_vm4, %v874_v20  ;;  %v862_v36 = vpack.c.bf16 %v831_v37, %v830_v34  ;;  %v8459_v22 = vmov 6   ;;  %v8461_v25 = vmov 3   ;;  %v8464_v39 = vld [vmem:[#allocation19_spill] sm:$0xff]  ;;  %v8465_v20 = vld [vmem:[#allocation69_spill] sm:$0xff]  ;;  %vm1135_vm2 = vcmask 523520  }
 0x191   : > { %1782 = vperm.xlu0 %4560, %v8452_v19   ;;  %893 = vst.msk [vmem:[#allocation2 + $0x150] sm:$0xff] %vm878_vm4, %v876_v10  ;;  %v6560_v24 = vpop.permute.xlu0 %1770  ;;  %v8466_v34 = vld [vmem:[#allocation71_spill] sm:$0xff]  ;;  %v8169_v57 = vmov 8   ;;  %v8469_v31 = vld [vmem:[#allocation82_spill] sm:$0xff]  ;;  %vm1457_vm0 = vcmask 785920   ;;  %v8482_v21 = vmov 0  }
 0x192   : > { %879 = vst.msk [vmem:[#allocation2] sm:$0xff] %vm878_vm4, %v862_v36  ;;  %v6536_v52 = vpop.permute.xlu1 %1487  ;;  %vm1859_vm14 = vcmp.eq.s32.totalorder %v6556_v47, 1  ;;  %v4649_v47 = vld [vmem:[%s7946_s3 + $0x10] sm:$0xff]  }
 0x194   : > { %2291 = vperm.xlu1 %4569, %v8453_v27  }
 0x195   : > { %1794 = vperm.xlu0 %4560, %v8454_v54   ;;  %v6575_v36 = vpop.permute.xlu0 %1776 }
 0x196   : > { %v6541_v41 = vpop.permute.xlu1 %1493 }
 0x198   : > { %4570 = vset.pattern.permute.xlu1 %v8455_v6 }
 0x199   : > { %1785 = vperm.xlu1 %4570, %v8456_v33   ;;  %4577 = vset.pattern.permute.xlu0 %v8457_v28 }
 0x19a   : > { %2303 = vperm.xlu0 %4577, %v8458_v30   ;;  %v6547_v0 = vpop.permute.xlu1 %1767 }
 0x19b   : > { %vm1860_vm10 = vcmp.eq.s32.totalorder %v6547_v0, 1  ;;  %v8490_v0 = vld [vmem:[#allocation75_spill] sm:$0xff] }
 0x19d   : > { %4571 = vset.pattern.permute.xlu1 %v8459_v22 }
 0x19e   : > { %2038 = vperm.xlu1 %4571, %v8452_v19   ;;  %2312 = vperm.xlu0 %4577, %v8460_v12   ;;  %v6553_v18 = vpop.permute.xlu1 %2020 }
 0x19f   : > { %vm2115_vm6 = vcmp.eq.s32.totalorder %v6553_v18, 1 }
 0x1a2   : > { %4572 = vset.pattern.permute.xlu1 %v8457_v28  ;;  %4584 = vset.pattern.permute.xlu0 %v8461_v25  ;;  %v2277_v50 = vpop.permute.xlu1 %2276 }
 0x1a3   : > { %2294 = vperm.xlu1 %4572, %v8452_v19   ;;  %1475 = vperm.xlu0 %4584, %v8462_v49   ;;  %vm2371_vm8 = vcmp.eq.s32.totalorder %v2277_v50, 1 }
 0x1a4   : > { %v6566_v15 = vsel %vm2371_vm8, %v8465_v20, 0.0 }
 0x1a6   : > { %v2280_v53 = vpop.permute.xlu1 %2279 }
 0x1a7   : > { %2297 = vperm.xlu1 %4572, %v8456_v33   ;;  %1484 = vperm.xlu0 %4584, %v8463_v62   ;;  %vm2372_vm9 = vcmp.eq.s32.totalorder %v2280_v53, 1  ;;  %v1090_v53 = vpop.permute.xlu0 %1089 }
 0x1a8   : > { %v6569_v10 = vsel %vm2372_vm9, %v8466_v34, 0.0  ;;  %1137 = vst.msk [vmem:[#allocation2 + $0x18] sm:$0xff] %vm1135_vm2, %v1090_v53  ;;  %v8467_v34 = vld [vmem:[#allocation22_spill] sm:$0xff] }
 0x1aa   : > { %v6577_v50 = vpop.permute.xlu1 %1773 }
 0x1ab   : > { %4573 = vset.pattern.permute.xlu1 %v8455_v6  ;;  %1490 = vperm.xlu0 %4584, %v8453_v27  }
 0x1ac   : > { %1788 = vperm.xlu1 %4573, %v8464_v39  }
 0x1ae   : > { %v6583_v20 = vpop.permute.xlu1 %2026  ;;  %v1094_v46 = vpop.permute.xlu0 %1093 }
 0x1af   : > { %1496 = vperm.xlu0 %4584, %v8456_v33   ;;  %1139 = vst.msk [vmem:[#allocation2 + $0x48] sm:$0xff] %vm1135_vm2, %v1094_v46 }
 0x1b0   : > { %1791 = vperm.xlu1 %4573, %v8458_v30  }
 0x1b2   : > { %v2283_v37 = vpop.permute.xlu1 %2282 }
 0x1b3   : > { %1505 = vperm.xlu0 %4584, %v8454_v54   ;;  %vm2373_vm5 = vcmp.eq.s32.totalorder %v2283_v37, 1  ;;  %v8470_v37 = vld [vmem:[#allocation13_spill] sm:$0xff] }
 0x1b4   : > { %4574 = vset.pattern.permute.xlu1 %v8459_v22  ;;  %v6595_v26 = vsel %vm2373_vm5, %v8468_v42, 0.0  ;;  %vm1571_vm5 = vcmp.eq.s32.totalorder %v6505_v61, 1 }
 0x1b5   : > { %2047 = vperm.xlu1 %4574, %v8458_v30  }
 0x1b6   : > { %v2286_v53 = vpop.permute.xlu1 %2285 }
 0x1b7   : > { %1514 = vperm.xlu0 %4584, %v8467_v34   ;;  %vm2374_vm11 = vcmp.eq.s32.totalorder %v2286_v53, 1  ;;  %v8471_v53 = vld [vmem:[#allocation20_spill] sm:$0xff] }
 0x1b8   : > { %v6598_v11 = vsel %vm2374_vm11, %v8469_v31, 0.0  ;;  %vm2117_vm11 = vcmp.eq.s32.totalorder %v6583_v20, 1  ;;  %v8503_v20 = vld [vmem:[#allocation83_spill] sm:$0xff] }
 0x1b9   : > { %4575 = vset.pattern.permute.xlu1 %v8457_v28 }
 0x1ba   : > { %2300 = vperm.xlu1 %4575, %v8464_v39   ;;  %v6603_v46 = vpop.permute.xlu1 %1779 }
 0x1bb   : > { %4591 = vset.pattern.permute.xlu0 %v8169_v57 }
 0x1bc   : > { %2532 = vperm.xlu0 %4591, %v8462_v49  }
 0x1be   : > { %4576 = vset.pattern.permute.xlu1 %v8461_v25  ;;  %v6609_v42 = vpop.permute.xlu1 %2032  ;;  %v1414_v31 = vpop.permute.xlu0 %1413 }
 0x1bf   : > { %1499 = vperm.xlu1 %4576, %v8464_v39  }
 0x1c0   : > { %2541 = vperm.xlu0 %4591, %v8463_v62  }
 0x1c2   : > { %v6615_v49 = vpop.permute.xlu1 %2288 }
 0x1c3   : > { %1502 = vperm.xlu1 %4576, %v8458_v30   ;;  %v1098_v57 = vpop.permute.xlu0 %1097  ;;  %vm2375_vm12 = vcmp.eq.s32.totalorder %v6615_v49, 1 }
 0x1c4   : > { %4593 = vset.pattern.permute.xlu0 %v8459_v22  ;;  %1141 = vst.msk [vmem:[#allocation2 + $0x78] sm:$0xff] %vm1135_vm2, %v1098_v57 }
 0x1c5   : > { %2023 = vperm.xlu0 %4593, %v8470_v37  }
 0x1c7   : > { %4578 = vset.pattern.permute.xlu1 %v8455_v6  ;;  %v1418_v59 = vpop.permute.xlu0 %1417 }
 0x1c8   : > { %1797 = vperm.xlu1 %4578, %v8471_v53  }
 0x1c9   : > { %2029 = vperm.xlu0 %4593, %v8463_v62   ;;  %v1092_v62 = vpop.permute.xlu1 %1091 }
 0x1ca   : > { %1138 = vst.msk [vmem:[#allocation2 + $0x30] sm:$0xff] %vm1135_vm2, %v1092_v62  ;;  %v8472_v62 = vld [vmem:[#allocation25_spill] sm:$0xff] }
 0x1cb   : > { %1460 = vst.msk [vmem:[#allocation2 + $0x30] sm:$0xff] %vm1457_vm0, %v1414_v31  ;;  %v1102_v57 = vpop.permute.xlu0 %1101 }
 0x1cc   : > { %4579 = vset.pattern.permute.xlu1 %v8459_v22  ;;  %1143 = vst.msk [vmem:[#allocation2 + $0xa8] sm:$0xff] %vm1135_vm2, %v1102_v57 }
 0x1cd   : > { %2050 = vperm.xlu1 %4579, %v8454_v54   ;;  %2035 = vperm.xlu0 %4593, %v8453_v27   ;;  %v1412_v60 = vpop.permute.xlu1 %1411  ;;  %v8502_v27 = vld [vmem:[#allocation86_spill] sm:$0xff] }
 0x1ce   : > { %1459 = vst.msk [vmem:[#allocation2 + $0x18] sm:$0xff] %vm1457_vm0, %v1412_v60 }
 0x1d0   : > { %v1422_v31 = vpop.permute.xlu0 %1421 }
 0x1d1   : > { %4580 = vset.pattern.permute.xlu1 %v8457_v28  ;;  %2041 = vperm.xlu0 %4593, %v8456_v33   ;;  %v1096_v63 = vpop.permute.xlu1 %1095  ;;  %v8501_v33 = vld [vmem:[#allocation89_spill] sm:$0xff] }
 0x1d2   : > { %2306 = vperm.xlu1 %4580, %v8454_v54   ;;  %1140 = vst.msk [vmem:[#allocation2 + $0x60] sm:$0xff] %vm1135_vm2, %v1096_v63  ;;  %v8473_v63 = vpack.c.bf16 %v6569_v10, %v6566_v15 }
 0x1d3   : > { %1462 = vst.msk [vmem:[#allocation2 + $0x60] sm:$0xff] %vm1457_vm0, %v1418_v59 }
 0x1d4   : > { %v1106_v60 = vpop.permute.xlu0 %1105 }
 0x1d5   : > { %2044 = vperm.xlu0 %4593, %v8464_v39   ;;  %v1416_v4 = vpop.permute.xlu1 %1415  ;;  %1145 = vst.msk [vmem:[#allocation2 + $0xd8] sm:$0xff] %vm1135_vm2, %v1106_v60 }
 0x1d6   : > { %2309 = vperm.xlu1 %4580, %v8471_v53   ;;  %1461 = vst.msk [vmem:[#allocation2 + $0x48] sm:$0xff] %vm1457_vm0, %v1416_v4  ;;  %v8474_v4 = vld [vmem:[#allocation28_spill] sm:$0xff] }
 0x1d9   : > { %2053 = vperm.xlu0 %4593, %v8471_v53   ;;  %v1100_v57 = vpop.permute.xlu1 %1099  ;;  %v1426_v59 = vpop.permute.xlu0 %1425 }
 0x1da   : > { %4581 = vset.pattern.permute.xlu1 %v8461_v25  ;;  %1142 = vst.msk [vmem:[#allocation2 + $0x90] sm:$0xff] %vm1135_vm2, %v1100_v57 }
 0x1db   : > { %1508 = vperm.xlu1 %4581, %v8471_v53   ;;  %1464 = vst.msk [vmem:[#allocation2 + $0x90] sm:$0xff] %vm1457_vm0, %v1422_v31 }
 0x1dd   : > { %2062 = vperm.xlu0 %4593, %v8472_v62   ;;  %v1420_v58 = vpop.permute.xlu1 %1419  ;;  %v1110_v60 = vpop.permute.xlu0 %1109 }
 0x1de   : > { %1463 = vst.msk [vmem:[#allocation2 + $0x78] sm:$0xff] %vm1457_vm0, %v1420_v58 }
 0x1df   : > { %4582 = vset.pattern.permute.xlu1 %v8455_v6  ;;  %1147 = vst.msk [vmem:[#allocation2 + $0x108] sm:$0xff] %vm1135_vm2, %v1110_v60 }
 0x1e0   : > { %1800 = vperm.xlu1 %4582, %v8460_v12  }
 0x1e1   : > { %2467 = vrot.lane.b32.xlu0 %v8473_v63, %s4908_s12  ;;  %v1104_v15 = vpop.permute.xlu1 %1103 }
 0x1e2   : > { %1144 = vst.msk [vmem:[#allocation2 + $0xc0] sm:$0xff] %vm1135_vm2, %v1104_v15 }
 0x1e3   : > { %v1430_v10 = vpop.permute.xlu0 %1429  ;;  %1466 = vst.msk [vmem:[#allocation2 + $0xc0] sm:$0xff] %vm1457_vm0, %v1426_v59 }
 0x1e4   : > { %4583 = vset.pattern.permute.xlu1 %v8459_v22 }
 0x1e5   : > { %2056 = vperm.xlu1 %4583, %v8460_v12   ;;  %2077 = vperm.xlu0 %4593, %v8474_v4   ;;  %v1424_v31 = vpop.permute.xlu1 %1423 }
 0x1e6   : > { %1465 = vst.msk [vmem:[#allocation2 + $0xa8] sm:$0xff] %vm1457_vm0, %v1424_v31  ;;  %v8475_v31 = vld [vmem:[#allocation24_spill] sm:$0xff] }
 0x1e9   : > { %2059 = vperm.xlu1 %4583, %v8467_v34   ;;  %v1114_v63 = vpop.permute.xlu0 %1113  ;;  %v1108_v58 = vpop.permute.xlu1 %1107 }
 0x1ea   : > { %1149 = vst.msk [vmem:[#allocation2 + $0x138] sm:$0xff] %vm1135_vm2, %v1114_v63  ;;  %1146 = vst.msk [vmem:[#allocation2 + $0xf0] sm:$0xff] %vm1135_vm2, %v1108_v58 }
 0x1eb   : > { %1468 = vst.msk [vmem:[#allocation2 + $0xf0] sm:$0xff] %vm1457_vm0, %v1430_v10 }
 0x1ed   : > { %4585 = vset.pattern.permute.xlu1 %v8457_v28  ;;  %v1428_v59 = vpop.permute.xlu1 %1427 }
 0x1ee   : > { %2315 = vperm.xlu1 %4585, %v8467_v34   ;;  %v1434_v57 = vpop.permute.xlu0 %1433  ;;  %1467 = vst.msk [vmem:[#allocation2 + $0xd8] sm:$0xff] %vm1457_vm0, %v1428_v59 }
 0x1f1   : > { %v1112_v15 = vpop.permute.xlu1 %1111 }
 0x1f2   : > { %4586 = vset.pattern.permute.xlu1 %v8461_v25  ;;  %v1118_v60 = vpop.permute.xlu0 %1117  ;;  %1148 = vst.msk [vmem:[#allocation2 + $0x120] sm:$0xff] %vm1135_vm2, %v1112_v15 }
 0x1f3   : > { %1511 = vperm.xlu1 %4586, %v8460_v12   ;;  %1151 = vst.msk [vmem:[#allocation2 + $0x168] sm:$0xff] %vm1135_vm2, %v1118_v60 }
 0x1f4   : > { %1470 = vst.msk [vmem:[#allocation2 + $0x120] sm:$0xff] %vm1457_vm0, %v1434_v57 }
 0x1f5   : > { %v1432_v63 = vpop.permute.xlu1 %1431 }
 0x1f6   : > { %1469 = vst.msk [vmem:[#allocation2 + $0x108] sm:$0xff] %vm1457_vm0, %v1432_v63 }
 0x1f7   : > { %4587 = vset.pattern.permute.xlu1 %v8455_v6 }
 0x1f8   : > { %1806 = vperm.xlu1 %4587, %v8472_v62   ;;  %v1438_v58 = vpop.permute.xlu0 %1437 }
 0x1f9   : > { %v1116_v10 = vpop.permute.xlu1 %1115 }
 0x1fa   : > { %1150 = vst.msk [vmem:[#allocation2 + $0x150] sm:$0xff] %vm1135_vm2, %v1116_v10  ;;  %v8476_v10 = vmov 8  }
 0x1fb   : > { %1472 = vst.msk [vmem:[#allocation2 + $0x150] sm:$0xff] %vm1457_vm0, %v1438_v58 }
 0x1fc   : > { %1809 = vperm.xlu1 %4587, %v8475_v31  }
 0x1fd   : > { %v1436_v59 = vpop.permute.xlu1 %1435 }
 0x1fe   : > { %1471 = vst.msk [vmem:[#allocation2 + $0x138] sm:$0xff] %vm1457_vm0, %v1436_v59  ;;  %v8477_v59 = vld [vmem:[#allocation79_spill] sm:$0xff] }
 0x1ff   : > { %v1410_v60 = vpop.permute.xlu0 %1409  ;;  %v6686_v23 = vsel %vm2375_vm12, %v8477_v59, 0.0 }
 0x200   : > { %4588 = vset.pattern.permute.xlu1 %v8459_v22 }
 0x201   : > { %2065 = vperm.xlu1 %4588, %v8475_v31   ;;  %v1088_v57 = vpop.permute.xlu1 %1087 }
 0x202   : > { %1136 = vst.msk [vmem:[#allocation2] sm:$0xff] %vm1135_vm2, %v1088_v57  ;;  %v8478_v57 = vld [vmem:[#allocation81_spill] sm:$0xff] }
 0x203   : > { %1458 = vst.msk [vmem:[#allocation2] sm:$0xff] %vm1457_vm0, %v1410_v60 }
 0x205   : > { %4589 = vset.pattern.permute.xlu1 %v8457_v28  ;;  %v1440_v15 = vpop.permute.xlu1 %1439 }
 0x206   : > { %2318 = vperm.xlu1 %4589, %v8472_v62   ;;  %1473 = vst.msk [vmem:[#allocation2 + $0x168] sm:$0xff] %vm1457_vm0, %v1440_v15 }
 0x20a   : > { %4590 = vset.pattern.permute.xlu1 %v8461_v25 }
 0x20b   : > { %1517 = vperm.xlu1 %4590, %v8472_v62   ;;  %v4647_v62 = vld [vmem:[%s7946_s3 + $0x8] sm:$0xff]  }
 0x20f   : > { %1520 = vperm.xlu1 %4590, %v8475_v31  }
 0x210   : > { %v6680_v63 = vpop.permute.xlu0 %1782 }
 0x213   : > { %4592 = vset.pattern.permute.xlu1 %v8476_v10  ;;  %v2292_v58 = vpop.permute.xlu1 %2291 }
 0x214   : > { %vm2376_vm3 = vcmp.eq.s32.totalorder %v2292_v58, 1  ;;  %2535 = vperm.xlu1 %4592, %v8470_v37   ;;  %v6691_v8 = vpop.permute.xlu0 %1794  ;;  %v4642_v37 = vld [vmem:[%s7946_s3 + $0x80] sm:$0xff]   ;;  %v8481_v58 = vld [vmem:[#allocation27_spill] sm:$0xff] }
 0x215   : > { %v6689_v60 = vsel %vm2376_vm3, %v8478_v57, 0.0  ;;  %8479 = vst [vmem:[#allocation49_spill] sm:$0xff] %v6691_v8  ;;  %4452 = vmatprep.subr.bf16.mxu0 %v4642_v37 }
 0x216   : > { %4453 = vmatpush3.bf16.msra.mxu0 %v4642_v37 }
 0x218   : > { %2538 = vperm.xlu1 %4592, %v8480_v3   ;;  %v6696_v49 = vpop.permute.xlu1 %1785  ;;  %v4643_v3 = vld [vmem:[%s7946_s3 + $0x88] sm:$0xff]  }
 0x219   : > { %v6698_v2 = vpop.permute.xlu0 %2303  ;;  %4454 = vmatprep.subr.bf16.mxu0 %v4643_v3 }
 0x21a   : > { %4455 = vmatpush3.bf16.msra.mxu0 %v4643_v3  ;;  %v4644_v3 = vld [vmem:[%s7946_s3 + $0x40] sm:$0xff]   ;;  %vm2380_vm15 = vcmp.eq.s32.totalorder %v6698_v2, 1 }
 0x21b   : > { %3500 = vmatprep.subr.bf16.mxu0 %v8482_v21  ;;  %4274 = vmatprep.subr.bf16.mxu1 %v4644_v3  ;;  %v8488_v21 = vld [vmem:[#allocation76_spill] sm:$0xff] }
 0x21c   : > { %4594 = vset.pattern.permute.xlu1 %v8455_v6  ;;  %v1892_v12 = vsel %vm1860_vm10, %v8488_v21, 0.0  ;;  %vm1574_vm10 = vcmp.eq.s32.totalorder %v6536_v52, 1  ;;  %v8507_v52 = vld [vmem:[#allocation29_spill] sm:$0xff] }
 0x21d   : > { %1812 = vperm.xlu1 %4594, %v8481_v58   ;;  %v6705_v59 = vpop.permute.xlu1 %2038  ;;  %v6707_v57 = vpop.permute.xlu0 %2312 }
 0x221   : > { %4595 = vset.pattern.permute.xlu1 %v8459_v22 }
 0x222   : > { %2068 = vperm.xlu1 %4595, %v8481_v58   ;;  %v2295_v15 = vpop.permute.xlu1 %2294  ;;  %v6714_v45 = vpop.permute.xlu0 %1475 }
 0x223   : > { %vm2377_vm7 = vcmp.eq.s32.totalorder %v2295_v15, 1  ;;  %v4645_v15 = vld [vmem:[%s7946_s3] sm:$0xff]   ;;  %vm1570_vm8 = vcmp.eq.s32.totalorder %v6714_v45, 1 }
 0x224   : > { %v6721_v1 = vsel %vm2377_vm7, %v8484_v16, 0.0  ;;  %4275 = vmatpush3.bf16.msra.mxu1 %v4645_v15  ;;  %v1891_v15 = vsel %vm1859_vm14, %v8490_v0, 0.0  ;;  %v4651_v0 = vld [vmem:[%s7946_s3 + $0x18] sm:$0xff]   ;;  %vm2119_vm7 = vcmp.eq.s32.totalorder %v6609_v42, 1 }
 0x225   : > { %8485 = vst [vmem:[#allocation54_spill] sm:$0xff] %v6721_v1  ;;  %v1923_v21 = vpack.c.bf16 %v1892_v12, %v1891_v15  ;;  %v4653_v12 = vld [vmem:[%s7946_s3 + $0x20] sm:$0xff]  }
 0x226   : > { %2071 = vperm.xlu1 %4595, %v8483_v55   ;;  %v2298_v40 = vpop.permute.xlu1 %2297  ;;  %v6718_v37 = vpop.permute.xlu0 %1484  ;;  %v8493_v15 = vld [vmem:[#allocation92_spill] sm:$0xff] }
 0x227   : > { %vm2378_vm1 = vcmp.eq.s32.totalorder %v2298_v40, 1 }
 0x228   : > { %v6724_v56 = vsel %vm2378_vm1, %v8486_v43, 0.0  ;;  %v4646_v43 = vld [vmem:[%s7946_s3 + $0x48] sm:$0xff]  }
 0x229   : > { %4276 = vmatprep.subr.bf16.mxu1 %v4646_v43 }
 0x22a   : > { %4596 = vset.pattern.permute.xlu1 %v8457_v28  ;;  %v6738_v40 = vpop.permute.xlu0 %1490  ;;  %4277 = vmatpush3.bf16.msra.mxu1 %v4647_v62  ;;  %v4650_v62 = vld [vmem:[%s7946_s3 + $0x58] sm:$0xff]  }
 0x22b   : > { %2327 = vperm.xlu1 %4596, %v8483_v55   ;;  %v6736_v16 = vpop.permute.xlu1 %1788  ;;  %4278 = vmatprep.subr.bf16.mxu1 %v4648_v51  ;;  %v4652_v51 = vld [vmem:[%s7946_s3 + $0x60] sm:$0xff]   ;;  %vm1575_vm1 = vcmp.eq.s32.totalorder %v6738_v40, 1  ;;  %v1606_v40 = vsel %vm1574_vm10, %v8501_v33, 0.0 }
 0x22c   : > { %8487 = vst [vmem:[#allocation53_spill] sm:$0xff] %v6736_v16  ;;  %v2149_v16 = vsel %vm2117_vm11, %v8501_v33, 0.0 }
 0x22e   : > { %v6752_v3 = vpop.permute.xlu0 %1496  ;;  %4279 = vmatpush3.bf16.msra.mxu1 %v4649_v47  ;;  %v6784_v47 = vsel %vm2380_vm15, %v8493_v15, 0.0 }
 0x22f   : > { %4597 = vset.pattern.permute.xlu1 %v8461_v25  ;;  %v6750_v8 = vpop.permute.xlu1 %1791  ;;  %4280 = vmatprep.subr.bf16.mxu1 %v4650_v62  ;;  %v4658_v62 = vld [vmem:[%s7946_s3 + $0x78] sm:$0xff]   ;;  %vm1577_vm15 = vcmp.eq.s32.totalorder %v6752_v3, 1 }
 0x230   : > { %8489 = vst [vmem:[#allocation58_spill] sm:$0xff] %v6750_v8  ;;  %1523 = vperm.xlu1 %4597, %v8481_v58  }
 0x232   : > { %v6762_v7 = vpop.permute.xlu0 %1505  ;;  %4281 = vmatpush3.bf16.msra.mxu1 %v4651_v0  ;;  %v4654_v0 = vld [vmem:[%s7946_s3 + $0x68] sm:$0xff]  }
 0x233   : > { %8491 = vst [vmem:[#allocation59_spill] sm:$0xff] %v6762_v7  ;;  %4282 = vmatprep.subr.bf16.mxu1 %v4652_v51  ;;  %v8494_v7 = vld [vmem:[#allocation90_spill] sm:$0xff]  ;;  %v4655_v51 = vld [vmem:[%s7946_s3 + $0x28] sm:$0xff]  }
 0x234   : > { %1955 = vrot.lane.b32.xlu1 %v1923_v21, %s4905_s29  ;;  %v6765_v43 = vpop.permute.xlu1 %2047 }
 0x235   : > { %8492 = vst [vmem:[#allocation52_spill] sm:$0xff] %v6765_v43  ;;  %4598 = vset.pattern.permute.xlu1 %v8455_v6 }
 0x236   : > { %v6774_v54 = vpop.permute.xlu0 %1514  ;;  %4283 = vmatpush3.bf16.msra.mxu1 %v4653_v12  ;;  %v4657_v12 = vld [vmem:[%s7946_s3 + $0x30] sm:$0xff]  }
 0x237   : > { %4284 = vmatprep.subr.bf16.mxu1 %v4654_v0  ;;  %v4659_v0 = vld [vmem:[%s7946_s3 + $0x38] sm:$0xff]  }
 0x239   : > { %v2301_v21 = vpop.permute.xlu1 %2300 }
 0x23a   : > { %vm2379_vm13 = vcmp.eq.s32.totalorder %v2301_v21, 1  ;;  %4285 = vmatpush3.bf16.msra.mxu1 %v4655_v51  ;;  %v8497_v51 = vld [vmem:[#allocation78_spill] sm:$0xff] }
 0x23b   : > { %v6787_v35 = vsel %vm2379_vm13, %v8494_v7, 0.0  ;;  %v6791_v39 = vpop.permute.xlu0 %2532  ;;  %v4656_v7 = vld [vmem:[%s7946_s3 + $0x70] sm:$0xff]  }
 0x23c   : > { %4286 = vmatprep.subr.bf16.mxu1 %v4656_v7 }
 0x23e   : > { %v6793_v2 = vpop.permute.xlu1 %1499  ;;  %4287 = vmatpush3.bf16.msra.mxu1 %v4657_v12  ;;  %v1602_v12 = vsel %vm1570_vm8, %v6295_v32, 0.0  ;;  %vm1862_vm8 = vcmp.eq.s32.totalorder %v6577_v50, 1 }
 0x23f   : > { %8495 = vst [vmem:[#allocation57_spill] sm:$0xff] %v6793_v2  ;;  %v6801_v21 = vpop.permute.xlu0 %2541  ;;  %4288 = vmatprep.subr.bf16.mxu1 %v4658_v62  ;;  %v8500_v62 = vld [vmem:[#allocation77_spill] sm:$0xff] }
 0x242   : > { %v6806_v15 = vpop.permute.xlu1 %1502  ;;  %4289 = vmatpush3.bf16.msra.mxu1 %v4659_v0 }
 0x243   : > { %8496 = vst [vmem:[#allocation62_spill] sm:$0xff] %v6806_v15  ;;  %v2147_v15 = vsel %vm2115_vm6, %v8497_v51, 0.0  ;;  %vm1576_vm6 = vcmp.eq.s32.totalorder %v6541_v41, 1 }
 0x244   : > { %v2024_v2 = vpop.permute.xlu0 %2023  ;;  %v1608_v33 = vsel %vm1576_vm6, %v5804_v38, 0.0 }
 0x245   : > { %vm2116_vm9 = vcmp.eq.s32.totalorder %v2024_v2, 1  ;;  %v1603_v2 = vsel %vm1571_vm5, %v8500_v62, 0.0  ;;  %vm1861_vm5 = vcmp.eq.s32.totalorder %v6560_v24, 1  ;;  %v8512_v24 = vld [vmem:[#allocation15_spill] sm:$0xff] }
 0x246   : > { %v2148_v7 = vsel %vm2116_vm9, %v8498_v17, 0.0  ;;  %v1634_v53 = vpack.c.bf16 %v1603_v2, %v1602_v12 }
 0x247   : > { %v6821_v43 = vpop.permute.xlu1 %1797  ;;  %v2179_v18 = vpack.c.bf16 %v2148_v7, %v2147_v15  ;;  %v8504_v7 = vld [vmem:[#allocation30_spill] sm:$0xff] }
 0x248   : > { %8499 = vst [vmem:[#allocation63_spill] sm:$0xff] %v6821_v43  ;;  %v2030_v45 = vpop.permute.xlu0 %2029 }
 0x249   : > { %vm2118_vm12 = vcmp.eq.s32.totalorder %v2030_v45, 1  ;;  %2211 = vrot.lane.b32.xlu1 %v2179_v18, %s4906_s10  ;;  %v8505_v18 = vld [vmem:[#allocation101_spill] sm:$0xff]  ;;  %v8506_v45 = vld [vmem:[#allocation103_spill] sm:$0xff] }
 0x24a   : > { %v2150_v8 = vsel %vm2118_vm12, %v8502_v27, 0.0  ;;  %vm2383_vm12 = vcmp.eq.s32.totalorder %v6707_v57, 1  ;;  %v8516_v57 = vpack.c.bf16 %v6598_v11, %v6595_v26 }
 0x24b   : > { %v2180_v43 = vpack.c.bf16 %v2150_v8, %v2149_v16  ;;  %v2151_v8 = vsel %vm2119_vm7, %v5804_v38, 0.0  ;;  %v8509_v38 = vld [vmem:[#allocation84_spill] sm:$0xff]  ;;  %vm1573_vm7 = vcmp.eq.s32.totalorder %v6718_v37, 1 }
 0x24c   : > { %v2051_v1 = vpop.permute.xlu1 %2050  ;;  %v2036_v61 = vpop.permute.xlu0 %2035 }
 0x24d   : > { %vm2120_vm3 = vcmp.eq.s32.totalorder %v2036_v61, 1  ;;  %1666 = vrot.lane.b32.xlu1 %v1634_v53, %s4908_s12  ;;  %2213 = vrot.lane.b32.xlu0 %v2180_v43, %s4906_s10  ;;  %v1607_v43 = vsel %vm1575_vm1, %v8502_v27, 0.0  ;;  %v1609_v61 = vsel %vm1577_vm15, %v8503_v20, 0.0  ;;  %vm2125_vm11 = vcmp.eq.s32.totalorder %v2051_v1, 1 }
 0x24e   : > { %v2152_v15 = vsel %vm2120_vm3, %v8503_v20, 0.0  ;;  %v1636_v27 = vpack.c.bf16 %v1607_v43, %v1606_v40  ;;  %v8508_v20 = vpack.c.bf16 %v6784_v47, %v6787_v35  ;;  %v1894_v43 = vsel %vm1862_vm8, %v8509_v38, 0.0 }
 0x24f   : > { %v2181_v53 = vpack.c.bf16 %v2152_v15, %v2151_v8  ;;  %v1637_v8 = vpack.c.bf16 %v1609_v61, %v1608_v33  ;;  %v2157_v35 = vsel %vm2125_vm11, %v5932_v5, 0.0  ;;  %v8513_v33 = vld [vmem:[#allocation38_spill] sm:$0xff]  ;;  %vm1572_vm1 = vcmp.eq.s32.totalorder %v6530_v9, 1  ;;  %v8518_v9 = vld [vmem:[#allocation32_spill] sm:$0xff] }
 0x250   : > { %v6838_v16 = vpop.permute.xlu0 %2041  ;;  %vm1583_vm8 = vcmp.eq.s32.totalorder %v6774_v54, 1  ;;  %vm2630_vm11 = vcmp.eq.s32.totalorder %v6801_v21, 1 }
 0x251   : > { %v2307_v0 = vpop.permute.xlu1 %2306  ;;  %1821 = vperm.xlu1 %4598, %v8474_v4   ;;  %2083 = vperm.xlu0 %4593, %v8504_v7  }
 0x252   : > { %vm2381_vm14 = vcmp.eq.s32.totalorder %v2307_v0, 1 }
 0x253   : > { %v6847_v12 = vsel %vm2381_vm14, %v8505_v18, 0.0  ;;  %v8510_v18 = vld [vmem:[#allocation74_spill] sm:$0xff]  ;;  %vm1864_vm14 = vcmp.eq.s32.totalorder %v6603_v46, 1 }
 0x254   : > { %v6857_v15 = vpop.permute.xlu0 %2044  ;;  %v1893_v50 = vsel %vm1861_vm5, %v8510_v18, 0.0 }
 0x255   : > { %v2310_v42 = vpop.permute.xlu1 %2309  ;;  %4599 = vset.pattern.permute.xlu1 %v8459_v22  ;;  %2215 = vrot.lane.b32.xlu0 %v2181_v53, %s4906_s10 }
 0x256   : > { %vm2382_vm13 = vcmp.eq.s32.totalorder %v2310_v42, 1  ;;  %2074 = vperm.xlu1 %4599, %v8507_v52  }
 0x257   : > { %v6850_v2 = vsel %vm2382_vm13, %v8506_v45, 0.0  ;;  %v8511_v45 = vld [vmem:[#allocation36_spill] sm:$0xff]  ;;  %vm1863_vm13 = vcmp.eq.s32.totalorder %v6575_v36, 1 }
 0x258   : > { %v2054_v41 = vpop.permute.xlu0 %2053 }
 0x259   : > { %1670 = vrot.lane.b32.xlu0 %v1636_v27, %s4908_s12  ;;  %vm2126_vm9 = vcmp.eq.s32.totalorder %v2054_v41, 1  ;;  %v1924_v27 = vpack.c.bf16 %v1894_v43, %v1893_v50 }
 0x25a   : > { %v6859_v0 = vpop.permute.xlu1 %1508  ;;  %4600 = vset.pattern.permute.xlu1 %v8457_v28  ;;  %v2158_v40 = vsel %vm2126_vm9, %v5972_v14, 0.0  ;;  %vm2627_vm9 = vcmp.eq.s32.totalorder %v6791_v39, 1 }
 0x25b   : > { %2330 = vperm.xlu1 %4600, %v8507_v52   ;;  %v2184_v47 = vpack.c.bf16 %v2158_v40, %v2157_v35  ;;  %v1604_v35 = vsel %vm1572_vm1, %v8497_v51, 0.0  ;;  %v8519_v51 = vld [vmem:[#allocation34_spill] sm:$0xff]  ;;  %v2659_v62 = vsel %vm2627_vm9, %v8510_v18, 0.0  ;;  %v8525_v18 = vld [vmem:[#allocation40_spill] sm:$0xff]  ;;  %vm2122_vm1 = vcmp.eq.s32.totalorder %v6838_v16, 1 }
 0x25d   : > { %1672 = vrot.lane.b32.xlu0 %v1637_v8, %s4908_s12  ;;  %v8514_v8 = vld [vmem:[#allocation99_spill] sm:$0xff] }
 0x25e   : > { %v6889_v41 = vsel %vm2383_vm12, %v8514_v8, 0.0 }
 0x25f   : > { %v6866_v53 = vpop.permute.xlu1 %1800  ;;  %2333 = vperm.xlu1 %4600, %v8474_v4  }
 0x261   : > { %2475 = vrot.lane.b32.xlu0 %v8508_v20, %s4908_s12  ;;  %v8515_v20 = vld [vmem:[#allocation102_spill] sm:$0xff] }
 0x263   : > { %4601 = vset.pattern.permute.xlu1 %v8461_v25 }
 0x264   : > { %v2057_v42 = vpop.permute.xlu1 %2056  ;;  %1532 = vperm.xlu1 %4601, %v8474_v4  }
 0x265   : > { %2101 = vperm.xlu0 %4593, %v8511_v45   ;;  %vm2127_vm15 = vcmp.eq.s32.totalorder %v2057_v42, 1 }
 0x268   : > { %v2060_v61 = vpop.permute.xlu1 %2059  ;;  %1957 = vrot.lane.b32.xlu1 %v1924_v27, %s4905_s29  ;;  %v1605_v27 = vsel %vm1573_vm7, %v8498_v17, 0.0  ;;  %v8517_v17 = vld [vmem:[#allocation31_spill] sm:$0xff]  ;;  %vm1865_vm7 = vcmp.eq.s32.totalorder %v6680_v63, 1  ;;  %v2154_v63 = vsel %vm2122_vm1, %v5869_v44, 0.0 }
 0x269   : > { %2221 = vrot.lane.b32.xlu0 %v2184_v47, %s4906_s10  ;;  %4602 = vset.pattern.permute.xlu1 %v8476_v10  ;;  %v1635_v47 = vpack.c.bf16 %v1605_v27, %v1604_v35  ;;  %vm2128_vm10 = vcmp.eq.s32.totalorder %v2060_v61, 1  ;;  %v8522_v35 = vld [vmem:[#allocation39_spill] sm:$0xff]  ;;  %v2159_v61 = vsel %vm2127_vm15, %v5968_v48, 0.0 }
 0x26a   : > { %v2160_v8 = vsel %vm2128_vm10, %v8437_v29, 0.0  ;;  %vm2121_vm10 = vcmp.eq.s32.totalorder %v6705_v59, 1 }
 0x26b   : > { %v2185_v36 = vpack.c.bf16 %v2160_v8, %v2159_v61  ;;  %v8527_v8 = vld [vmem:[#allocation35_spill] sm:$0xff] }
 0x26c   : > { %2544 = vperm.xlu1 %4602, %v8512_v24   ;;  %v8520_v24 = vld [vmem:[#allocation37_spill] sm:$0xff] }
 0x26d   : > { %v2316_v1 = vpop.permute.xlu1 %2315  ;;  %2107 = vperm.xlu0 %4593, %v8513_v33  }
 0x26e   : > { %vm2384_vm3 = vcmp.eq.s32.totalorder %v2316_v1, 1 }
 0x26f   : > { %v6892_v43 = vsel %vm2384_vm3, %v8515_v20, 0.0  ;;  %vm1866_vm3 = vcmp.eq.s32.totalorder %v6696_v49, 1  ;;  %v8530_v49 = vld [vmem:[#allocation41_spill] sm:$0xff] }
 0x270   : > { %2469 = vrot.lane.b32.xlu1 %v8516_v57, %s4908_s12  ;;  %v8521_v57 = vld [vmem:[#allocation88_spill] sm:$0xff] }
 0x271   : > { %4623 = vset.pattern.permute.xlu0 %v8455_v6  ;;  %v1896_v27 = vsel %vm1864_vm14, %v8521_v57, 0.0  ;;  %vm1714_vm14 = vcmask 1048320  }
 0x272   : > { %v1512_v50 = vpop.permute.xlu1 %1511  ;;  %1803 = vperm.xlu0 %4623, %v8467_v34  }
 0x273   : > { %vm1582_vm6 = vcmp.eq.s32.totalorder %v1512_v50, 1  ;;  %v1615_v50 = vsel %vm1583_vm8, %v5972_v14, 0.0  ;;  %v2662_v14 = vsel %vm2630_vm11, %v8521_v57, 0.0  ;;  %v8528_v57 = vld [vmem:[#allocation95_spill] sm:$0xff] }
 0x274   : > { %2550 = vperm.xlu1 %4602, %v8452_v19   ;;  %v1614_v40 = vsel %vm1582_vm6, %v5932_v5, 0.0  ;;  %v8524_v5 = vpack.c.bf16 %v6689_v60, %v6686_v23  ;;  %vm2123_vm6 = vcmp.eq.s32.totalorder %v6857_v15, 1 }
 0x275   : > { %v1640_v32 = vpack.c.bf16 %v1615_v50, %v1614_v40  ;;  %v2153_v50 = vsel %vm2121_vm10, %v5843_v13, 0.0 }
 0x276   : > { %1815 = vperm.xlu0 %4623, %v8483_v55   ;;  %v2182_v16 = vpack.c.bf16 %v2154_v63, %v2153_v50  ;;  %v8536_v50 = vld [vmem:[#allocation14_spill] sm:$0xff] }
 0x277   : > { %v6907_v37 = vpop.permute.xlu1 %1806 }
 0x278   : > { %1668 = vrot.lane.b32.xlu1 %v1635_v47, %s4908_s12  ;;  %v8523_v47 = vld [vmem:[#allocation87_spill] sm:$0xff] }
 0x279   : > { %4603 = vset.pattern.permute.xlu1 %v8455_v6  ;;  %v1895_v46 = vsel %vm1863_vm13, %v8523_v47, 0.0 }
 0x27a   : > { %1818 = vperm.xlu0 %4623, %v8507_v52   ;;  %v1925_v42 = vpack.c.bf16 %v1896_v27, %v1895_v46  ;;  %v1898_v27 = vsel %vm1866_vm3, %v8528_v57, 0.0 }
 0x27b   : > { %v6912_v11 = vpop.permute.xlu1 %1809 }
 0x27c   : > { %1827 = vperm.xlu1 %4603, %v8504_v7  }
 0x27e   : > { %1824 = vperm.xlu0 %4623, %v8517_v17  }
 0x280   : > { %v6917_v26 = vpop.permute.xlu1 %2065  ;;  %4604 = vset.pattern.permute.xlu1 %v8459_v22 }
 0x281   : > { %2080 = vperm.xlu1 %4604, %v8517_v17  }
 0x282   : > { %1833 = vperm.xlu0 %4623, %v8518_v9  }
 0x285   : > { %v6922_v19 = vpop.permute.xlu1 %2318  ;;  %4605 = vset.pattern.permute.xlu1 %v8457_v28 }
 0x286   : > { %2336 = vperm.xlu1 %4605, %v8517_v17   ;;  %1839 = vperm.xlu0 %4623, %v8519_v51  }
 0x28a   : > { %v6927_v1 = vpop.permute.xlu1 %1517  ;;  %2339 = vperm.xlu1 %4605, %v8504_v7   ;;  %1842 = vperm.xlu0 %4623, %v8520_v24  }
 0x28e   : > { %v6934_v20 = vpop.permute.xlu1 %1520  ;;  %4606 = vset.pattern.permute.xlu1 %v8461_v25  ;;  %1848 = vperm.xlu0 %4623, %v8522_v35  }
 0x28f   : > { %1538 = vperm.xlu1 %4606, %v8504_v7   ;;  %vm1585_vm3 = vcmp.eq.s32.totalorder %v6934_v20, 1 }
 0x292   : > { %2223 = vrot.lane.b32.xlu0 %v2185_v36, %s4906_s10 }
 0x293   : > { %v2536_v3 = vpop.permute.xlu1 %2535  ;;  %1959 = vrot.lane.b32.xlu1 %v1925_v42, %s4905_s29 }
 0x294   : > { %vm2628_vm5 = vcmp.eq.s32.totalorder %v2536_v3, 1  ;;  %4607 = vset.pattern.permute.xlu1 %v8455_v6 }
 0x295   : > { %v2660_v4 = vsel %vm2628_vm5, %v8509_v38, 0.0 }
 0x296   : > { %v2691_v54 = vpack.c.bf16 %v2660_v4, %v2659_v62  ;;  %1678 = vrot.lane.b32.xlu0 %v1640_v32, %s4908_s12  ;;  %v8526_v32 = vld [vmem:[#allocation33_spill] sm:$0xff] }
 0x297   : > { %v2539_v39 = vpop.permute.xlu1 %2538  ;;  %2471 = vrot.lane.b32.xlu1 %v8524_v5, %s4908_s12  ;;  %v8531_v5 = vld [vmem:[#allocation54_spill] sm:$0xff] }
 0x298   : > { %2707 = vst.msk [vmem:[#allocation2 + $0x10] sm:$0xff] %vm878_vm4, %v2691_v54  ;;  %vm2629_vm12 = vcmp.eq.s32.totalorder %v2539_v39, 1  ;;  %v7001_v54 = vpop.permute.xlu0 %2062 }
 0x299   : > { %v2661_v3 = vsel %vm2629_vm12, %v8523_v47, 0.0  ;;  %v8529_v47 = vld [vmem:[#allocation85_spill] sm:$0xff] }
 0x29a   : > { %v2692_v38 = vpack.c.bf16 %v2662_v14, %v2661_v3  ;;  %1857 = vperm.xlu0 %4623, %v8525_v18   ;;  %v1897_v46 = vsel %vm1865_vm7, %v8529_v47, 0.0  ;;  %v8532_v14 = vpack.c.bf16 %v6724_v56, %v8531_v5  ;;  %vm1584_vm7 = vcmp.eq.s32.totalorder %v6927_v1, 1  ;;  %v8552_v1 = vld [vmem:[#allocation114_spill] sm:$0xff] }
 0x29b   : > { %1830 = vperm.xlu1 %4607, %v8526_v32   ;;  %v1926_v36 = vpack.c.bf16 %v1898_v27, %v1897_v46  ;;  %v1616_v20 = vsel %vm1584_vm7, %v5968_v48, 0.0 }
 0x29c   : > { %2708 = vst.msk [vmem:[#allocation2 + $0x28] sm:$0xff] %vm878_vm4, %v2692_v38  ;;  %v6962_v4 = vpop.permute.xlu1 %1812  ;;  %v2468_v39 = vpop.permute.xlu0 %2467 }
 0x29e   : > { %4627 = vset.pattern.permute.xlu0 %v8457_v28 }
 0x29f   : > { %v2725_v21 = vld [vmem:[#allocation2 + $0x10] sm:$0xff]  ;;  %4608 = vset.pattern.permute.xlu1 %v8459_v22  ;;  %2321 = vperm.xlu0 %4627, %v8475_v31  }
 0x2a0   : > { %4456 = vmatprep.mubr.msk.bf16.mxu0 %vm878_vm4, %v2725_v21  ;;  %2086 = vperm.xlu1 %4608, %v8526_v32  }
 0x2a1   : > { %v6969_v23 = vpop.permute.xlu1 %2068 }
 0x2a2   : > { %vm2131_vm10 = vcmp.eq.s32.totalorder %v6969_v23, 1 }
 0x2a3   : > { %v2728_v60 = vld [vmem:[#allocation2 + $0x28] sm:$0xff]  ;;  %2324 = vperm.xlu0 %4627, %v8481_v58  }
 0x2a4   : > { %4457 = vmatmul.mubr.msk.bf16.vlgmr.msra.gmra.mrb[0].mxu0 %vm878_vm4, %v2728_v60  ;;  %2089 = vperm.xlu1 %4608, %v8518_v9   ;;  %v7019_v60 = vpop.permute.xlu0 %2077 }
 0x2a5   : > { %v6974_v62 = vpop.permute.xlu1 %2071 }
 0x2a6   : > { %vm2132_vm1 = vcmp.eq.s32.totalorder %v6974_v62, 1  ;;  %v8553_v62 = vld [vmem:[#allocation117_spill] sm:$0xff] }
 0x2a7   : > { %2342 = vperm.xlu0 %4627, %v8526_v32  }
 0x2a8   : > { %4609 = vset.pattern.permute.xlu1 %v8457_v28 }
 0x2a9   : > { %2345 = vperm.xlu1 %4609, %v8518_v9  }
 0x2aa   : > { %v6979_v40 = vpop.permute.xlu1 %2327 }
 0x2ab   : > { %2348 = vperm.xlu0 %4627, %v8527_v8  }
 0x2ad   : > { %4610 = vset.pattern.permute.xlu1 %v8461_v25 }
 0x2ae   : > { %1541 = vperm.xlu1 %4610, %v8526_v32  }
 0x2af   : > { %v6988_v61 = vpop.permute.xlu1 %1523  ;;  %2366 = vperm.xlu0 %4627, %v8530_v49  }
 0x2b2   : > { %1961 = vrot.lane.b32.xlu1 %v1926_v36, %s4905_s29 }
 0x2b3   : > { %v1956_v42 = vpop.permute.xlu1 %1955  ;;  %4611 = vset.pattern.permute.xlu1 %v8476_v10  ;;  %4629 = vset.pattern.permute.xlu0 %v8461_v25 }
 0x2b4   : > { %2003 = vst.msk [vmem:[#allocation2 + $0x8] sm:$0xff] %vm1135_vm2, %v1956_v42  ;;  %1526 = vperm.xlu0 %4629, %v8483_v55   ;;  %v8535_v42 = vld [vmem:[#allocation58_spill] sm:$0xff] }
 0x2b5   : > { %vm1868_vm15 = vcmp.eq.s32.totalorder %v8535_v42, 1  ;;  %v8541_v42 = vld [vmem:[#allocation52_spill] sm:$0xff] }
 0x2b6   : > { %2217 = vrot.lane.b32.xlu1 %v2182_v16, %s4906_s10  ;;  %v8537_v16 = vld [vmem:[#allocation53_spill] sm:$0xff]  ;;  %vm2124_vm8 = vcmp.eq.s32.totalorder %v8541_v42, 1 }
 0x2b7   : > { %vm1867_vm13 = vcmp.eq.s32.totalorder %v8537_v16, 1  ;;  %v8542_v16 = vld [vmem:[#allocation96_spill] sm:$0xff]  ;;  %v8547_v42 = vld [vmem:[#allocation121_spill] sm:$0xff] }
 0x2b8   : > { %1529 = vperm.xlu0 %4629, %v8507_v52  }
 0x2ba   : > { %2559 = vperm.xlu1 %4611, %v8458_v30   ;;  %v8533_v30 = vld [vmem:[#allocation20_spill] sm:$0xff] }
 0x2bb   : > { %v2212_v59 = vpop.permute.xlu1 %2211 }
 0x2bc   : > { %2259 = vst.msk [vmem:[#allocation2 + $0x8] sm:$0xff] %vm1457_vm0, %v2212_v59  ;;  %1535 = vperm.xlu0 %4629, %v8517_v17   ;;  %v8544_v17 = vld [vmem:[#allocation19_spill] sm:$0xff] }
 0x2bd   : > { %2515 = vst.msk [vmem:[#allocation2 + $0x8] sm:$0xff] %vm1714_vm14, %v2468_v39  ;;  %v8538_v39 = vld [vmem:[#allocation100_spill] sm:$0xff] }
 0x2be   : > { %2473 = vrot.lane.b32.xlu1 %v8532_v14, %s4908_s12  ;;  %v1900_v5 = vsel %vm1868_vm15, %v8538_v39, 0.0  ;;  %v8539_v14 = vld [vmem:[#allocation16_spill] sm:$0xff]  ;;  %v8549_v39 = vld [vmem:[#allocation21_spill] sm:$0xff] }
 0x2bf   : > { %v1667_v3 = vpop.permute.xlu1 %1666  ;;  %v2214_v56 = vpop.permute.xlu0 %2213 }
 0x2c0   : > { %1715 = vst.msk [vmem:[#allocation2] sm:$0xff] %vm1714_vm14, %v1667_v3  ;;  %1544 = vperm.xlu0 %4629, %v8518_v9   ;;  %v2155_v9 = vsel %vm2123_vm6, %v8542_v16, 0.0 }
 0x2c2   : > { %2565 = vperm.xlu1 %4611, %v8533_v30   ;;  %v8540_v30 = vld [vmem:[#allocation98_spill] sm:$0xff] }
 0x2c4   : > { %v2724_v38 = vld [vmem:[#allocation2 + $0x8] sm:$0xff]  ;;  %1550 = vperm.xlu0 %4629, %v8519_v51  }
 0x2c5   : > { %2995 = vmatprep.mubr.bf16.mxu1 %v2724_v38  ;;  %v1899_v38 = vsel %vm1867_vm13, %v8540_v30, 0.0 }
 0x2c6   : > { %4612 = vset.pattern.permute.xlu1 %v8455_v6 }
 0x2c7   : > { %1836 = vperm.xlu1 %4612, %v8527_v8   ;;  %v2723_v21 = vld [vmem:[#allocation2] sm:$0xff] }
 0x2c8   : > { %2996 = vmatmul.mubr.bf16.vlgmr.msra.gmra.mrb[32].mxu1 %v2723_v21  ;;  %1553 = vperm.xlu0 %4629, %v8520_v24   ;;  %v1927_v21 = vpack.c.bf16 %v1900_v5, %v1899_v38  ;;  %v8546_v5 = vld [vmem:[#allocation57_spill] sm:$0xff] }
 0x2c9   : > { %vm1578_vm12 = vcmp.eq.s32.totalorder %v8546_v5, 1 }
 0x2cb   : > { %4613 = vset.pattern.permute.xlu1 %v8459_v22 }
 0x2cc   : > { %2092 = vperm.xlu1 %4613, %v8527_v8   ;;  %1559 = vperm.xlu0 %4629, %v8522_v35  }
 0x2d0   : > { %v7025_v27 = vpop.permute.xlu1 %1821  ;;  %2095 = vperm.xlu1 %4613, %v8519_v51   ;;  %v7028_v46 = vpop.permute.xlu0 %2083  ;;  %1568 = vperm.xlu0 %4629, %v8525_v18  }
 0x2d1   : > { %8534 = vst [vmem:[#allocation56_spill] sm:$0xff] %v7025_v27 }
 0x2d4   : > { %4614 = vset.pattern.permute.xlu1 %v8457_v28  ;;  %v7032_v36 = vpop.permute.xlu0 %2215  ;;  %4632 = vset.pattern.permute.xlu0 %v8476_v10 }
 0x2d5   : > { %v7035_v63 = vpop.permute.xlu1 %2074  ;;  %2351 = vperm.xlu1 %4614, %v8519_v51   ;;  %2547 = vperm.xlu0 %4632, %v8536_v50  }
 0x2d8   : > { %v1671_v59 = vpop.permute.xlu0 %1670 }
 0x2d9   : > { %1717 = vst.msk [vmem:[#allocation2 + $0x30] sm:$0xff] %vm1714_vm14, %v1671_v59  ;;  %4615 = vset.pattern.permute.xlu1 %v8461_v25  ;;  %2553 = vperm.xlu0 %4632, %v8539_v14   ;;  %v8543_v59 = vld [vmem:[#allocation62_spill] sm:$0xff] }
 0x2da   : > { %v2331_v3 = vpop.permute.xlu1 %2330  ;;  %1547 = vperm.xlu1 %4615, %v8527_v8   ;;  %vm1579_vm5 = vcmp.eq.s32.totalorder %v8543_v59, 1  ;;  %v8545_v14 = vld [vmem:[#allocation94_spill] sm:$0xff] }
 0x2db   : > { %vm2389_vm9 = vcmp.eq.s32.totalorder %v2331_v3, 1  ;;  %v2156_v8 = vsel %vm2124_vm8, %v8545_v14, 0.0  ;;  %v8548_v3 = vld [vmem:[#allocation124_spill] sm:$0xff]  ;;  %vm1581_vm8 = vcmp.eq.s32.totalorder %v6859_v0, 1 }
 0x2dc   : > { %v1673_v50 = vpop.permute.xlu0 %1672  ;;  %v2183_v38 = vpack.c.bf16 %v2156_v8, %v2155_v9  ;;  %v7058_v27 = vsel %vm2389_vm9, %v8547_v42, 0.0 }
 0x2dd   : > { %1718 = vst.msk [vmem:[#allocation2 + $0x48] sm:$0xff] %vm1714_vm14, %v1673_v50  ;;  %2556 = vperm.xlu0 %4632, %v8544_v17   ;;  %v1611_v17 = vsel %vm1579_vm5, %v5869_v44, 0.0 }
 0x2de   : > { %v2334_v15 = vpop.permute.xlu1 %2333  ;;  %1963 = vrot.lane.b32.xlu1 %v1927_v21, %s4905_s29  ;;  %v8559_v21 = vld [vmem:[#allocation23_spill] sm:$0xff] }
 0x2df   : > { %vm2390_vm11 = vcmp.eq.s32.totalorder %v2334_v15, 1  ;;  %4616 = vset.pattern.permute.xlu1 %v8455_v6  ;;  %v1610_v15 = vsel %vm1578_vm12, %v5843_v13, 0.0 }
 0x2e0   : > { %v7061_v50 = vsel %vm2390_vm11, %v8548_v3, 0.0  ;;  %v7063_v59 = vpop.permute.xlu0 %2475  ;;  %v1638_v8 = vpack.c.bf16 %v1611_v17, %v1610_v15  ;;  %v2164_v3 = vsel %vm2132_vm1, %v8552_v1, 0.0  ;;  %v2163_v17 = vsel %vm2131_vm10, %v8553_v62, 0.0 }
 0x2e1   : > { %2562 = vperm.xlu0 %4632, %v8549_v39   ;;  %v2187_v48 = vpack.c.bf16 %v2164_v3, %v2163_v17  ;;  %v8557_v3 = vld [vmem:[#allocation97_spill] sm:$0xff]  ;;  %vm2385_vm11 = vcmp.eq.s32.totalorder %v6922_v19, 1  ;;  %vm1871_vm10 = vcmp.eq.s32.totalorder %v6866_v53, 1  ;;  %v8580_v53 = vld [vmem:[#allocation135_spill] sm:$0xff] }
 0x2e2   : > { %2219 = vrot.lane.b32.xlu1 %v2183_v38, %s4906_s10 }
 0x2e3   : > { %v7071_v9 = vpop.permute.xlu1 %1532 }
 0x2e4   : > { %v7073_v5 = vpop.permute.xlu0 %2101 }
 0x2e5   : > { %2571 = vperm.xlu0 %4632, %v8467_v34  }
 0x2e6   : > { %1674 = vrot.lane.b32.xlu1 %v1638_v8, %s4908_s12  ;;  %v8554_v8 = vld [vmem:[#allocation63_spill] sm:$0xff] }
 0x2e7   : > { %v1958_v42 = vpop.permute.xlu1 %1957  ;;  %vm1870_vm15 = vcmp.eq.s32.totalorder %v8554_v8, 1 }
 0x2e8   : > { %2004 = vst.msk [vmem:[#allocation2 + $0x20] sm:$0xff] %vm1135_vm2, %v1958_v42  ;;  %v7078_v44 = vpop.permute.xlu0 %2221  ;;  %v8555_v42 = vld [vmem:[#allocation49_spill] sm:$0xff] }
 0x2e9   : > { %8550 = vst [vmem:[#allocation66_spill] sm:$0xff] %v7078_v44  ;;  %2260 = vst.msk [vmem:[#allocation2 + $0x20] sm:$0xff] %vm1457_vm0, %v2214_v56  ;;  %2577 = vperm.xlu0 %4632, %v8475_v31   ;;  %v1617_v31 = vsel %vm1585_vm3, %v8437_v29, 0.0  ;;  %vm1869_vm13 = vcmp.eq.s32.totalorder %v8555_v42, 1  ;;  %vm2388_vm3 = vcmp.eq.s32.totalorder %v6979_v40, 1 }
 0x2ea   : > { %1845 = vperm.xlu1 %4616, %v8511_v45   ;;  %v1641_v38 = vpack.c.bf16 %v1617_v31, %v1616_v20  ;;  %v8556_v31 = vld [vmem:[#allocation105_spill] sm:$0xff]  ;;  %v1901_v17 = vsel %vm1869_vm13, %v8557_v3, 0.0 }
 0x2eb   : > { %v7083_v13 = vpop.permute.xlu1 %2544  ;;  %v1902_v20 = vsel %vm1870_vm15, %v8556_v31, 0.0 }
 0x2ec   : > { %v7085_v39 = vpop.permute.xlu0 %2107 }
 0x2ed   : > { %8551 = vst [vmem:[#allocation67_spill] sm:$0xff] %v7085_v39  ;;  %2580 = vperm.xlu0 %4632, %v8481_v58  }
 0x2ee   : > { %4617 = vset.pattern.permute.xlu1 %v8459_v22 }
 0x2ef   : > { %v2470_v34 = vpop.permute.xlu1 %2469  ;;  %2098 = vperm.xlu1 %4617, %v8520_v24  }
 0x2f0   : > { %2516 = vst.msk [vmem:[#allocation2 + $0x20] sm:$0xff] %vm1714_vm14, %v2470_v34 }
 0x2f1   : > { %v7094_v56 = vpop.permute.xlu0 %1803  ;;  %2586 = vperm.xlu0 %4632, %v8507_v52  }
 0x2f2   : > { %vm1872_vm7 = vcmp.eq.s32.totalorder %v7094_v56, 1  ;;  %v8578_v56 = vld [vmem:[#allocation108_spill] sm:$0xff] }
 0x2f3   : > { %v7099_v58 = vpop.permute.xlu1 %2550  ;;  %4618 = vset.pattern.permute.xlu1 %v8457_v28 }
 0x2f4   : > { %2354 = vperm.xlu1 %4618, %v8520_v24  }
 0x2f5   : > { %v7105_v29 = vpop.permute.xlu0 %1815  ;;  %1680 = vrot.lane.b32.xlu0 %v1641_v38, %s4908_s12 }
 0x2f7   : > { %v1669_v52 = vpop.permute.xlu1 %1668  ;;  %v2727_v15 = vld [vmem:[#allocation2 + $0x20] sm:$0xff] }
 0x2f8   : > { %1716 = vst.msk [vmem:[#allocation2 + $0x18] sm:$0xff] %vm1714_vm14, %v1669_v52  ;;  %2357 = vperm.xlu1 %4618, %v8511_v45   ;;  %3003 = vmatprep.mubr.bf16.mxu1 %v2727_v15  ;;  %v1928_v52 = vpack.c.bf16 %v1902_v20, %v1901_v17  ;;  %v8561_v20 = vpack.c.bf16 %v6850_v2, %v6847_v12 }
 0x2f9   : > { %v7112_v23 = vpop.permute.xlu0 %1818  ;;  %2227 = vrot.lane.b32.xlu0 %v2187_v48, %s4906_s10 }
 0x2fb   : > { %v7116_v34 = vpop.permute.xlu1 %1827 }
 0x2fc   : > { %4619 = vset.pattern.permute.xlu1 %v8461_v25 }
 0x2fd   : > { %1556 = vperm.xlu1 %4619, %v8511_v45   ;;  %v7121_v38 = vpop.permute.xlu0 %1824 }
 0x2ff   : > { %v2726_v15 = vld [vmem:[#allocation2 + $0x18] sm:$0xff] }
 0x300   : > { %v7124_v8 = vpop.permute.xlu1 %2080  ;;  %3004 = vmatmul.mubr.bf16.gmra.mrb[36].mxu1 %v2726_v15  ;;  %v8564_v15 = vld [vmem:[#allocation119_spill] sm:$0xff] }
 0x301   : > { %1965 = vrot.lane.b32.xlu1 %v1928_v52, %s4905_s29  ;;  %v7127_v48 = vpop.permute.xlu0 %1833  ;;  %v8563_v52 = vld [vmem:[#allocation59_spill] sm:$0xff] }
 0x302   : > { %8558 = vst [vmem:[#allocation60_spill] sm:$0xff] %v7127_v48  ;;  %4620 = vset.pattern.permute.xlu1 %v8476_v10  ;;  %vm1580_vm5 = vcmp.eq.s32.totalorder %v8563_v52, 1 }
 0x303   : > { %v1612_v2 = vsel %vm1580_vm5, %v8542_v16, 0.0  ;;  %vm2133_vm5 = vcmp.eq.s32.totalorder %v7035_v63, 1  ;;  %v8588_v63 = vld [vmem:[#allocation129_spill] sm:$0xff] }
 0x305   : > { %v2337_v42 = vpop.permute.xlu1 %2336  ;;  %2568 = vperm.xlu1 %4620, %v8559_v21   ;;  %v7131_v39 = vpop.permute.xlu0 %1839  ;;  %v8566_v21 = vld [vmem:[#allocation123_spill] sm:$0xff] }
 0x306   : > { %8560 = vst [vmem:[#allocation61_spill] sm:$0xff] %v7131_v39  ;;  %vm2391_vm6 = vcmp.eq.s32.totalorder %v2337_v42, 1  ;;  %v1613_v42 = vsel %vm1581_vm8, %v8545_v14, 0.0  ;;  %v8568_v39 = vld [vmem:[#allocation25_spill] sm:$0xff] }
 0x307   : > { %v7142_v44 = vsel %vm2391_vm6, %v8564_v15, 0.0 }
 0x308   : > { %8565 = vst [vmem:[#allocation43_spill] sm:$0xff] %v7142_v44 }
 0x309   : > { %v2340_v45 = vpop.permute.xlu1 %2339  ;;  %2477 = vrot.lane.b32.xlu1 %v8561_v20, %s4908_s12  ;;  %v7138_v17 = vpop.permute.xlu0 %1842  ;;  %v1639_v20 = vpack.c.bf16 %v1613_v42, %v1612_v2 }
 0x30a   : > { %8562 = vst [vmem:[#allocation65_spill] sm:$0xff] %v7138_v17  ;;  %vm2392_vm9 = vcmp.eq.s32.totalorder %v2340_v45, 1 }
 0x30b   : > { %v7145_v48 = vsel %vm2392_vm9, %v8566_v21, 0.0  ;;  %vm1586_vm9 = vcmp.eq.s32.totalorder %v6988_v61, 1 }
 0x30c   : > { %8567 = vst [vmem:[#allocation64_spill] sm:$0xff] %v7145_v48 }
 0x30d   : > { %2574 = vperm.xlu1 %4620, %v8568_v39   ;;  %v7151_v12 = vpop.permute.xlu0 %1848 }
 0x30e   : > { %8569 = vst [vmem:[#allocation104_spill] sm:$0xff] %v7151_v12  ;;  %v7154_v45 = vpop.permute.xlu1 %1538 }
 0x311   : > { %1676 = vrot.lane.b32.xlu1 %v1639_v20, %s4908_s12  ;;  %v7157_v52 = vpop.permute.xlu0 %2223  ;;  %v2729_v20 = vld [vmem:[#allocation2 + $0x30] sm:$0xff] }
 0x312   : > { %8570 = vst [vmem:[#allocation44_spill] sm:$0xff] %v7157_v52  ;;  %v1960_v15 = vpop.permute.xlu1 %1959  ;;  %4621 = vset.pattern.permute.xlu1 %v8455_v6 }
 0x313   : > { %2005 = vst.msk [vmem:[#allocation2 + $0x38] sm:$0xff] %vm1135_vm2, %v1960_v15  ;;  %v8573_v15 = vld [vmem:[#allocation109_spill] sm:$0xff] }
 0x314   : > { %2261 = vst.msk [vmem:[#allocation2 + $0x38] sm:$0xff] %vm1457_vm0, %v7032_v36 }
 0x315   : > { %1851 = vperm.xlu1 %4621, %v8513_v33   ;;  %v1679_v14 = vpop.permute.xlu0 %1678 }
 0x316   : > { %1721 = vst.msk [vmem:[#allocation2 + $0x90] sm:$0xff] %vm1714_vm14, %v1679_v14  ;;  %v2472_v16 = vpop.permute.xlu1 %2471  ;;  %v7178_v14 = vsel %vm2385_vm11, %v8573_v15, 0.0 }
 0x317   : > { %2517 = vst.msk [vmem:[#allocation2 + $0x38] sm:$0xff] %vm1714_vm14, %v2472_v16  ;;  %v8574_v16 = vld [vmem:[#allocation112_spill] sm:$0xff] }
 0x319   : > { %4622 = vset.pattern.permute.xlu1 %v8459_v22  ;;  %v7167_v39 = vpop.permute.xlu0 %1857 }
 0x31a   : > { %8571 = vst [vmem:[#allocation17_spill] sm:$0xff] %v7167_v39  ;;  %v7169_v21 = vpop.permute.xlu1 %1830  ;;  %2104 = vperm.xlu1 %4622, %v8522_v35  }
 0x31b   : > { %8572 = vst [vmem:[#allocation18_spill] sm:$0xff] %v7169_v21 }
 0x31e   : > { %4624 = vset.pattern.permute.xlu1 %v8457_v28  ;;  %v2730_v36 = vld [vmem:[#allocation2 + $0x38] sm:$0xff]  ;;  %v2322_v42 = vpop.permute.xlu0 %2321 }
 0x31f   : > { %v7174_v2 = vpop.permute.xlu1 %2086  ;;  %2360 = vperm.xlu1 %4624, %v8522_v35   ;;  %3011 = vmatprep.mubr.bf16.mxu1 %v2730_v36  ;;  %vm2386_vm12 = vcmp.eq.s32.totalorder %v2322_v42, 1  ;;  %v8575_v36 = vld [vmem:[#allocation111_spill] sm:$0xff] }
 0x320   : > { %3012 = vmatmul.mubr.bf16.gmra.mrb[40].mxu1 %v2729_v20  ;;  %v7181_v0 = vsel %vm2386_vm12, %v8574_v16, 0.0  ;;  %v7191_v42 = vsel %vm2388_vm3, %v8575_v36, 0.0  ;;  %v8576_v20 = vld [vmem:[#allocation107_spill] sm:$0xff]  ;;  %v8577_v16 = vld [vmem:[#allocation110_spill] sm:$0xff]  ;;  %v8579_v36 = vld [vmem:[#allocation132_spill] sm:$0xff]  ;;  %vm2134_vm12 = vcmp.eq.s32.totalorder %v7019_v60, 1 }
 0x321   : > { %v1904_v19 = vsel %vm1872_vm7, %v8577_v16, 0.0  ;;  %vm1874_vm7 = vcmp.eq.s32.totalorder %v6912_v11, 1  ;;  %v2732_v11 = vld [vmem:[#allocation2 + $0x48] sm:$0xff] }
 0x322   : > { %v2325_v39 = vpop.permute.xlu0 %2324 }
 0x323   : > { %v7186_v52 = vpop.permute.xlu1 %2089  ;;  %2363 = vperm.xlu1 %4624, %v8513_v33   ;;  %vm2387_vm1 = vcmp.eq.s32.totalorder %v2325_v39, 1  ;;  %v1903_v39 = vsel %vm1871_vm10, %v8578_v56, 0.0  ;;  %vm1873_vm10 = vcmp.eq.s32.totalorder %v6907_v37, 1 }
 0x324   : > { %v7194_v15 = vsel %vm2387_vm1, %v8576_v20, 0.0  ;;  %v1929_v20 = vpack.c.bf16 %v1904_v19, %v1903_v39  ;;  %v8583_v19 = vld [vmem:[#allocation70_spill] sm:$0xff]  ;;  %vm1589_vm1 = vcmp.eq.s32.totalorder %v7071_v9, 1 }
 0x326   : > { %v2343_v12 = vpop.permute.xlu0 %2342 }
 0x327   : > { %4625 = vset.pattern.permute.xlu1 %v8461_v25  ;;  %vm2393_vm15 = vcmp.eq.s32.totalorder %v2343_v12, 1  ;;  %v8581_v12 = vld [vmem:[#allocation130_spill] sm:$0xff] }
 0x328   : > { %v2346_v35 = vpop.permute.xlu1 %2345  ;;  %1562 = vperm.xlu1 %4625, %v8513_v33   ;;  %v7204_v17 = vsel %vm2393_vm15, %v8579_v36, 0.0  ;;  %vm2135_vm15 = vcmp.eq.s32.totalorder %v7124_v8, 1 }
 0x329   : > { %vm2394_vm13 = vcmp.eq.s32.totalorder %v2346_v35, 1  ;;  %v8582_v35 = vpack.c.bf16 %v6892_v43, %v6889_v41 }
 0x32a   : > { %v7207_v44 = vsel %vm2394_vm13, %v8580_v53, 0.0  ;;  %v2349_v48 = vpop.permute.xlu0 %2348  ;;  %v8585_v53 = vld [vmem:[#allocation113_spill] sm:$0xff]  ;;  %vm2130_vm13 = vcmp.eq.s32.totalorder %v6917_v26, 1  ;;  %v8592_v26 = vld [vmem:[#allocation126_spill] sm:$0xff] }
 0x32b   : > { %vm2395_vm6 = vcmp.eq.s32.totalorder %v2349_v48, 1 }
 0x32c   : > { %1967 = vrot.lane.b32.xlu1 %v1929_v20, %s4905_s29  ;;  %v7213_v21 = vsel %vm2395_vm6, %v8581_v12, 0.0  ;;  %v1618_v12 = vsel %vm1586_vm9, %v8585_v53, 0.0  ;;  %vm2136_vm6 = vcmp.eq.s32.totalorder %v7028_v46, 1 }
 0x32d   : > { %v7215_v33 = vpop.permute.xlu1 %1541  ;;  %4626 = vset.pattern.permute.xlu1 %v8455_v6  ;;  %v2168_v46 = vsel %vm2136_vm6, %v8592_v26, 0.0 }
 0x32e   : > { %v2367_v36 = vpop.permute.xlu0 %2366 }
 0x32f   : > { %vm2401_vm8 = vcmp.eq.s32.totalorder %v2367_v36, 1  ;;  %v8586_v36 = vld [vmem:[#allocation118_spill] sm:$0xff] }
 0x330   : > { %2479 = vrot.lane.b32.xlu1 %v8582_v35, %s4908_s12  ;;  %v7223_v39 = vsel %vm2401_vm8, %v8583_v19, 0.0  ;;  %v8587_v35 = vld [vmem:[#allocation125_spill] sm:$0xff]  ;;  %vm2129_vm8 = vcmp.eq.s32.totalorder %v7001_v54, 1 }
 0x331   : > { %8584 = vst [vmem:[#allocation11_spill] sm:$0xff] %v7223_v39  ;;  %v1962_v48 = vpop.permute.xlu1 %1961  ;;  %v2165_v19 = vsel %vm2133_vm5, %v8587_v35, 0.0  ;;  %vm1591_vm5 = vcmp.eq.s32.totalorder %v7154_v45, 1 }
 0x332   : > { %2006 = vst.msk [vmem:[#allocation2 + $0x50] sm:$0xff] %vm1135_vm2, %v1962_v48 }
 0x333   : > { %v1527_v20 = vpop.permute.xlu0 %1526 }
 0x334   : > { %1854 = vperm.xlu1 %4626, %v8530_v49   ;;  %vm1587_vm11 = vcmp.eq.s32.totalorder %v1527_v20, 1  ;;  %v2166_v20 = vsel %vm2134_vm12, %v8588_v63, 0.0  ;;  %vm2137_vm12 = vcmp.eq.s32.totalorder %v7174_v2, 1 }
 0x335   : > { %v2218_v6 = vpop.permute.xlu1 %2217  ;;  %v1619_v41 = vsel %vm1587_vm11, %v8586_v36, 0.0  ;;  %v2188_v40 = vpack.c.bf16 %v2166_v20, %v2165_v19  ;;  %vm2138_vm11 = vcmp.eq.s32.totalorder %v7186_v52, 1 }
 0x336   : > { %2262 = vst.msk [vmem:[#allocation2 + $0x50] sm:$0xff] %vm1457_vm0, %v2218_v6  ;;  %v1642_v43 = vpack.c.bf16 %v1619_v41, %v1618_v12  ;;  %v8589_v41 = vld [vmem:[#allocation115_spill] sm:$0xff] }
 0x337   : > { %v1530_v48 = vpop.permute.xlu0 %1529 }
 0x338   : > { %4628 = vset.pattern.permute.xlu1 %v8459_v22  ;;  %1682 = vrot.lane.b32.xlu0 %v1642_v43, %s4908_s12  ;;  %vm1588_vm3 = vcmp.eq.s32.totalorder %v1530_v48, 1  ;;  %v1906_v43 = vsel %vm1874_vm7, %v8589_v41, 0.0 }
 0x339   : > { %v7236_v61 = vpop.permute.xlu1 %2559  ;;  %2110 = vperm.xlu1 %4628, %v8530_v49  }
 0x33b   : > { %v1536_v39 = vpop.permute.xlu0 %1535 }
 0x33c   : > { %2229 = vrot.lane.b32.xlu0 %v2188_v40, %s4906_s10  ;;  %v1620_v40 = vsel %vm1588_vm3, %v8553_v62, 0.0  ;;  %v8591_v62 = vld [vmem:[#allocation128_spill] sm:$0xff]  ;;  %vm1590_vm9 = vcmp.eq.s32.totalorder %v1536_v39, 1  ;;  %vm2631_vm3 = vcmp.eq.s32.totalorder %v7083_v13, 1  ;;  %v8596_v13 = vpack.c.bf16 %v7181_v0, %v7178_v14 }
 0x33d   : > { %v2474_v6 = vpop.permute.xlu1 %2473  ;;  %2113 = vperm.xlu1 %4628, %v8525_v18   ;;  %v2167_v8 = vsel %vm2135_vm15, %v8591_v62, 0.0  ;;  %vm2633_vm15 = vcmp.eq.s32.totalorder %v7099_v58, 1  ;;  %v8598_v0 = vld [vmem:[#allocation100_spill] sm:$0xff] }
 0x33e   : > { %2518 = vst.msk [vmem:[#allocation2 + $0x50] sm:$0xff] %vm1714_vm14, %v2474_v6  ;;  %v2189_v20 = vpack.c.bf16 %v2168_v46, %v2167_v8  ;;  %v2663_v8 = vsel %vm2631_vm3, %v8529_v47, 0.0  ;;  %v8597_v46 = vld [vmem:[#allocation122_spill] sm:$0xff]  ;;  %v8599_v14 = vld [vmem:[#allocation28_spill] sm:$0xff] }
 0x33f   : > { %v7243_v60 = vpop.permute.xlu0 %1544 }
 0x340   : > { %2595 = vperm.xlu0 %4632, %v8504_v7   ;;  %vm1593_vm6 = vcmp.eq.s32.totalorder %v7243_v60, 1 }
 0x341   : > { %v7246_v22 = vpop.permute.xlu1 %2565  ;;  %4630 = vset.pattern.permute.xlu1 %v8457_v28  ;;  %v1621_v28 = vsel %vm1589_vm1, %v8552_v1, 0.0 }
 0x342   : > { %2369 = vperm.xlu1 %4630, %v8525_v18   ;;  %v1643_v37 = vpack.c.bf16 %v1621_v28, %v1620_v40  ;;  %v2161_v40 = vsel %vm2129_vm8, %v8585_v53, 0.0  ;;  %v8593_v53 = vld [vmem:[#allocation140_spill] sm:$0xff] }
 0x343   : > { %v7253_v12 = vpop.permute.xlu0 %1550  ;;  %v2170_v28 = vsel %vm2138_vm11, %v8593_v53, 0.0 }
 0x344   : > { %2598 = vperm.xlu0 %4632, %v8526_v32   ;;  %v8590_v32 = vld [vmem:[#allocation106_spill] sm:$0xff] }
 0x345   : > { %v2733_v7 = vld [vmem:[#allocation2 + $0x50] sm:$0xff]  ;;  %v1905_v9 = vsel %vm1873_vm10, %v8590_v32, 0.0  ;;  %vm1876_vm10 = vcmp.eq.s32.totalorder %v7105_v29, 1 }
 0x346   : > { %v7260_v19 = vpop.permute.xlu1 %1836  ;;  %4631 = vset.pattern.permute.xlu1 %v8461_v25  ;;  %3019 = vmatprep.mubr.bf16.mxu1 %v2733_v7  ;;  %v1930_v1 = vpack.c.bf16 %v1906_v43, %v1905_v9  ;;  %v2162_v25 = vsel %vm2130_vm13, %v8586_v36, 0.0  ;;  %v1622_v7 = vsel %vm1590_vm9, %v8587_v35, 0.0  ;;  %v1623_v36 = vsel %vm1591_vm5, %v8588_v63, 0.0  ;;  %v8595_v63 = vld [vmem:[#allocation134_spill] sm:$0xff] }
 0x347   : > { %1565 = vperm.xlu1 %4631, %v8530_v49   ;;  %3020 = vmatmul.mubr.bf16.gmra.mrb[44].mxu1 %v2732_v11  ;;  %v7268_v48 = vpop.permute.xlu0 %1553  ;;  %v2186_v39 = vpack.c.bf16 %v2162_v25, %v2161_v40  ;;  %v1644_v45 = vpack.c.bf16 %v1623_v36, %v1622_v7  ;;  %vm1875_vm13 = vcmp.eq.s32.totalorder %v6962_v4, 1  ;;  %vm1592_vm9 = vcmp.eq.s32.totalorder %v7215_v33, 1  ;;  %v8600_v4 = vld [vmem:[#allocation120_spill] sm:$0xff] }
 0x348   : > { %1684 = vrot.lane.b32.xlu0 %v1643_v37, %s4908_s12  ;;  %v1907_v40 = vsel %vm1875_vm13, %v8600_v4, 0.0  ;;  %vm2636_vm5 = vcmp.eq.s32.totalorder %v7236_v61, 1  ;;  %v1624_v33 = vsel %vm1592_vm9, %v8591_v62, 0.0  ;;  %v8602_v62 = vld [vmem:[#allocation56_spill] sm:$0xff]  ;;  %vm1879_vm9 = vcmp.eq.s32.totalorder %v7121_v38, 1  ;;  %v8613_v38 = vld [vmem:[#allocation138_spill] sm:$0xff] }
 0x34b   : > { %v7275_v6 = vpop.permute.xlu1 %2092  ;;  %1969 = vrot.lane.b32.xlu1 %v1930_v1, %s4905_s29  ;;  %v7280_v54 = vpop.permute.xlu0 %1559 }
 0x34c   : > { %4633 = vset.pattern.permute.xlu1 %v8476_v10  ;;  %2231 = vrot.lane.b32.xlu0 %v2189_v20, %s4906_s10  ;;  %v8594_v10 = vld [vmem:[#allocation136_spill] sm:$0xff]  ;;  %v1908_v20 = vsel %vm1876_vm10, %v8597_v46, 0.0  ;;  %vm1878_vm10 = vcmp.eq.s32.totalorder %v8602_v62, 1 }
 0x34d   : > { %v2169_v11 = vsel %vm2137_vm12, %v8594_v10, 0.0  ;;  %v1931_v7 = vpack.c.bf16 %v1908_v20, %v1907_v40  ;;  %vm1877_vm12 = vcmp.eq.s32.totalorder %v7112_v23, 1  ;;  %v8605_v23 = vpack.c.bf16 %v7191_v42, %v7194_v15 }
 0x34e   : > { %v2190_v37 = vpack.c.bf16 %v2170_v28, %v2169_v11  ;;  %v8608_v40 = vpack.c.bf16 %v7061_v50, %v7058_v27 }
 0x34f   : > { %v2096_v43 = vpop.permute.xlu1 %2095  ;;  %2225 = vrot.lane.b32.xlu1 %v2186_v39, %s4906_s10  ;;  %v7289_v35 = vpop.permute.xlu0 %1568 }
 0x350   : > { %1686 = vrot.lane.b32.xlu0 %v1644_v45, %s4908_s12  ;;  %vm2140_vm11 = vcmp.eq.s32.totalorder %v2096_v43, 1 }
 0x353   : > { %2583 = vperm.xlu1 %4633, %v8483_v55  }
 0x354   : > { %v2352_v52 = vpop.permute.xlu1 %2351  ;;  %2233 = vrot.lane.b32.xlu0 %v2190_v37, %s4906_s10  ;;  %v2548_v2 = vpop.permute.xlu0 %2547  ;;  %v8603_v37 = vld [vmem:[#allocation116_spill] sm:$0xff] }
 0x355   : > { %vm2396_vm7 = vcmp.eq.s32.totalorder %v2352_v52, 1  ;;  %vm2632_vm1 = vcmp.eq.s32.totalorder %v2548_v2, 1 }
 0x356   : > { %v7297_v9 = vsel %vm2396_vm7, %v8595_v63, 0.0  ;;  %v2664_v55 = vsel %vm2632_vm1, %v8528_v57, 0.0  ;;  %v2665_v57 = vsel %vm2633_vm15, %v8540_v30, 0.0  ;;  %v2668_v30 = vsel %vm2636_vm5, %v8556_v31, 0.0 }
 0x357   : > { %v2447_v1 = vpack.c.bf16 %v7297_v9, %v7213_v21  ;;  %2481 = vrot.lane.b32.xlu1 %v8596_v13, %s4908_s12  ;;  %v2693_v25 = vpack.c.bf16 %v2664_v55, %v2663_v8  ;;  %vm2139_vm7 = vcmp.eq.s32.totalorder %v7275_v6, 1  ;;  %vm2638_vm1 = vcmp.eq.s32.totalorder %v7246_v22, 1  ;;  %v8606_v8 = vld [vmem:[#allocation127_spill] sm:$0xff] }
 0x358   : > { %2607 = vperm.xlu0 %4632, %v8519_v51   ;;  %v2554_v47 = vpop.permute.xlu0 %2553  ;;  %v1625_v51 = vsel %vm1593_vm6, %v8592_v26, 0.0  ;;  %v1909_v6 = vsel %vm1877_vm12, %v8603_v37, 0.0  ;;  %v2670_v22 = vsel %vm2638_vm1, %v8577_v16, 0.0  ;;  %vm1595_vm6 = vcmp.eq.s32.totalorder %v7253_v12, 1  ;;  %v8636_v21 = vld [vmem:[#allocation147_spill] sm:$0xff] }
 0x359   : > { %v1548_v29 = vpop.permute.xlu1 %1547  ;;  %2709 = vst.msk [vmem:[#allocation2 + $0x40] sm:$0xff] %vm878_vm4, %v2693_v25  ;;  %vm2634_vm8 = vcmp.eq.s32.totalorder %v2554_v47, 1  ;;  %v1645_v61 = vpack.c.bf16 %v1625_v51, %v1624_v33  ;;  %v1910_v55 = vsel %vm1878_vm10, %v8606_v8, 0.0  ;;  %v1627_v47 = vsel %vm1595_vm6, %v8593_v53, 0.0  ;;  %v8607_v53 = vld [vmem:[#allocation31_spill] sm:$0xff]  ;;  %v8609_v51 = vld [vmem:[#allocation149_spill] sm:$0xff] }
 0x35a   : > { %v2666_v58 = vsel %vm2634_vm8, %v8598_v0, 0.0  ;;  %vm1594_vm15 = vcmp.eq.s32.totalorder %v1548_v29, 1  ;;  %v1932_v12 = vpack.c.bf16 %v1910_v55, %v1909_v6  ;;  %vm2142_vm8 = vcmp.eq.s32.totalorder %v7073_v5, 1  ;;  %v8611_v33 = vld [vmem:[#allocation131_spill] sm:$0xff]  ;;  %v8616_v6 = vld [vmem:[#allocation60_spill] sm:$0xff]  ;;  %v8619_v55 = vld [vmem:[#allocation133_spill] sm:$0xff] }
 0x35b   : > { %2589 = vperm.xlu1 %4633, %v8599_v14   ;;  %v2694_v60 = vpack.c.bf16 %v2666_v58, %v2665_v57  ;;  %v1626_v16 = vsel %vm1594_vm15, %v8594_v10, 0.0  ;;  %vm1882_vm1 = vcmp.eq.s32.totalorder %v8616_v6, 1  ;;  %vm1596_vm10 = vcmp.eq.s32.totalorder %v7268_v48, 1  ;;  %v4661_v6 = vld [vmem:[#allocation4 + $0x8] sm:$0xff]  }
 0x35c   : > { %2610 = vperm.xlu0 %4632, %v8520_v24   ;;  %v2557_v39 = vpop.permute.xlu0 %2556  ;;  %v8601_v24 = vld [vmem:[#allocation137_spill] sm:$0xff]  ;;  %v1646_v42 = vpack.c.bf16 %v1627_v47, %v1626_v16  ;;  %v8623_v47 = vld [vmem:[#allocation144_spill] sm:$0xff] }
 0x35d   : > { %v1964_v36 = vpop.permute.xlu1 %1963  ;;  %2710 = vst.msk [vmem:[#allocation2 + $0x58] sm:$0xff] %vm878_vm4, %v2694_v60  ;;  %vm2635_vm3 = vcmp.eq.s32.totalorder %v2557_v39, 1  ;;  %v2172_v45 = vsel %vm2140_vm11, %v8601_v24, 0.0  ;;  %v2174_v60 = vsel %vm2142_vm8, %v8609_v51, 0.0  ;;  %vm1880_vm11 = vcmp.eq.s32.totalorder %v7116_v34, 1  ;;  %v8614_v34 = vld [vmem:[#allocation18_spill] sm:$0xff] }
 0x35e   : > { %2007 = vst.msk [vmem:[#allocation2 + $0x68] sm:$0xff] %vm1135_vm2, %v1964_v36  ;;  %v2667_v26 = vsel %vm2635_vm3, %v8557_v3, 0.0  ;;  %v8604_v3 = vld [vmem:[#allocation139_spill] sm:$0xff]  ;;  %vm1881_vm3 = vcmp.eq.s32.totalorder %v8614_v34, 1  ;;  %vm1883_vm8 = vcmp.eq.s32.totalorder %v7260_v19, 1  ;;  %v8630_v19 = vld [vmem:[#allocation46_spill] sm:$0xff] }
 0x35f   : > { %1971 = vrot.lane.b32.xlu1 %v1931_v7, %s4905_s29  ;;  %v2695_v43 = vpack.c.bf16 %v2668_v30, %v2667_v26  ;;  %v2171_v52 = vsel %vm2139_vm7, %v8604_v3, 0.0  ;;  %v8610_v7 = vld [vmem:[#allocation42_spill] sm:$0xff]  ;;  %v1911_v30 = vsel %vm1879_vm9, %v8611_v33, 0.0  ;;  %v8612_v26 = vld [vmem:[#allocation32_spill] sm:$0xff]  ;;  %v1913_v16 = vsel %vm1881_vm3, %v8619_v55, 0.0 }
 0x360   : > { %1688 = vrot.lane.b32.xlu0 %v1645_v61, %s4908_s12  ;;  %v2563_v28 = vpop.permute.xlu0 %2562  ;;  %v2731_v31 = vld [vmem:[#allocation2 + $0x40] sm:$0xff]  ;;  %v2191_v2 = vpack.c.bf16 %v2172_v45, %v2171_v52  ;;  %v1912_v45 = vsel %vm1880_vm11, %v8613_v38, 0.0  ;;  %v8617_v52 = vld [vmem:[#allocation143_spill] sm:$0xff] }
 0x361   : > { %v2220_v11 = vpop.permute.xlu1 %2219  ;;  %2711 = vst.msk [vmem:[#allocation2 + $0x70] sm:$0xff] %vm878_vm4, %v2695_v43  ;;  %vm2637_vm13 = vcmp.eq.s32.totalorder %v2563_v28, 1  ;;  %4460 = vmatprep.mubr.msk.bf16.mxu0 %vm878_vm4, %v2731_v31  ;;  %v1933_v27 = vpack.c.bf16 %v1912_v45, %v1911_v30  ;;  %v8627_v30 = vld [vmem:[#allocation61_spill] sm:$0xff] }
 0x362   : > { %2263 = vst.msk [vmem:[#allocation2 + $0x68] sm:$0xff] %vm1457_vm0, %v2220_v11  ;;  %v2669_v63 = vsel %vm2637_vm13, %v8578_v56, 0.0  ;;  %v8615_v11 = vld [vmem:[#allocation38_spill] sm:$0xff]  ;;  %vm1884_vm9 = vcmp.eq.s32.totalorder %v8627_v30, 1  ;;  %v8639_v30 = vld [vmem:[#allocation104_spill] sm:$0xff] }
 0x363   : > { %2519 = vst.msk [vmem:[#allocation2 + $0x68] sm:$0xff] %vm1714_vm14, %v7063_v59  ;;  %2483 = vrot.lane.b32.xlu1 %v8605_v23, %s4908_s12  ;;  %v2696_v13 = vpack.c.bf16 %v2670_v22, %v2669_v63 }
 0x364   : > { %2235 = vrot.lane.b32.xlu0 %v2191_v2, %s4906_s10  ;;  %v7356_v56 = vpop.permute.xlu0 %2571  ;;  %v2734_v59 = vld [vmem:[#allocation2 + $0x58] sm:$0xff]  ;;  %v8618_v2 = vld [vmem:[#allocation68_spill] sm:$0xff] }
 0x365   : > { %v1675_v25 = vpop.permute.xlu1 %1674  ;;  %2712 = vst.msk [vmem:[#allocation2 + $0x88] sm:$0xff] %vm878_vm4, %v2696_v13  ;;  %4461 = vmatmul.mubr.msk.bf16.gmra.mrb[4].mxu0 %vm878_vm4, %v2734_v59  ;;  %vm2640_vm13 = vcmp.eq.s32.totalorder %v7356_v56, 1  ;;  %v8628_v56 = vld [vmem:[#allocation142_spill] sm:$0xff] }
 0x366   : > { %1719 = vst.msk [vmem:[#allocation2 + $0x60] sm:$0xff] %vm1714_vm14, %v1675_v25  ;;  %v8621_v25 = vld [vmem:[#allocation43_spill] sm:$0xff] }
 0x367   : > { %1973 = vrot.lane.b32.xlu1 %v1932_v12, %s4905_s29  ;;  %v8620_v12 = vld [vmem:[#allocation64_spill] sm:$0xff] }
 0x368   : > { %1690 = vrot.lane.b32.xlu0 %v1646_v42, %s4908_s12  ;;  %v7364_v15 = vpop.permute.xlu0 %2577  ;;  %v2737_v29 = vld [vmem:[#allocation2 + $0x70] sm:$0xff]  ;;  %v8622_v59 = vpack.c.bf16 %v8620_v12, %v8621_v25  ;;  %v1914_v42 = vsel %vm1882_vm1, %v8623_v47, 0.0  ;;  %v8635_v25 = vld [vmem:[#allocation67_spill] sm:$0xff] }
 0x369   : > { %v7366_v10 = vpop.permute.xlu1 %1845  ;;  %4464 = vmatprep.mubr.msk.bf16.mxu0 %vm878_vm4, %v2737_v29 }
 0x36a   : > { %v2736_v20 = vld [vmem:[#allocation2 + $0x68] sm:$0xff] }
 0x36b   : > { %2592 = vperm.xlu1 %4633, %v8607_v53   ;;  %3027 = vmatprep.mubr.bf16.mxu1 %v2736_v20  ;;  %v1934_v20 = vpack.c.bf16 %v1914_v42, %v1913_v16  ;;  %v1628_v53 = vsel %vm1596_vm10, %v8604_v3, 0.0  ;;  %v2672_v3 = vsel %vm2640_vm13, %v8589_v41, 0.0  ;;  %v8629_v41 = vld [vmem:[#allocation36_spill] sm:$0xff] }
 0x36c   : > { %v7371_v57 = vpop.permute.xlu0 %2580  ;;  %v2740_v0 = vld [vmem:[#allocation2 + $0x88] sm:$0xff] }
 0x36d   : > { %v2735_v58 = vld [vmem:[#allocation2 + $0x60] sm:$0xff]  ;;  %4465 = vmatmul.mubr.msk.bf16.gmra.mrb[8].mxu0 %vm878_vm4, %v2740_v0 }
 0x36e   : > { %v2099_v14 = vpop.permute.xlu1 %2098  ;;  %3028 = vmatmul.mubr.bf16.gmra.mrb[48].mxu1 %v2735_v58 }
 0x36f   : > { %vm2141_vm5 = vcmp.eq.s32.totalorder %v2099_v14, 1  ;;  %2485 = vrot.lane.b32.xlu1 %v8608_v40, %s4908_s12  ;;  %v8624_v14 = vld [vmem:[#allocation66_spill] sm:$0xff] }
 0x370   : > { %v2173_v5 = vsel %vm2141_vm5, %v8610_v7, 0.0  ;;  %v7382_v36 = vpop.permute.xlu0 %2586  ;;  %vm2642_vm5 = vcmp.eq.s32.totalorder %v7364_v15, 1  ;;  %v4660_v15 = vld [vmem:[#allocation4] sm:$0xff]  }
 0x371   : > { %v2192_v39 = vpack.c.bf16 %v2174_v60, %v2173_v5  ;;  %v8626_v5 = vpack.c.bf16 %v7207_v44, %v7204_v17  ;;  %v2674_v44 = vsel %vm2642_vm5, %v8597_v46, 0.0  ;;  %v8632_v46 = vld [vmem:[#allocation50_spill] sm:$0xff]  ;;  %3501 = vmatpush1.bf16.msra.mxu0 %v4660_v15 }
 0x373   : > { %v2355_v61 = vpop.permute.xlu1 %2354  ;;  %2601 = vperm.xlu1 %4633, %v8612_v26   ;;  %2237 = vrot.lane.b32.xlu0 %v2192_v39, %s4906_s10 }
 0x374   : > { %v1681_v50 = vpop.permute.xlu0 %1680  ;;  %vm2397_vm12 = vcmp.eq.s32.totalorder %v2355_v61, 1  ;;  %v1915_v61 = vsel %vm1883_vm8, %v8628_v56, 0.0  ;;  %vm1598_vm8 = vcmp.eq.s32.totalorder %v7280_v54, 1 }
 0x375   : > { %1722 = vst.msk [vmem:[#allocation2 + $0xa8] sm:$0xff] %vm1714_vm14, %v1681_v50  ;;  %v7400_v22 = vsel %vm2397_vm12, %v8617_v52, 0.0  ;;  %vm1886_vm12 = vcmp.eq.s32.totalorder %v7366_v10, 1  ;;  %v8633_v10 = vmov 0   ;;  %v8634_v52 = vld [vmem:[#allocation146_spill] sm:$0xff]  ;;  %v1630_v15 = vsel %vm1598_vm8, %v8610_v7, 0.0 }
 0x376   : > { %3502 = vmatprep.subr.bf16.mxu0 %v8633_v10 }
 0x377   : > { %v7389_v43 = vpop.f32.mrb[0].mxu0  ;;  %v2358_v28 = vpop.permute.xlu1 %2357  ;;  %1975 = vrot.lane.b32.xlu1 %v1933_v27, %s4905_s29  ;;  %2619 = vperm.xlu0 %4632, %v8615_v11   ;;  %v8631_v11 = vld [vmem:[#allocation65_spill] sm:$0xff] }
 0x378   : > { %v7392_v62 = vpop.f32.mrb[1].mxu0  ;;  %vm2398_vm7 = vcmp.eq.s32.totalorder %v2358_v28, 1  ;;  %vm1885_vm3 = vcmp.eq.s32.totalorder %v8631_v11, 1  ;;  %3503 = vmatpush1.bf16.msra.mxu0 %v4661_v6 }
 0x379   : > { %v7396_v31 = vpop.f32.mrb[2].mxu0  ;;  %v7403_v63 = vsel %vm2398_vm7, %v8618_v2, 0.0  ;;  %v1917_v2 = vsel %vm1885_vm3, %v8634_v52, 0.0  ;;  %3504 = vmatprep.subr.bf16.mxu0 %v8633_v10  ;;  %vm2144_vm7 = vcmp.eq.s32.totalorder %v8635_v25, 1  ;;  %v8645_v25 = vld [vmem:[#allocation17_spill] sm:$0xff] }
 0x37a   : > { %v7405_v23 = vpop.f32.mrb[3].mxu0  ;;  %v2448_v13 = vpack.c.bf16 %v7403_v63, %v7400_v22  ;;  %v2176_v9 = vsel %vm2144_vm7, %v8636_v21, 0.0  ;;  %v8642_v63 = vld [vmem:[#allocation141_spill] sm:$0xff]  ;;  %vm1890_vm5 = vcmp.eq.s32.totalorder %v8645_v25, 1 }
 0x37b   : > { %2487 = vrot.lane.b32.xlu1 %v8622_v59, %s4908_s12  ;;  %2622 = vperm.xlu0 %4632, %v8530_v49   ;;  %v8625_v49 = vld [vmem:[#allocation35_spill] sm:$0xff] }
 0x37c   : > { %v1557_v29 = vpop.permute.xlu1 %1556 }
 0x37d   : > { %vm1597_vm15 = vcmp.eq.s32.totalorder %v1557_v29, 1  ;;  %v4662_v29 = vld [vmem:[#allocation4 + $0x10] sm:$0xff]  }
 0x37e   : > { %v1629_v0 = vsel %vm1597_vm15, %v8601_v24, 0.0  ;;  %3505 = vmatpush1.bf16.msra.mxu0 %v4662_v29  ;;  %vm1887_vm15 = vcmp.eq.s32.totalorder %v8639_v30, 1 }
 0x37f   : > { %v1647_v58 = vpack.c.bf16 %v1629_v0, %v1628_v53  ;;  %1977 = vrot.lane.b32.xlu1 %v1934_v20, %s4905_s29  ;;  %v8638_v0 = vld [vmem:[#allocation39_spill] sm:$0xff]  ;;  %3506 = vmatprep.subr.bf16.mxu0 %v8633_v10 }
 0x380   : > { %v1966_v48 = vpop.permute.xlu1 %1965 }
 0x381   : > { %2008 = vst.msk [vmem:[#allocation2 + $0x80] sm:$0xff] %vm1135_vm2, %v1966_v48  ;;  %1692 = vrot.lane.b32.xlu0 %v1647_v58, %s4908_s12 }
 0x382   : > { %2264 = vst.msk [vmem:[#allocation2 + $0x80] sm:$0xff] %vm1457_vm0, %v8624_v14 }
 0x383   : > { %2604 = vperm.xlu1 %4633, %v8625_v49  }
 0x384   : > { %v2569_v40 = vpop.permute.xlu1 %2568 }
 0x385   : > { %vm2639_vm6 = vcmp.eq.s32.totalorder %v2569_v40, 1 }
 0x386   : > { %v2671_v24 = vsel %vm2639_vm6, %v8590_v32, 0.0  ;;  %v1916_v32 = vsel %vm1884_vm9, %v8630_v19, 0.0 }
 0x387   : > { %v2697_v60 = vpack.c.bf16 %v2672_v3, %v2671_v24  ;;  %2489 = vrot.lane.b32.xlu1 %v8626_v5, %s4908_s12  ;;  %v1935_v45 = vpack.c.bf16 %v1916_v32, %v1915_v61  ;;  %v8640_v32 = vld [vmem:[#allocation51_spill] sm:$0xff] }
 0x388   : > { %v2478_v39 = vpop.permute.xlu1 %2477 }
 0x389   : > { %2713 = vst.msk [vmem:[#allocation2 + $0xa0] sm:$0xff] %vm878_vm4, %v2697_v60 }
 0x38a   : > { %2520 = vst.msk [vmem:[#allocation2 + $0x80] sm:$0xff] %vm1714_vm14, %v2478_v39  ;;  %v4663_v39 = vld [vmem:[#allocation4 + $0x18] sm:$0xff]  }
 0x38b   : > { %2613 = vperm.xlu1 %4633, %v8629_v41   ;;  %3507 = vmatpush1.bf16.msra.mxu0 %v4663_v39  ;;  %v4664_v41 = vld [vmem:[#allocation4 + $0x20] sm:$0xff]  }
 0x38c   : > { %v2575_v26 = vpop.permute.xlu1 %2574  ;;  %3508 = vmatprep.subr.bf16.mxu0 %v8633_v10 }
 0x38d   : > { %vm2641_vm11 = vcmp.eq.s32.totalorder %v2575_v26, 1 }
 0x38e   : > { %v2673_v17 = vsel %vm2641_vm11, %v8600_v4, 0.0  ;;  %v1918_v4 = vsel %vm1886_vm12, %v8632_v46, 0.0 }
 0x38f   : > { %v2698_v27 = vpack.c.bf16 %v2674_v44, %v2673_v17  ;;  %1979 = vrot.lane.b32.xlu1 %v1935_v45, %s4905_s29  ;;  %v1936_v12 = vpack.c.bf16 %v1918_v4, %v1917_v2  ;;  %v8641_v44 = vld [vmem:[#allocation47_spill] sm:$0xff]  ;;  %v8643_v17 = vld [vmem:[#allocation145_spill] sm:$0xff]  ;;  %3509 = vmatpush1.bf16.msra.mxu0 %v4664_v41  ;;  %v4666_v4 = vld [vmem:[#allocation4 + $0x30] sm:$0xff]  }
 0x390   : > { %v1677_v50 = vpop.permute.xlu1 %1676  ;;  %v2743_v28 = vld [vmem:[#allocation2 + $0xa0] sm:$0xff]  ;;  %v1919_v22 = vsel %vm1887_vm15, %v8641_v44, 0.0  ;;  %3510 = vmatprep.subr.bf16.mxu0 %v8633_v10  ;;  %vm2643_vm15 = vcmp.eq.s32.totalorder %v7371_v57, 1 }
 0x391   : > { %v2739_v34 = vld [vmem:[#allocation2 + $0x80] sm:$0xff]  ;;  %2714 = vst.msk [vmem:[#allocation2 + $0xb8] sm:$0xff] %vm878_vm4, %v2698_v27  ;;  %4468 = vmatprep.mubr.msk.bf16.mxu0 %vm878_vm4, %v2743_v28 }
 0x392   : > { %1720 = vst.msk [vmem:[#allocation2 + $0x78] sm:$0xff] %vm1714_vm14, %v1677_v50  ;;  %3035 = vmatprep.mubr.bf16.mxu1 %v2739_v34  ;;  %v7480_v34 = vpop.permute.xlu0 %2227 }
 0x393   : > { %2491 = vrot.lane.b32.xlu1 %v2447_v1, %s4908_s12  ;;  %v8637_v1 = vld [vmem:[#allocation45_spill] sm:$0xff] }
 0x394   : > { %v1852_v16 = vpop.permute.xlu1 %1851 }
 0x395   : > { %vm1888_vm10 = vcmp.eq.s32.totalorder %v1852_v16, 1  ;;  %v8644_v16 = vld [vmem:[#allocation44_spill] sm:$0xff] }
 0x396   : > { %v1920_v26 = vsel %vm1888_vm10, %v8640_v32, 0.0 }
 0x397   : > { %1981 = vrot.lane.b32.xlu1 %v1936_v12, %s4905_s29  ;;  %v1937_v50 = vpack.c.bf16 %v1920_v26, %v1919_v22  ;;  %v4668_v12 = vld [vmem:[#allocation4 + $0x40] sm:$0xff]   ;;  %v8651_v26 = vld [vmem:[#allocation11_spill] sm:$0xff] }
 0x398   : > { %v2746_v42 = vld [vmem:[#allocation2 + $0xb8] sm:$0xff] }
 0x399   : > { %v2738_v59 = vld [vmem:[#allocation2 + $0x78] sm:$0xff]  ;;  %v2105_v20 = vpop.permute.xlu1 %2104  ;;  %4469 = vmatmul.mubr.msk.bf16.gmra.mrb[12].mxu0 %vm878_vm4, %v2746_v42  ;;  %v8646_v42 = vld [vmem:[#allocation48_spill] sm:$0xff] }
 0x39a   : > { %3036 = vmatmul.mubr.bf16.gmra.mrb[52].mxu1 %v2738_v59  ;;  %vm2143_vm1 = vcmp.eq.s32.totalorder %v2105_v20, 1  ;;  %v1922_v29 = vsel %vm1890_vm5, %v8646_v42, 0.0  ;;  %v8647_v20 = vld [vmem:[#allocation55_spill] sm:$0xff] }
 0x39b   : > { %v2175_v53 = vsel %vm2143_vm1, %v8637_v1, 0.0  ;;  %2616 = vperm.xlu1 %4633, %v8638_v0   ;;  %v4290_v58 = vpop.f32.mrb[32].mxu1  ;;  %vm1601_vm1 = vcmp.eq.s32.totalorder %v7289_v35, 1 }
 0x39c   : > { %v2193_v48 = vpack.c.bf16 %v2176_v9, %v2175_v53  ;;  %v4291_v14 = vpop.f32.mrb[33].mxu1  ;;  %v4669_v53 = vld [vmem:[#allocation4 + $0x48] sm:$0xff]  }
 0x39d   : > { %v4292_v49 = vadd.f32 %v4291_v14, %v4290_v58  ;;  %v4293_v40 = vpop.f32.mrb[34].mxu1  ;;  %v2741_v14 = vld [vmem:[#allocation2 + $0x90] sm:$0xff] }
 0x39e   : > { %v2361_v3 = vpop.permute.xlu1 %2360  ;;  %2239 = vrot.lane.b32.xlu0 %v2193_v48, %s4906_s10  ;;  %v4294_v24 = vpop.f32.mrb[35].mxu1 }
 0x39f   : > { %v3159_v60 = vadd.f32 %v4292_v49, %v7392_v62  ;;  %v4295_v5 = vadd.f32 %v4294_v24, %v4293_v40  ;;  %2493 = vrot.lane.b32.xlu1 %v2448_v13, %s4908_s12  ;;  %vm2399_vm13 = vcmp.eq.s32.totalorder %v2361_v3, 1  ;;  %v8648_v3 = vld [vmem:[#allocation148_spill] sm:$0xff] }
 0x3a0   : > { %v2431_v13 = vsel %vm2399_vm13, %v8642_v63, 0.0  ;;  %v1633_v63 = vsel %vm1601_vm1, %v8636_v21, 0.0 }
 0x3a1   : > { %v3162_v61 = vadd.f32 %v4295_v5, %v7405_v23 }
 0x3a2   : > { %v2364_v45 = vpop.permute.xlu1 %2363 }
 0x3a3   : > { %v3301_v62 = vpack.c.bf16 %v3162_v61, %v3159_v60  ;;  %vm2400_vm6 = vcmp.eq.s32.totalorder %v2364_v45, 1  ;;  %2625 = vperm.xlu1 %4633, %v8525_v18   ;;  %v4665_v18 = vld [vmem:[#allocation4 + $0x28] sm:$0xff]   ;;  %v8650_v61 = vld [vmem:[#allocation72_spill] sm:$0xff] }
 0x3a4   : > { %v2432_v27 = vsel %vm2400_vm6, %v8643_v17, 0.0  ;;  %3511 = vmatpush1.bf16.msra.mxu0 %v4665_v18  ;;  %v8649_v60 = vld [vmem:[#allocation77_spill] sm:$0xff]  ;;  %v2675_v18 = vsel %vm2643_vm15, %v8603_v37, 0.0  ;;  %vm2645_vm6 = vcmp.eq.s32.totalorder %v7382_v36, 1 }
 0x3a5   : > { %3317 = vst.msk [vmem:[#allocation3 + $0x8] sm:$0xff] %vm878_vm4, %v3301_v62  ;;  %v2449_v23 = vpack.c.bf16 %v2432_v27, %v2431_v13  ;;  %3512 = vmatprep.subr.bf16.mxu0 %v8633_v10  ;;  %v2744_v36 = vld [vmem:[#allocation2 + $0xa8] sm:$0xff] }
 0x3a7   : > { %v1563_v28 = vpop.permute.xlu1 %1562  ;;  %1983 = vrot.lane.b32.xlu1 %v1937_v50, %s4905_s29 }
 0x3a8   : > { %vm1599_vm9 = vcmp.eq.s32.totalorder %v1563_v28, 1  ;;  %3513 = vmatpush1.bf16.msra.mxu0 %v4666_v4 }
 0x3a9   : > { %v1631_v11 = vsel %vm1599_vm9, %v8609_v51, 0.0  ;;  %v4667_v51 = vld [vmem:[#allocation4 + $0x38] sm:$0xff]   ;;  %3514 = vmatprep.subr.bf16.mxu0 %v8633_v10 }
 0x3aa   : > { %v1648_v6 = vpack.c.bf16 %v1631_v11, %v1630_v15  ;;  %v1683_v2 = vpop.permute.xlu0 %1682 }
 0x3ab   : > { %v1968_v54 = vpop.permute.xlu1 %1967  ;;  %2495 = vrot.lane.b32.xlu1 %v2449_v23, %s4908_s12  ;;  %1723 = vst.msk [vmem:[#allocation2 + $0xc0] sm:$0xff] %vm1714_vm14, %v1683_v2 }
 0x3ac   : > { %2009 = vst.msk [vmem:[#allocation2 + $0x98] sm:$0xff] %vm1135_vm2, %v1968_v54  ;;  %1694 = vrot.lane.b32.xlu0 %v1648_v6, %s4908_s12  ;;  %3515 = vmatpush1.bf16.msra.mxu0 %v4667_v51 }
 0x3ad   : > { %2265 = vst.msk [vmem:[#allocation2 + $0x98] sm:$0xff] %vm1457_vm0, %v8644_v16  ;;  %3516 = vmatprep.subr.bf16.mxu0 %v8633_v10 }
 0x3ae   : > { %v7500_v49 = vpop.permute.xlu0 %2229 }
 0x3af   : > { %v2480_v7 = vpop.permute.xlu1 %2479 }
 0x3b0   : > { %2521 = vst.msk [vmem:[#allocation2 + $0x98] sm:$0xff] %vm1714_vm14, %v2480_v7  ;;  %3517 = vmatpush1.bf16.msra.mxu0 %v4668_v12 }
 0x3b1   : > { %3518 = vmatprep.subr.bf16.mxu0 %v8633_v10 }
 0x3b3   : > { %v1855_v59 = vpop.permute.xlu1 %1854 }
 0x3b4   : > { %vm1889_vm11 = vcmp.eq.s32.totalorder %v1855_v59, 1  ;;  %3519 = vmatpush1.bf16.msra.mxu0 %v4669_v53  ;;  %v2677_v59 = vsel %vm2645_vm6, %v8611_v33, 0.0 }
 0x3b5   : > { %v1921_v9 = vsel %vm1889_vm11, %v8647_v20, 0.0 }
 0x3b6   : > { %v1938_v0 = vpack.c.bf16 %v1922_v29, %v1921_v9 }
 0x3b7   : > { %v2742_v58 = vld [vmem:[#allocation2 + $0x98] sm:$0xff] }
 0x3b8   : > { %v2111_v48 = vpop.permute.xlu1 %2110  ;;  %1985 = vrot.lane.b32.xlu1 %v1938_v0, %s4905_s29  ;;  %3043 = vmatprep.mubr.bf16.mxu1 %v2742_v58 }
 0x3b9   : > { %3044 = vmatmul.mubr.bf16.gmra.mrb[56].mxu1 %v2741_v14  ;;  %vm2145_vm12 = vcmp.eq.s32.totalorder %v2111_v48, 1 }
 0x3ba   : > { %v2177_v24 = vsel %vm2145_vm12, %v8648_v3, 0.0 }
 0x3bc   : > { %v2114_v40 = vpop.permute.xlu1 %2113 }
 0x3bd   : > { %vm2146_vm3 = vcmp.eq.s32.totalorder %v2114_v40, 1 }
 0x3be   : > { %v2178_v5 = vsel %vm2146_vm3, %v8649_v60, 0.0 }
 0x3bf   : > { %v2194_v39 = vpack.c.bf16 %v2178_v5, %v2177_v24  ;;  %v7504_v30 = vpop.permute.xlu0 %2595  ;;  %v2747_v24 = vld [vmem:[#allocation2 + $0xc0] sm:$0xff] }
 0x3c0   : > { %vm2648_vm9 = vcmp.eq.s32.totalorder %v7504_v30, 1 }
 0x3c1   : > { %v2370_v10 = vpop.permute.xlu1 %2369  ;;  %2241 = vrot.lane.b32.xlu0 %v2194_v39, %s4906_s10  ;;  %v2680_v60 = vsel %vm2648_vm9, %v8623_v47, 0.0 }
 0x3c2   : > { %vm2402_vm7 = vcmp.eq.s32.totalorder %v2370_v10, 1 }
 0x3c3   : > { %v2434_v41 = vsel %vm2402_vm7, %v8650_v61, 0.0  ;;  %v7509_v62 = vpop.permute.xlu0 %2598 }
 0x3c4   : > { %v2450_v45 = vpack.c.bf16 %v2434_v41, %v8651_v26  ;;  %vm2649_vm11 = vcmp.eq.s32.totalorder %v7509_v62, 1 }
 0x3c5   : > { %v2681_v41 = vsel %vm2649_vm11, %v8628_v56, 0.0 }
 0x3c6   : > { %v1566_v22 = vpop.permute.xlu1 %1565  ;;  %2497 = vrot.lane.b32.xlu1 %v2450_v45, %s4908_s12 }
 0x3c7   : > { %vm1600_vm10 = vcmp.eq.s32.totalorder %v1566_v22, 1  ;;  %v1685_v17 = vpop.permute.xlu0 %1684 }
 0x3c8   : > { %v1632_v13 = vsel %vm1600_vm10, %v8637_v1, 0.0  ;;  %1724 = vst.msk [vmem:[#allocation2 + $0xd8] sm:$0xff] %vm1714_vm14, %v1685_v17 }
 0x3c9   : > { %v1649_v27 = vpack.c.bf16 %v1633_v63, %v1632_v13 }
 0x3ca   : > { %v1970_v50 = vpop.permute.xlu1 %1969 }
 0x3cb   : > { %2010 = vst.msk [vmem:[#allocation2 + $0xb0] sm:$0xff] %vm1135_vm2, %v1970_v50  ;;  %1696 = vrot.lane.b32.xlu0 %v1649_v27, %s4908_s12  ;;  %v7518_v23 = vpop.permute.xlu0 %2231  ;;  %s257_s12 = sand.u32 1, %s4885_s22  }
 0x3cc   : > { %s4171_s15 = sshll.u32 %s257_s12, 8  ;;  %s7902_s25 = scalar_lea.sflag [#allocation6], %s257_s12 }
 0x3cd   : > { %s7707_s16 = scalar_lea.vmem [#allocation7], %s4171_s15 }
 0x3ce   : > { %v2226_v35 = vpop.permute.xlu1 %2225  ;;  %s4091_s20 = sshll.u32 %s7707_s16, 4  ;;  %s7896_s20 = int_to_ptr.vmem [resolvable:$true] %s4091_s20 }
 0x3cf   : > { %2266 = vst.msk [vmem:[#allocation2 + $0xb0] sm:$0xff] %vm1457_vm0, %v2226_v35  ;;  %v1687_v28 = vpop.permute.xlu0 %1686  ;;  %v2750_v56 = vld [vmem:[#allocation2 + $0xd8] sm:$0xff]  ;;  %s4827_s14 = scalar_lea.vmem %s7896_s20, 4096 }
 0x3d0   : > { %1725 = vst.msk [vmem:[#allocation2 + $0xf0] sm:$0xff] %vm1714_vm14, %v1687_v28  ;;  %p4828_p6 = scmp.ne.s32.totalorder %s7896_s20, %s4827_s14 }
 0x3d2   : > { %v2584_v21 = vpop.permute.xlu1 %2583  ;;  %p4829_p10 = pnand %p4828_p6, %p8654_p9 }
 0x3d3   : > { %vm2644_vm13 = vcmp.eq.s32.totalorder %v2584_v21, 1  ;;  %v4296_v1 = vpop.f32.mrb[36].mxu1  ;;  %v7525_v11 = vpop.permute.xlu0 %2233 }
 0x3d4   : > { %v2676_v15 = vsel %vm2644_vm13, %v8606_v8, 0.0  ;;  %v4297_v4 = vpop.f32.mrb[37].mxu1  ;;  %p4830_p12 = pneg %p4829_p10 }
 0x3d5   : > { %v2699_v6 = vpack.c.bf16 %v2676_v15, %v2675_v18  ;;  %v4298_v2 = vadd.f32 %v4297_v4, %v4296_v1  ;;  %v4299_v54 = vpop.f32.mrb[38].mxu1 }
 0x3d6   : > { %v2482_v16 = vpop.permute.xlu1 %2481  ;;  %v4300_v51 = vpop.f32.mrb[39].mxu1 }
 0x3d7   : > { %2715 = vst.msk [vmem:[#allocation2 + $0xd0] sm:$0xff] %vm878_vm4, %v2699_v6  ;;  %v3167_v57 = vadd.f32 %v7389_v43, %v4298_v2  ;;  %v4301_v7 = vadd.f32 %v4300_v51, %v4299_v54  ;;  %v7530_v12 = vpop.permute.xlu0 %2607  ;;  %v2753_v15 = vld [vmem:[#allocation2 + $0xf0] sm:$0xff] }
 0x3d8   : > { %2522 = vst.msk [vmem:[#allocation2 + $0xb0] sm:$0xff] %vm1714_vm14, %v2482_v16  ;;  %vm2652_vm3 = vcmp.eq.s32.totalorder %v7530_v12, 1 }
 0x3d9   : > { %v3170_v37 = vadd.f32 %v7396_v31, %v4301_v7  ;;  %v2684_v4 = vsel %vm2652_vm3, %v8632_v46, 0.0 }
 0x3da   : > { %v2590_v8 = vpop.permute.xlu1 %2589 }
 0x3db   : > { %v3302_v25 = vpack.c.bf16 %v3170_v37, %v3167_v57  ;;  %vm2646_vm8 = vcmp.eq.s32.totalorder %v2590_v8, 1  ;;  %v7536_v9 = vpop.permute.xlu0 %2610 }
 0x3dc   : > { %v2678_v29 = vsel %vm2646_vm8, %v8613_v38, 0.0  ;;  %vm2653_vm1 = vcmp.eq.s32.totalorder %v7536_v9, 1 }
 0x3dd   : > { %3318 = vst.msk [vmem:[#allocation3 + $0x18] sm:$0xff] %vm878_vm4, %v3302_v25  ;;  %v2700_v43 = vpack.c.bf16 %v2678_v29, %v2677_v59  ;;  %v2685_v16 = vsel %vm2653_vm1, %v8641_v44, 0.0 }
 0x3de   : > { %v1972_v53 = vpop.permute.xlu1 %1971  ;;  %v2749_v0 = vld [vmem:[#allocation2 + $0xd0] sm:$0xff] }
 0x3df   : > { %v2745_v58 = vld [vmem:[#allocation2 + $0xb0] sm:$0xff]  ;;  %2716 = vst.msk [vmem:[#allocation2 + $0xe8] sm:$0xff] %vm878_vm4, %v2700_v43  ;;  %4472 = vmatprep.mubr.msk.bf16.mxu0 %vm878_vm4, %v2749_v0  ;;  %v1689_v33 = vpop.permute.xlu0 %1688 }
 0x3e0   : > { %2011 = vst.msk [vmem:[#allocation2 + $0xc8] sm:$0xff] %vm1135_vm2, %v1972_v53  ;;  %3051 = vmatprep.mubr.bf16.mxu1 %v2745_v58 }
 0x3e1   : > { %2267 = vst.msk [vmem:[#allocation2 + $0xc8] sm:$0xff] %vm1457_vm0, %v7480_v34  ;;  %3052 = vmatmul.mubr.bf16.gmra.mrb[60].mxu1 %v2744_v36 }
 0x3e2   : > { %1726 = vst.msk [vmem:[#allocation2 + $0x108] sm:$0xff] %vm1714_vm14, %v1689_v33  ;;  %v2484_v38 = vpop.permute.xlu1 %2483 }
 0x3e3   : > { %2523 = vst.msk [vmem:[#allocation2 + $0xc8] sm:$0xff] %vm1714_vm14, %v2484_v38  ;;  %v7546_v31 = vpop.permute.xlu0 %2235 }
 0x3e6   : > { %v1974_v48 = vpop.permute.xlu1 %1973  ;;  %v2752_v14 = vld [vmem:[#allocation2 + $0xe8] sm:$0xff] }
 0x3e7   : > { %2012 = vst.msk [vmem:[#allocation2 + $0xe0] sm:$0xff] %vm1135_vm2, %v1974_v48  ;;  %4473 = vmatmul.mubr.msk.bf16.gmra.mrb[16].mxu0 %vm878_vm4, %v2752_v14  ;;  %v1691_v40 = vpop.permute.xlu0 %1690 }
 0x3e8   : > { %2268 = vst.msk [vmem:[#allocation2 + $0xe0] sm:$0xff] %vm1457_vm0, %v7500_v49 }
 0x3e9   : > { %1727 = vst.msk [vmem:[#allocation2 + $0x120] sm:$0xff] %vm1714_vm14, %v1691_v40 }
 0x3ea   : > { %v2593_v34 = vpop.permute.xlu1 %2592  ;;  %v2748_v3 = vld [vmem:[#allocation2 + $0xc8] sm:$0xff] }
 0x3eb   : > { %vm2647_vm5 = vcmp.eq.s32.totalorder %v2593_v34, 1  ;;  %3059 = vmatprep.mubr.bf16.mxu1 %v2748_v3  ;;  %v7559_v49 = vpop.permute.xlu0 %2237  ;;  %v8653_v34 = vld [vmem:[#allocation76_spill] sm:$0xff] }
 0x3ec   : > { %v2679_v5 = vsel %vm2647_vm5, %v8619_v55, 0.0  ;;  %3060 = vmatmul.mubr.bf16.gmra.mrb[64].mxu1 %v2747_v24 }
 0x3ed   : > { %v2701_v39 = vpack.c.bf16 %v2680_v60, %v2679_v5 }
 0x3ee   : > { %v2486_v10 = vpop.permute.xlu1 %2485 }
 0x3ef   : > { %2717 = vst.msk [vmem:[#allocation2 + $0x100] sm:$0xff] %vm878_vm4, %v2701_v39 }
 0x3f0   : > { %2524 = vst.msk [vmem:[#allocation2 + $0xe0] sm:$0xff] %vm1714_vm14, %v2486_v10  ;;  %v2759_v43 = vld [vmem:[#allocation2 + $0x120] sm:$0xff] }
 0x3f2   : > { %v2602_v30 = vpop.permute.xlu1 %2601 }
 0x3f3   : > { %vm2650_vm12 = vcmp.eq.s32.totalorder %v2602_v30, 1  ;;  %v4302_v61 = vpop.f32.mrb[40].mxu1 }
 0x3f4   : > { %v2682_v47 = vsel %vm2650_vm12, %v8630_v19, 0.0  ;;  %v4303_v26 = vpop.f32.mrb[41].mxu1 }
 0x3f5   : > { %v2702_v55 = vpack.c.bf16 %v2682_v47, %v2681_v41  ;;  %v7563_v45 = vadd.f32 %v4303_v26, %v4302_v61  ;;  %v4305_v22 = vpop.f32.mrb[42].mxu1  ;;  %v3334_v41 = vld [vmem:[#allocation3 + $0x8] sm:$0xff] }
 0x3f6   : > { %v1976_v63 = vpop.permute.xlu1 %1975  ;;  %v7565_v13 = vpop.permute.xlu0 %2619  ;;  %v2755_v27 = vld [vmem:[#allocation2 + $0x100] sm:$0xff] }
 0x3f7   : > { %v2751_v17 = vld [vmem:[#allocation2 + $0xe0] sm:$0xff]  ;;  %2718 = vst.msk [vmem:[#allocation2 + $0x118] sm:$0xff] %vm878_vm4, %v2702_v55  ;;  %v4306_v62 = vpop.f32.mrb[43].mxu1  ;;  %4476 = vmatprep.mubr.msk.bf16.mxu0 %vm878_vm4, %v2755_v27  ;;  %vm2656_vm15 = vcmp.eq.s32.totalorder %v7565_v13, 1 }
 0x3f8   : > { %2013 = vst.msk [vmem:[#allocation2 + $0xf8] sm:$0xff] %vm1135_vm2, %v1976_v63  ;;  %3067 = vmatprep.mubr.bf16.mxu1 %v2751_v17  ;;  %v7572_v19 = vadd.f32 %v4306_v62, %v4305_v22  ;;  %v2688_v53 = vsel %vm2656_vm15, %v8646_v42, 0.0  ;;  %v8652_v42 = vld [vmem:[#allocation75_spill] sm:$0xff]  ;;  %v3333_v22 = vld [vmem:[#allocation3] sm:$0xff] }
 0x3f9   : > { %2269 = vst.msk [vmem:[#allocation2 + $0xf8] sm:$0xff] %vm1457_vm0, %v7518_v23  ;;  %3068 = vmatmul.mubr.bf16.gmra.mrb[68].mxu1 %v2750_v56  ;;  %v3336_v63 = vld [vmem:[#allocation3 + $0x18] sm:$0xff] }
 0x3fa   : > { %v2488_v50 = vpop.permute.xlu1 %2487  ;;  %v7574_v35 = vpop.permute.xlu0 %2622 }
 0x3fb   : > { %2525 = vst.msk [vmem:[#allocation2 + $0xf8] sm:$0xff] %vm1714_vm14, %v2488_v50  ;;  %vm2657_vm6 = vcmp.eq.s32.totalorder %v7574_v35, 1 }
 0x3fe   : > { %v1978_v28 = vpop.permute.xlu1 %1977  ;;  %v1693_v21 = vpop.permute.xlu0 %1692  ;;  %v2758_v1 = vld [vmem:[#allocation2 + $0x118] sm:$0xff] }
 0x3ff   : > { %2014 = vst.msk [vmem:[#allocation2 + $0x110] sm:$0xff] %vm1135_vm2, %v1978_v28  ;;  %4477 = vmatmul.mubr.msk.bf16.gmra.mrb[20].mxu0 %vm878_vm4, %v2758_v1 }
 0x400   : > { %1728 = vst.msk [vmem:[#allocation2 + $0x138] sm:$0xff] %vm1714_vm14, %v1693_v21  ;;  %v3335_v21 = vld [vmem:[#allocation3 + $0x10] sm:$0xff] }
 0x401   : > { %2270 = vst.msk [vmem:[#allocation2 + $0x110] sm:$0xff] %vm1457_vm0, %v7525_v11 }
 0x402   : > { %v2605_v23 = vpop.permute.xlu1 %2604  ;;  %v2754_v18 = vld [vmem:[#allocation2 + $0xf8] sm:$0xff] }
 0x403   : > { %vm2651_vm7 = vcmp.eq.s32.totalorder %v2605_v23, 1  ;;  %3075 = vmatprep.mubr.bf16.mxu1 %v2754_v18 }
 0x404   : > { %v2683_v6 = vsel %vm2651_vm7, %v8634_v52, 0.0  ;;  %3076 = vmatmul.mubr.bf16.gmra.mrb[72].mxu1 %v2753_v15  ;;  %v2756_v52 = vld [vmem:[#allocation2 + $0x108] sm:$0xff] }
 0x405   : > { %v2703_v2 = vpack.c.bf16 %v2684_v4, %v2683_v6 }
 0x406   : > { %v2490_v54 = vpop.permute.xlu1 %2489 }
 0x407   : > { %2719 = vst.msk [vmem:[#allocation2 + $0x130] sm:$0xff] %vm878_vm4, %v2703_v2  ;;  %v2762_v10 = vld [vmem:[#allocation2 + $0x138] sm:$0xff] }
 0x408   : > { %2526 = vst.msk [vmem:[#allocation2 + $0x110] sm:$0xff] %vm1714_vm14, %v2490_v54 }
 0x40a   : > { %v2614_v11 = vpop.permute.xlu1 %2613 }
 0x40b   : > { %vm2654_vm10 = vcmp.eq.s32.totalorder %v2614_v11, 1 }
 0x40c   : > { %v2686_v51 = vsel %vm2654_vm10, %v8640_v32, 0.0 }
 0x40d   : > { %v2704_v57 = vpack.c.bf16 %v2686_v51, %v2685_v16 }
 0x40e   : > { %v1980_v7 = vpop.permute.xlu1 %1979  ;;  %v2761_v12 = vld [vmem:[#allocation2 + $0x130] sm:$0xff] }
 0x40f   : > { %v2757_v46 = vld [vmem:[#allocation2 + $0x110] sm:$0xff]  ;;  %2720 = vst.msk [vmem:[#allocation2 + $0x148] sm:$0xff] %vm878_vm4, %v2704_v57  ;;  %4480 = vmatprep.mubr.msk.bf16.mxu0 %vm878_vm4, %v2761_v12 }
 0x410   : > { %2015 = vst.msk [vmem:[#allocation2 + $0x128] sm:$0xff] %vm1135_vm2, %v1980_v7  ;;  %3083 = vmatprep.mubr.bf16.mxu1 %v2757_v46  ;;  %v2240_v8 = vpop.permute.xlu0 %2239 }
 0x411   : > { %2271 = vst.msk [vmem:[#allocation2 + $0x128] sm:$0xff] %vm1457_vm0, %v7546_v31  ;;  %3084 = vmatmul.mubr.bf16.gmra.mrb[76].mxu1 %v2756_v52 }
 0x412   : > { %v2492_v37 = vpop.permute.xlu1 %2491 }
 0x413   : > { %2527 = vst.msk [vmem:[#allocation2 + $0x128] sm:$0xff] %vm1714_vm14, %v2492_v37  ;;  %v3337_v37 = vld [vmem:[#allocation3 + $0x20] sm:$0xff] }
 0x416   : > { %v1982_v32 = vpop.permute.xlu1 %1981  ;;  %v2764_v44 = vld [vmem:[#allocation2 + $0x148] sm:$0xff] }
 0x417   : > { %2016 = vst.msk [vmem:[#allocation2 + $0x140] sm:$0xff] %vm1135_vm2, %v1982_v32  ;;  %4481 = vmatmul.mubr.msk.bf16.gmra.mrb[24].mxu0 %vm878_vm4, %v2764_v44 }
 0x418   : > { %2272 = vst.msk [vmem:[#allocation2 + $0x140] sm:$0xff] %vm1457_vm0, %v7559_v49 }
 0x41a   : > { %v2617_v25 = vpop.permute.xlu1 %2616  ;;  %v4308_v59 = vpop.f32.mrb[44].mxu1  ;;  %v2760_v29 = vld [vmem:[#allocation2 + $0x128] sm:$0xff] }
 0x41b   : > { %vm2655_vm13 = vcmp.eq.s32.totalorder %v2617_v25, 1  ;;  %v4309_v9 = vpop.f32.mrb[45].mxu1  ;;  %3091 = vmatprep.mubr.bf16.mxu1 %v2760_v29  ;;  %v3339_v25 = vld [vmem:[#allocation3 + $0x30] sm:$0xff]  ;;  %v3341_v29 = vld [vmem:[#allocation3 + $0x40] sm:$0xff] }
 0x41c   : > { %v2687_v0 = vsel %vm2655_vm13, %v8647_v20, 0.0  ;;  %v4310_v58 = vadd.f32 %v4309_v9, %v4308_v59  ;;  %v4311_v36 = vpop.f32.mrb[46].mxu1  ;;  %3092 = vmatmul.mubr.bf16.gmra.mrb[80].mxu1 %v2759_v43  ;;  %v2689_v20 = vsel %vm2657_vm6, %v8652_v42, 0.0 }
 0x41d   : > { %v2705_v33 = vpack.c.bf16 %v2688_v53, %v2687_v0  ;;  %v4312_v38 = vpop.f32.mrb[47].mxu1 }
 0x41e   : > { %v4313_v31 = vadd.f32 %v4312_v38, %v4311_v36  ;;  %v2494_v48 = vpop.permute.xlu1 %2493  ;;  %v1695_v14 = vpop.permute.xlu0 %1694 }
 0x41f   : > { %2721 = vst.msk [vmem:[#allocation2 + $0x160] sm:$0xff] %vm878_vm4, %v2705_v33 }
 0x420   : > { %2528 = vst.msk [vmem:[#allocation2 + $0x140] sm:$0xff] %vm1714_vm14, %v2494_v48  ;;  %1729 = vst.msk [vmem:[#allocation2 + $0x150] sm:$0xff] %vm1714_vm14, %v1695_v14 }
 0x422   : > { %v2626_v40 = vpop.permute.xlu1 %2625 }
 0x423   : > { %vm2658_vm8 = vcmp.eq.s32.totalorder %v2626_v40, 1 }
 0x424   : > { %v2690_v3 = vsel %vm2658_vm8, %v8653_v34, 0.0 }
 0x425   : > { %v2706_v24 = vpack.c.bf16 %v2690_v3, %v2689_v20  ;;  %v3343_v20 = vld [vmem:[#allocation3 + $0x50] sm:$0xff] }
 0x426   : > { %v1984_v60 = vpop.permute.xlu1 %1983  ;;  %v2767_v39 = vld [vmem:[#allocation2 + $0x160] sm:$0xff] }
 0x427   : > { %v2763_v5 = vld [vmem:[#allocation2 + $0x140] sm:$0xff]  ;;  %2722 = vst.msk [vmem:[#allocation2 + $0x178] sm:$0xff] %vm878_vm4, %v2706_v24  ;;  %4484 = vmatprep.mubr.msk.bf16.mxu0 %vm878_vm4, %v2767_v39  ;;  %v2765_v55 = vld [vmem:[#allocation2 + $0x150] sm:$0xff] }
 0x428   : > { %2017 = vst.msk [vmem:[#allocation2 + $0x158] sm:$0xff] %vm1135_vm2, %v1984_v60  ;;  %3099 = vmatprep.mubr.bf16.mxu1 %v2763_v5 }
 0x429   : > { %2273 = vst.msk [vmem:[#allocation2 + $0x158] sm:$0xff] %vm1457_vm0, %v2240_v8  ;;  %3100 = vmatmul.mubr.bf16.gmra.mrb[84].mxu1 %v2762_v10 }
 0x42a   : > { %v2496_v49 = vpop.permute.xlu1 %2495 }
 0x42b   : > { %2529 = vst.msk [vmem:[#allocation2 + $0x158] sm:$0xff] %vm1714_vm14, %v2496_v49 }
 0x42e   : > { %v1986_v30 = vpop.permute.xlu1 %1985  ;;  %v2770_v61 = vld [vmem:[#allocation2 + $0x178] sm:$0xff] }
 0x42f   : > { %2018 = vst.msk [vmem:[#allocation2 + $0x170] sm:$0xff] %vm1135_vm2, %v1986_v30  ;;  %4485 = vmatmul.mubr.msk.bf16.gmra.mrb[28].mxu0 %vm878_vm4, %v2770_v61 }
 0x430   : > { %4227 = vmatprep.mubr.msk.bf16.mxu0 %vm878_vm4, %v3334_v41  ;;  %v3345_v41 = vld [vmem:[#allocation3 + $0x60] sm:$0xff] }
 0x432   : > { %v2766_v47 = vld [vmem:[#allocation2 + $0x158] sm:$0xff] }
 0x433   : > { %v2242_v26 = vpop.permute.xlu0 %2241  ;;  %3107 = vmatprep.mubr.bf16.mxu1 %v2766_v47 }
 0x434   : > { %2274 = vst.msk [vmem:[#allocation2 + $0x170] sm:$0xff] %vm1457_vm0, %v2242_v26  ;;  %3108 = vmatmul.mubr.bf16.gmra.mrb[88].mxu1 %v2765_v55 }
 0x437   : > { %3533 = vmatmul.mubr.bf16.vlgmr.msra.gmra.mrb[32].mxu0 %v3333_v22 }
 0x438   : > { %v2498_v13 = vpop.permute.xlu1 %2497  ;;  %4228 = vmatprep.mubr.msk.bf16.mxu0 %vm878_vm4, %v3336_v63  ;;  %v4462_v17 = vpop.f32.mrb[4].mxu0 }
 0x439   : > { %2530 = vst.msk [vmem:[#allocation2 + $0x170] sm:$0xff] %vm1714_vm14, %v2498_v13  ;;  %v3183_v27 = vadd.f32 %v4462_v17, %v4310_v58  ;;  %v3174_v62 = vpop.f32.mrb[5].mxu0 }
 0x43a   : > { %v3175_v56 = vadd.f32 %v7563_v45, %v3174_v62  ;;  %v4463_v50 = vpop.f32.mrb[6].mxu0 }
 0x43b   : > { %v3186_v35 = vadd.f32 %v4463_v50, %v4313_v31  ;;  %v3177_v28 = vpop.f32.mrb[7].mxu0 }
 0x43c   : > { %v3178_v1 = vadd.f32 %v7572_v19, %v3177_v28 }
 0x43d   : > { %v1697_v23 = vpop.permute.xlu0 %1696  ;;  %v3304_v18 = vpack.c.bf16 %v3186_v35, %v3183_v27 }
 0x43e   : > { %1730 = vst.msk [vmem:[#allocation2 + $0x168] sm:$0xff] %vm1714_vm14, %v1697_v23  ;;  %v3303_v15 = vpack.c.bf16 %v3178_v1, %v3175_v56 }
 0x43f   : > { %3541 = vmatmul.mubr.bf16.gmra.mrb[36].mxu0 %v3335_v21  ;;  %3320 = vst.msk [vmem:[#allocation3 + $0x38] sm:$0xff] %vm878_vm4, %v3304_v18 }
 0x440   : > { %v2769_v4 = vld [vmem:[#allocation2 + $0x170] sm:$0xff]  ;;  %3319 = vst.msk [vmem:[#allocation3 + $0x28] sm:$0xff] %vm878_vm4, %v3303_v15  ;;  %v4466_v6 = vpop.f32.mrb[8].mxu0 }
 0x441   : > { %v4314_v2 = vpop.f32.mrb[48].mxu1  ;;  %3115 = vmatprep.mubr.bf16.mxu1 %v2769_v4  ;;  %v3190_v45 = vpop.f32.mrb[9].mxu0 }
 0x442   : > { %v4315_v54 = vpop.f32.mrb[49].mxu1  ;;  %v4467_v16 = vpop.f32.mrb[10].mxu0 }
 0x443   : > { %v4316_v11 = vadd.f32 %v4315_v54, %v4314_v2  ;;  %v4317_v51 = vpop.f32.mrb[50].mxu1  ;;  %v3193_v19 = vpop.f32.mrb[11].mxu0 }
 0x444   : > { %v4318_v57 = vpop.f32.mrb[51].mxu1 }
 0x445   : > { %v3191_v7 = vadd.f32 %v4316_v11, %v3190_v45  ;;  %v4319_v46 = vadd.f32 %v4318_v57, %v4317_v51  ;;  %v2768_v12 = vld [vmem:[#allocation2 + $0x168] sm:$0xff]  ;;  %v3347_v45 = vld [vmem:[#allocation3 + $0x70] sm:$0xff] }
 0x446   : > { %3116 = vmatmul.mubr.bf16.gmra.mrb[92].mxu1 %v2768_v12  ;;  %v3340_v8 = vld [vmem:[#allocation3 + $0x38] sm:$0xff] }
 0x447   : > { %v3194_v52 = vadd.f32 %v4319_v46, %v3193_v19  ;;  %v3338_v32 = vld [vmem:[#allocation3 + $0x28] sm:$0xff] }
 0x448   : > { %4229 = vmatprep.mubr.msk.bf16.mxu0 %vm878_vm4, %v3338_v32 }
 0x449   : > { %v3305_v44 = vpack.c.bf16 %v3194_v52, %v3191_v7  ;;  %3549 = vmatmul.mubr.bf16.gmra.mrb[40].mxu0 %v3337_v37  ;;  %v3349_v37 = vld [vmem:[#allocation3 + $0x80] sm:$0xff] }
 0x44a   : > { %4230 = vmatprep.mubr.msk.bf16.mxu0 %vm878_vm4, %v3340_v8 }
 0x44b   : > { %3321 = vst.msk [vmem:[#allocation3 + $0x48] sm:$0xff] %vm878_vm4, %v3305_v44 }
 0x451   : > { %3557 = vmatmul.mubr.bf16.gmra.mrb[44].mxu0 %v3339_v25 }
 0x452   : > { %v3342_v59 = vld [vmem:[#allocation3 + $0x48] sm:$0xff] }
 0x453   : > { %4231 = vmatprep.mubr.msk.bf16.mxu0 %vm878_vm4, %v3342_v59 }
 0x459   : > { %3565 = vmatmul.mubr.bf16.gmra.mrb[48].mxu0 %v3341_v29 }
 0x46c   : > { %v4470_v43 = vpop.f32.mrb[12].mxu0 }
 0x46d   : > { %v4320_v9 = vpop.f32.mrb[52].mxu1  ;;  %v3206_v0 = vpop.f32.mrb[13].mxu0 }
 0x46e   : > { %v4321_v53 = vpop.f32.mrb[53].mxu1  ;;  %v4471_v33 = vpop.f32.mrb[14].mxu0 }
 0x46f   : > { %v4322_v58 = vadd.f32 %v4321_v53, %v4320_v9  ;;  %v4323_v36 = vpop.f32.mrb[54].mxu1  ;;  %v3209_v31 = vpop.f32.mrb[15].mxu0 }
 0x470   : > { %v4324_v38 = vpop.f32.mrb[55].mxu1 }
 0x471   : > { %v3199_v48 = vadd.f32 %v4466_v6, %v4322_v58  ;;  %v4325_v14 = vadd.f32 %v4324_v38, %v4323_v36 }
 0x473   : > { %v3202_v40 = vadd.f32 %v4467_v16, %v4325_v14 }
 0x475   : > { %v3306_v42 = vpack.c.bf16 %v3202_v40, %v3199_v48 }
 0x477   : > { %3322 = vst.msk [vmem:[#allocation3 + $0x58] sm:$0xff] %vm878_vm4, %v3306_v42 }
 0x47e   : > { %v3344_v34 = vld [vmem:[#allocation3 + $0x58] sm:$0xff] }
 0x47f   : > { %4232 = vmatprep.mubr.msk.bf16.mxu0 %vm878_vm4, %v3344_v34 }
 0x480   : > { %3573 = vmatmul.mubr.bf16.gmra.mrb[52].mxu0 %v3343_v20 }
 0x48c   : > { %v4326_v3 = vpop.f32.mrb[56].mxu1 }
 0x48d   : > { %v4327_v24 = vpop.f32.mrb[57].mxu1 }
 0x48e   : > { %v4328_v60 = vadd.f32 %v4327_v24, %v4326_v3  ;;  %v4329_v5 = vpop.f32.mrb[58].mxu1 }
 0x48f   : > { %v4330_v39 = vpop.f32.mrb[59].mxu1 }
 0x490   : > { %v3207_v10 = vadd.f32 %v4328_v60, %v3206_v0  ;;  %v4331_v49 = vadd.f32 %v4330_v39, %v4329_v5  ;;  %v3353_v39 = vld [vmem:[#allocation3 + $0xa0] sm:$0xff] }
 0x492   : > { %v3210_v30 = vadd.f32 %v4331_v49, %v3209_v31  ;;  %v3351_v31 = vld [vmem:[#allocation3 + $0x90] sm:$0xff] }
 0x494   : > { %v3307_v61 = vpack.c.bf16 %v3210_v30, %v3207_v10 }
 0x496   : > { %3323 = vst.msk [vmem:[#allocation3 + $0x68] sm:$0xff] %vm878_vm4, %v3307_v61 }
 0x49d   : > { %v3346_v47 = vld [vmem:[#allocation3 + $0x68] sm:$0xff] }
 0x49e   : > { %4233 = vmatprep.mubr.msk.bf16.mxu0 %vm878_vm4, %v3346_v47 }
 0x49f   : > { %3581 = vmatmul.mubr.bf16.gmra.mrb[56].mxu0 %v3345_v41 }
 0x4b4   : > { %v4332_v26 = vpop.f32.mrb[60].mxu1 }
 0x4b5   : > { %v4333_v55 = vpop.f32.mrb[61].mxu1 }
 0x4b6   : > { %v4334_v22 = vadd.f32 %v4333_v55, %v4332_v26  ;;  %v4335_v63 = vpop.f32.mrb[62].mxu1 }
 0x4b7   : > { %v4336_v13 = vpop.f32.mrb[63].mxu1 }
 0x4b8   : > { %v3215_v17 = vadd.f32 %v4470_v43, %v4334_v22  ;;  %v4337_v27 = vadd.f32 %v4336_v13, %v4335_v63 }
 0x4ba   : > { %v3218_v62 = vadd.f32 %v4471_v33, %v4337_v27  ;;  %v4474_v56 = vpop.f32.mrb[16].mxu0 }
 0x4bb   : > { %v3222_v35 = vpop.f32.mrb[17].mxu0 }
 0x4bc   : > { %v3308_v50 = vpack.c.bf16 %v3218_v62, %v3215_v17  ;;  %v4475_v28 = vpop.f32.mrb[18].mxu0 }
 0x4bd   : > { %v3225_v21 = vpop.f32.mrb[19].mxu0 }
 0x4be   : > { %3324 = vst.msk [vmem:[#allocation3 + $0x78] sm:$0xff] %vm878_vm4, %v3308_v50 }
 0x4bf   : > { %v4338_v1 = vpop.f32.mrb[64].mxu1 }
 0x4c0   : > { %v4339_v23 = vpop.f32.mrb[65].mxu1 }
 0x4c1   : > { %v4340_v18 = vadd.f32 %v4339_v23, %v4338_v1  ;;  %v4341_v15 = vpop.f32.mrb[66].mxu1 }
 0x4c2   : > { %v4342_v4 = vpop.f32.mrb[67].mxu1 }
 0x4c3   : > { %v3223_v6 = vadd.f32 %v4340_v18, %v3222_v35  ;;  %v4343_v2 = vadd.f32 %v4342_v4, %v4341_v15 }
 0x4c5   : > { %v3348_v54 = vld [vmem:[#allocation3 + $0x78] sm:$0xff]  ;;  %v3226_v11 = vadd.f32 %v4343_v2, %v3225_v21  ;;  %v3357_v2 = vld [vmem:[#allocation3 + $0xc0] sm:$0xff] }
 0x4c6   : > { %4234 = vmatprep.mubr.msk.bf16.mxu0 %vm878_vm4, %v3348_v54 }
 0x4c7   : > { %3589 = vmatmul.mubr.bf16.gmra.mrb[60].mxu0 %v3347_v45  ;;  %v3309_v16 = vpack.c.bf16 %v3226_v11, %v3223_v6 }
 0x4c9   : > { %3325 = vst.msk [vmem:[#allocation3 + $0x88] sm:$0xff] %vm878_vm4, %v3309_v16 }
 0x4cc   : > { %v4344_v51 = vpop.f32.mrb[68].mxu1 }
 0x4cd   : > { %v4345_v19 = vpop.f32.mrb[69].mxu1 }
 0x4ce   : > { %v4346_v57 = vadd.f32 %v4345_v19, %v4344_v51  ;;  %v4347_v7 = vpop.f32.mrb[70].mxu1 }
 0x4cf   : > { %v4348_v46 = vpop.f32.mrb[71].mxu1 }
 0x4d0   : > { %v3231_v12 = vadd.f32 %v4474_v56, %v4346_v57  ;;  %v4349_v52 = vadd.f32 %v4348_v46, %v4347_v7  ;;  %v3350_v32 = vld [vmem:[#allocation3 + $0x88] sm:$0xff]  ;;  %v3355_v56 = vld [vmem:[#allocation3 + $0xb0] sm:$0xff] }
 0x4d1   : > { %4235 = vmatprep.mubr.msk.bf16.mxu0 %vm878_vm4, %v3350_v32 }
 0x4d2   : > { %v3234_v44 = vadd.f32 %v4475_v28, %v4349_v52  ;;  %v4478_v8 = vpop.f32.mrb[20].mxu0  ;;  %3597 = vmatmul.mubr.bf16.gmra.mrb[64].mxu0 %v3349_v37 }
 0x4d3   : > { %v3238_v59 = vpop.f32.mrb[21].mxu0 }
 0x4d4   : > { %v3310_v25 = vpack.c.bf16 %v3234_v44, %v3231_v12  ;;  %v4479_v29 = vpop.f32.mrb[22].mxu0  ;;  %v7651_v12 = vld [vmem:[%s7948_s5] ss:$0 sm:$0xff] }
 0x4d5   : > { %v3241_v9 = vpop.f32.mrb[23].mxu0 }
 0x4d6   : > { %3326 = vst.msk [vmem:[#allocation3 + $0x98] sm:$0xff] %vm878_vm4, %v3310_v25 }
 0x4d7   : > { %v4350_v43 = vpop.f32.mrb[72].mxu1 }
 0x4d8   : > { %v4351_v53 = vpop.f32.mrb[73].mxu1 }
 0x4d9   : > { %v4352_v0 = vadd.f32 %v4351_v53, %v4350_v43  ;;  %v4353_v58 = vpop.f32.mrb[74].mxu1 }
 0x4da   : > { %v4354_v36 = vpop.f32.mrb[75].mxu1 }
 0x4db   : > { %v3239_v33 = vadd.f32 %v4352_v0, %v3238_v59  ;;  %v4355_v38 = vadd.f32 %v4354_v36, %v4353_v58  ;;  %v3359_v59 = vld [vmem:[#allocation3 + $0xd0] sm:$0xff] }
 0x4dd   : > { %v3352_v48 = vld [vmem:[#allocation3 + $0x98] sm:$0xff]  ;;  %v3242_v14 = vadd.f32 %v4355_v38, %v3241_v9 }
 0x4de   : > { %4236 = vmatprep.mubr.msk.bf16.mxu0 %vm878_vm4, %v3352_v48 }
 0x4df   : > { %3605 = vmatmul.mubr.bf16.gmra.mrb[68].mxu0 %v3351_v31  ;;  %v3311_v40 = vpack.c.bf16 %v3242_v14, %v3239_v33 }
 0x4e1   : > { %3327 = vst.msk [vmem:[#allocation3 + $0xa8] sm:$0xff] %vm878_vm4, %v3311_v40 }
 0x4e4   : > { %v4356_v42 = vpop.f32.mrb[76].mxu1 }
 0x4e5   : > { %v4357_v20 = vpop.f32.mrb[77].mxu1 }
 0x4e6   : > { %v4358_v34 = vadd.f32 %v4357_v20, %v4356_v42  ;;  %v4359_v3 = vpop.f32.mrb[78].mxu1 }
 0x4e7   : > { %v4360_v24 = vpop.f32.mrb[79].mxu1 }
 0x4e8   : > { %v3247_v60 = vadd.f32 %v4478_v8, %v4358_v34  ;;  %v4361_v5 = vadd.f32 %v4360_v24, %v4359_v3  ;;  %v3354_v10 = vld [vmem:[#allocation3 + $0xa8] sm:$0xff] }
 0x4e9   : > { %4237 = vmatprep.mubr.msk.bf16.mxu0 %vm878_vm4, %v3354_v10  ;;  %v3361_v10 = vld [vmem:[#allocation3 + $0xe0] sm:$0xff] }
 0x4ea   : > { %v3250_v49 = vadd.f32 %v4479_v29, %v4361_v5  ;;  %v4482_v30 = vpop.f32.mrb[24].mxu0  ;;  %3613 = vmatmul.mubr.bf16.gmra.mrb[72].mxu0 %v3353_v39 }
 0x4eb   : > { %v3254_v41 = vpop.f32.mrb[25].mxu0 }
 0x4ec   : > { %v3312_v61 = vpack.c.bf16 %v3250_v49, %v3247_v60  ;;  %v4483_v47 = vpop.f32.mrb[26].mxu0 }
 0x4ed   : > { %v3257_v26 = vpop.f32.mrb[27].mxu0 }
 0x4ee   : > { %3328 = vst.msk [vmem:[#allocation3 + $0xb8] sm:$0xff] %vm878_vm4, %v3312_v61 }
 0x4ef   : > { %v4362_v55 = vpop.f32.mrb[80].mxu1 }
 0x4f0   : > { %v4363_v22 = vpop.f32.mrb[81].mxu1 }
 0x4f1   : > { %v4364_v63 = vadd.f32 %v4363_v22, %v4362_v55  ;;  %v4365_v13 = vpop.f32.mrb[82].mxu1 }
 0x4f2   : > { %v4366_v17 = vpop.f32.mrb[83].mxu1 }
 0x4f3   : > { %v3255_v27 = vadd.f32 %v4364_v63, %v3254_v41  ;;  %v4367_v62 = vadd.f32 %v4366_v17, %v4365_v13 }
 0x4f5   : > { %v3356_v50 = vld [vmem:[#allocation3 + $0xb8] sm:$0xff]  ;;  %v3258_v35 = vadd.f32 %v4367_v62, %v3257_v26 }
 0x4f6   : > { %4238 = vmatprep.mubr.msk.bf16.mxu0 %vm878_vm4, %v3356_v50 }
 0x4f7   : > { %3621 = vmatmul.mubr.bf16.gmra.mrb[76].mxu0 %v3355_v56  ;;  %v3313_v28 = vpack.c.bf16 %v3258_v35, %v3255_v27 }
 0x4f9   : > { %3329 = vst.msk [vmem:[#allocation3 + $0xc8] sm:$0xff] %vm878_vm4, %v3313_v28 }
 0x4fc   : > { %v4368_v21 = vpop.f32.mrb[84].mxu1 }
 0x4fd   : > { %v4369_v1 = vpop.f32.mrb[85].mxu1 }
 0x4fe   : > { %v4370_v23 = vadd.f32 %v4369_v1, %v4368_v21  ;;  %v4371_v18 = vpop.f32.mrb[86].mxu1 }
 0x4ff   : > { %v4372_v15 = vpop.f32.mrb[87].mxu1 }
 0x500   : > { %v3263_v4 = vadd.f32 %v4482_v30, %v4370_v23  ;;  %v4373_v6 = vadd.f32 %v4372_v15, %v4371_v18  ;;  %v3358_v45 = vld [vmem:[#allocation3 + $0xc8] sm:$0xff] }
 0x501   : > { %4239 = vmatprep.mubr.msk.bf16.mxu0 %vm878_vm4, %v3358_v45 }
 0x502   : > { %v3266_v54 = vadd.f32 %v4483_v47, %v4373_v6  ;;  %v4486_v11 = vpop.f32.mrb[28].mxu0  ;;  %3629 = vmatmul.mubr.bf16.gmra.mrb[80].mxu0 %v3357_v2 }
 0x503   : > { %v3270_v51 = vpop.f32.mrb[29].mxu0 }
 0x504   : > { %v3314_v16 = vpack.c.bf16 %v3266_v54, %v3263_v4  ;;  %v7645_v19 = vpop.f32.mrb[30].mxu0 }
 0x505   : > { %v3273_v57 = vpop.f32.mrb[31].mxu0 }
 0x506   : > { %3330 = vst.msk [vmem:[#allocation3 + $0xd8] sm:$0xff] %vm878_vm4, %v3314_v16 }
 0x507   : > { %v4374_v7 = vpop.f32.mrb[88].mxu1 }
 0x508   : > { %v4375_v46 = vpop.f32.mrb[89].mxu1 }
 0x509   : > { %v4376_v52 = vadd.f32 %v4375_v46, %v4374_v7  ;;  %v4377_v37 = vpop.f32.mrb[90].mxu1 }
 0x50a   : > { %v4378_v32 = vpop.f32.mrb[91].mxu1  ;;  %v3534_v44 = vpop.f32.mrb[32].mxu0 }
 0x50b   : > { %v3271_v8 = vadd.f32 %v4376_v52, %v3270_v51  ;;  %v4379_v25 = vadd.f32 %v4378_v32, %v4377_v37  ;;  %v7654_v29 = vadd.f32 %v7651_v12, %v3534_v44  ;;  %v3536_v9 = vpop.f32.mrb[33].mxu0 }
 0x50c   : > { %v3537_v53 = vpop.f32.mrb[34].mxu0  ;;  %v3363_v9 = vld [vmem:[#allocation3 + $0xf0] sm:$0xff] }
 0x50d   : > { %v3360_v43 = vld [vmem:[#allocation3 + $0xd8] sm:$0xff]  ;;  %v3274_v0 = vadd.f32 %v4379_v25, %v3273_v57  ;;  %v3661_v58 = vand.u32 2147483647, %v7654_v29  ;;  %v7659_v36 = vadd.f32 %v7651_v12, %v3537_v53  ;;  %v3539_v33 = vpop.f32.mrb[35].mxu0  ;;  %vm3853_vm2 = vcmp.ge.f32.partialorder %v7654_v29, 0.0 }
 0x50e   : > { %4240 = vmatprep.mubr.msk.bf16.mxu0 %vm878_vm4, %v3360_v43 }
 0x50f   : > { %3637 = vmatmul.mubr.bf16.gmra.mrb[84].mxu0 %v3359_v59  ;;  %v3315_v38 = vpack.c.bf16 %v3274_v0, %v3271_v8  ;;  %v3693_v31 = vsub.f32 0.0, %v3661_v58  ;;  %v3662_v48 = vand.u32 2147483647, %v7659_v36  ;;  %vm3854_vm0 = vcmp.ge.f32.partialorder %v7659_v36, 0.0 }
 0x511   : > { %3331 = vst.msk [vmem:[#allocation3 + $0xe8] sm:$0xff] %vm878_vm4, %v3315_v38  ;;  %v3725_v14 = vmul.f32 1.442695, %v3693_v31  ;;  %v3694_v40 = vsub.f32 0.0, %v3662_v48 }
 0x512   : > { %v3542_v42 = vpop.f32.mrb[36].mxu0 }
 0x513   : > { %4670 = vpow2.f32 %v3725_v14  ;;  %v3727_v20 = vmul.f32 1.442695, %v3694_v40  ;;  %v7664_v34 = vadd.f32 %v7651_v12, %v3542_v42  ;;  %v3544_v3 = vpop.f32.mrb[37].mxu0  ;;  %v3949_v40 = vld [vmem:[%s5111_s11] sm:$0xff] }
 0x514   : > { %v3545_v24 = vpop.f32.mrb[38].mxu0 }
 0x515   : > { %4672 = vpow2.f32 %v3727_v20  ;;  %v3663_v60 = vand.u32 2147483647, %v7664_v34  ;;  %v7668_v5 = vadd.f32 %v7651_v12, %v3545_v24  ;;  %v3547_v39 = vpop.f32.mrb[39].mxu0 }
 0x517   : > { %v3695_v49 = vsub.f32 0.0, %v3663_v60  ;;  %v3664_v30 = vand.u32 2147483647, %v7668_v5  ;;  %vm3856_vm14 = vcmp.ge.f32.partialorder %v7668_v5, 0.0 }
 0x518   : > { %v3362_v61 = vld [vmem:[#allocation3 + $0xe8] sm:$0xff] }
 0x519   : > { %v4380_v41 = vpop.f32.mrb[92].mxu1  ;;  %4241 = vmatprep.mubr.msk.bf16.mxu0 %vm878_vm4, %v3362_v61  ;;  %v3729_v47 = vmul.f32 1.442695, %v3695_v49  ;;  %v3696_v26 = vsub.f32 0.0, %v3664_v30  ;;  %v3950_v49 = vld [vmem:[%s5111_s11 + $0x8] sm:$0xff] }
 0x51a   : > { %v4381_v55 = vpop.f32.mrb[93].mxu1  ;;  %3645 = vmatmul.mubr.bf16.gmra.mrb[88].mxu0 %v3361_v10 }
 0x51b   : > { %v4382_v22 = vadd.f32 %v4381_v55, %v4380_v41  ;;  %v4383_v63 = vpop.f32.mrb[94].mxu1  ;;  %4674 = vpow2.f32 %v3729_v47  ;;  %v3731_v13 = vmul.f32 1.442695, %v3696_v26 }
 0x51c   : > { %v4384_v17 = vpop.f32.mrb[95].mxu1  ;;  %v3550_v50 = vpop.f32.mrb[40].mxu0 }
 0x51d   : > { %v4671_v27 = vpop.eup %4670  ;;  %v3279_v62 = vadd.f32 %v4486_v11, %v4382_v22  ;;  %v4385_v56 = vadd.f32 %v4384_v17, %v4383_v63  ;;  %4676 = vpow2.f32 %v3731_v13  ;;  %v7673_v28 = vadd.f32 %v7651_v12, %v3550_v50  ;;  %v3552_v21 = vpop.f32.mrb[41].mxu0 }
 0x51e   : > { %v3789_v35 = vadd.f32 1.0, %v4671_v27  ;;  %v3553_v18 = vpop.f32.mrb[42].mxu0 }
 0x51f   : > { %v4673_v1 = vpop.eup %4672  ;;  %v3282_v23 = vadd.f32 %v7645_v19, %v4385_v56  ;;  %v3665_v4 = vand.u32 2147483647, %v7673_v28  ;;  %v3555_v6 = vpop.f32.mrb[43].mxu0  ;;  %v7678_v45 = vadd.f32 %v7651_v12, %v3553_v18  ;;  %vm3857_vm9 = vcmp.ge.f32.partialorder %v7673_v28, 0.0 }
 0x520   : > { %4678 = vrcp.f32 %v3789_v35  ;;  %v3790_v15 = vadd.f32 1.0, %v4673_v1 }
 0x521   : > { %v3316_v2 = vpack.c.bf16 %v3282_v23, %v3279_v62  ;;  %v3697_v54 = vsub.f32 0.0, %v3665_v4  ;;  %v3666_v11 = vand.u32 2147483647, %v7678_v45  ;;  %v3951_v23 = vld [vmem:[%s5111_s11 + $0x10] sm:$0xff]  ;;  %vm3858_vm5 = vcmp.ge.f32.partialorder %v7678_v45, 0.0 }
 0x522   : > { %4680 = vrcp.f32 %v3790_v15 }
 0x523   : > { %3332 = vst.msk [vmem:[#allocation3 + $0xf8] sm:$0xff] %vm878_vm4, %v3316_v2  ;;  %v3733_v16 = vmul.f32 1.442695, %v3697_v54  ;;  %v3698_v19 = vsub.f32 0.0, %v3666_v11  ;;  %v3952_v2 = vld [vmem:[%s5111_s11 + $0x18] sm:$0xff] }
 0x524   : > { %v3558_v57 = vpop.f32.mrb[44].mxu0 }
 0x525   : > { %v4675_v51 = vpop.eup %4674  ;;  %4682 = vpow2.f32 %v3733_v16  ;;  %v7683_v46 = vadd.f32 %v7651_v12, %v3558_v57  ;;  %v3560_v52 = vpop.f32.mrb[45].mxu0  ;;  %v3735_v32 = vmul.f32 1.442695, %v3698_v19 }
 0x526   : > { %v3791_v7 = vadd.f32 1.0, %v4675_v51  ;;  %v3561_v44 = vpop.f32.mrb[46].mxu0 }
 0x527   : > { %v4677_v37 = vpop.eup %4676  ;;  %v3667_v25 = vand.u32 2147483647, %v7683_v46  ;;  %v3563_v59 = vpop.f32.mrb[47].mxu0  ;;  %v7688_v43 = vadd.f32 %v7651_v12, %v3561_v44  ;;  %vm3859_vm11 = vcmp.ge.f32.partialorder %v7683_v46, 0.0 }
 0x528   : > { %4684 = vrcp.f32 %v3791_v7  ;;  %v3792_v8 = vadd.f32 1.0, %v4677_v37 }
 0x529   : > { %4686 = vpow2.f32 %v3735_v32  ;;  %v3699_v58 = vsub.f32 0.0, %v3667_v25  ;;  %v3668_v38 = vand.u32 2147483647, %v7688_v43  ;;  %vm3860_vm12 = vcmp.ge.f32.partialorder %v7688_v43, 0.0 }
 0x52a   : > { %v4679_v53 = vpop.eup %4678  ;;  %v3364_v0 = vld [vmem:[#allocation3 + $0xf8] sm:$0xff]  ;;  %4688 = vrcp.f32 %v3792_v8  ;;  %v3953_v8 = vld [vmem:[%s5111_s11 + $0x20] sm:$0xff] }
 0x52b   : > { %4242 = vmatprep.mubr.msk.bf16.mxu0 %vm878_vm4, %v3364_v0  ;;  %v3885_v33 = vmul.f32 %v4679_v53, %v4671_v27  ;;  %v3737_v48 = vmul.f32 1.442695, %v3699_v58  ;;  %v3700_v20 = vsub.f32 0.0, %v3668_v38  ;;  %vm3855_vm4 = vcmp.ge.f32.partialorder %v7664_v34, 0.0 }
 0x52c   : > { %v4681_v31 = vpop.eup %4680  ;;  %3653 = vmatmul.mubr.bf16.gmra.mrb[92].mxu0 %v3363_v9  ;;  %v3566_v3 = vpop.f32.mrb[48].mxu0 }
 0x52d   : > { %v3917_v14 = vsel %vm3853_vm2, %v4679_v53, %v3885_v33  ;;  %v3886_v42 = vmul.f32 %v4681_v31, %v4673_v1  ;;  %4690 = vpow2.f32 %v3737_v48  ;;  %v7699_v60 = vadd.f32 %v7651_v12, %v3566_v3  ;;  %v3568_v39 = vpop.f32.mrb[49].mxu0  ;;  %v3954_v33 = vld [vmem:[%s5111_s11 + $0x28] sm:$0xff] }
 0x52e   : > { %v3981_v24 = vmul.f32 %v3917_v14, %v7654_v29  ;;  %v3739_v30 = vmul.f32 1.442695, %v3700_v20  ;;  %v3569_v61 = vpop.f32.mrb[50].mxu0  ;;  %v3955_v20 = vld [vmem:[%s5111_s11 + $0x30] sm:$0xff] }
 0x52f   : > { %v3918_v10 = vsel %vm3854_vm0, %v4681_v31, %v3886_v42  ;;  %v4683_v41 = vpop.eup %4682  ;;  %v3669_v55 = vand.u32 2147483647, %v7699_v60  ;;  %v3571_v22 = vpop.f32.mrb[51].mxu0  ;;  %v7705_v29 = vadd.f32 %v7651_v12, %v3569_v61  ;;  %vm3861_vm3 = vcmp.ge.f32.partialorder %v7699_v60, 0.0 }
 0x530   : > { %v4013_v47 = vadd.f32 %v3981_v24, %v3949_v40  ;;  %v3982_v26 = vmul.f32 %v3918_v10, %v7659_v36  ;;  %v3793_v63 = vadd.f32 1.0, %v4683_v41  ;;  %4692 = vpow2.f32 %v3739_v30  ;;  %v3956_v10 = vld [vmem:[%s5111_s11 + $0x38] sm:$0xff] }
 0x531   : > { %v3701_v27 = vsub.f32 0.0, %v3669_v55  ;;  %v3670_v56 = vand.u32 2147483647, %v7705_v29  ;;  %vm3862_vm7 = vcmp.ge.f32.partialorder %v7705_v29, 0.0 }
 0x532   : > { %v4685_v13 = vpop.eup %4684  ;;  %4045 = vst [vmem:[%s7707_s16] sm:$0xff] %v4013_v47  ;;  %v4014_v17 = vadd.f32 %v3982_v26, %v3950_v49  ;;  %4694 = vrcp.f32 %v3793_v63 }
 0x533   : > { %v4687_v36 = vpop.eup %4686  ;;  %v3887_v62 = vmul.f32 %v4685_v13, %v4675_v51  ;;  %v3741_v21 = vmul.f32 1.442695, %v3701_v27  ;;  %v3702_v15 = vsub.f32 0.0, %v3670_v56 }
 0x534   : > { %v4689_v50 = vpop.eup %4688  ;;  %4046 = vst [vmem:[%s7707_s16 + $0x8] sm:$0xff] %v4014_v17  ;;  %v3794_v35 = vadd.f32 1.0, %v4687_v36 }
 0x535   : > { %v3919_v1 = vsel %vm3855_vm4, %v4685_v13, %v3887_v62  ;;  %v3888_v18 = vmul.f32 %v4689_v50, %v4677_v37  ;;  %v3743_v54 = vmul.f32 1.442695, %v3702_v15 }
 0x536   : > { %v3983_v4 = vmul.f32 %v3919_v1, %v7664_v34  ;;  %4696 = vrcp.f32 %v3794_v35 }
 0x537   : > { %v3920_v6 = vsel %vm3856_vm14, %v4689_v50, %v3888_v18  ;;  %4698 = vpow2.f32 %v3741_v21  ;;  %v4691_v11 = vpop.eup %4690 }
 0x538   : > { %v4015_v16 = vadd.f32 %v3983_v4, %v3951_v23  ;;  %v3984_v51 = vmul.f32 %v3920_v6, %v7668_v5  ;;  %v3795_v19 = vadd.f32 1.0, %v4691_v11  ;;  %4700 = vpow2.f32 %v3743_v54 }
 0x53a   : > { %4047 = vst [vmem:[%s7707_s16 + $0x10] sm:$0xff] %v4015_v16  ;;  %v4016_v57 = vadd.f32 %v3984_v51, %v3952_v2  ;;  %v4693_v7 = vpop.eup %4692  ;;  %4702 = vrcp.f32 %v3795_v19 }
 0x53b   : > { %v3796_v52 = vadd.f32 1.0, %v4693_v7 }
 0x53c   : > { %4048 = vst [vmem:[%s7707_s16 + $0x18] sm:$0xff] %v4016_v57  ;;  %v4695_v34 = vpop.eup %4694 }
 0x53d   : > { %v3889_v37 = vmul.f32 %v4695_v34, %v4683_v41  ;;  %4704 = vrcp.f32 %v3796_v52 }
 0x53f   : > { %v3921_v44 = vsel %vm3857_vm9, %v4695_v34, %v3889_v37  ;;  %v3959_v37 = vld [vmem:[%s5111_s11 + $0x50] sm:$0xff] }
 0x540   : > { %v4697_v32 = vpop.eup %4696  ;;  %v3985_v25 = vmul.f32 %v3921_v44, %v7673_v28 }
 0x541   : > { %v4699_v5 = vpop.eup %4698  ;;  %v3890_v59 = vmul.f32 %v4697_v32, %v4687_v36 }
 0x542   : > { %v3797_v9 = vadd.f32 1.0, %v4699_v5  ;;  %v4701_v53 = vpop.eup %4700  ;;  %v4017_v0 = vadd.f32 %v3985_v25, %v3953_v8 }
 0x543   : > { %v3922_v58 = vsel %vm3858_vm5, %v4697_v32, %v3890_v59  ;;  %v3798_v31 = vadd.f32 1.0, %v4701_v53 }
 0x544   : > { %v3986_v38 = vmul.f32 %v3922_v58, %v7678_v45  ;;  %4706 = vrcp.f32 %v3797_v9  ;;  %v4703_v48 = vpop.eup %4702  ;;  %4049 = vst [vmem:[%s7707_s16 + $0x20] sm:$0xff] %v4017_v0  ;;  %v3960_v9 = vld [vmem:[%s5111_s11 + $0x58] sm:$0xff] }
 0x545   : > { %v3891_v28 = vmul.f32 %v4703_v48, %v4691_v11  ;;  %4708 = vrcp.f32 %v3798_v31 }
 0x546   : > { %v4018_v14 = vadd.f32 %v3986_v38, %v3954_v33 }
 0x547   : > { %v4705_v40 = vpop.eup %4704  ;;  %v3923_v42 = vsel %vm3859_vm11, %v4703_v48, %v3891_v28 }
 0x548   : > { %4050 = vst [vmem:[%s7707_s16 + $0x28] sm:$0xff] %v4018_v14  ;;  %v3987_v45 = vmul.f32 %v3923_v42, %v7683_v46  ;;  %v3892_v3 = vmul.f32 %v4705_v40, %v4693_v7  ;;  %v3957_v46 = vld [vmem:[%s5111_s11 + $0x40] sm:$0xff] }
 0x54a   : > { %v4019_v24 = vadd.f32 %v3987_v45, %v3955_v20  ;;  %v3924_v39 = vsel %vm3860_vm12, %v4705_v40, %v3892_v3 }
 0x54b   : > { %v3988_v49 = vmul.f32 %v3924_v39, %v7688_v43  ;;  %v3958_v43 = vld [vmem:[%s5111_s11 + $0x48] sm:$0xff] }
 0x54c   : > { %4051 = vst [vmem:[%s7707_s16 + $0x30] sm:$0xff] %v4019_v24 }
 0x54d   : > { %v4020_v61 = vadd.f32 %v3988_v49, %v3956_v10  ;;  %v3961_v10 = vld [vmem:[%s5111_s11 + $0x60] sm:$0xff] }
 0x54e   : > { %v4707_v30 = vpop.eup %4706 }
 0x54f   : > { %v3893_v41 = vmul.f32 %v4707_v30, %v4699_v5  ;;  %v4709_v47 = vpop.eup %4708  ;;  %4052 = vst [vmem:[%s7707_s16 + $0x38] sm:$0xff] %v4020_v61 }
 0x550   : > { %v3894_v55 = vmul.f32 %v4709_v47, %v4701_v53 }
 0x551   : > { %v3925_v26 = vsel %vm3861_vm3, %v4707_v30, %v3893_v41 }
 0x552   : > { %v3989_v22 = vmul.f32 %v3925_v26, %v7699_v60  ;;  %v3926_v13 = vsel %vm3862_vm7, %v4709_v47, %v3894_v55  ;;  %v3962_v47 = vld [vmem:[%s5111_s11 + $0x68] sm:$0xff] }
 0x553   : > { %v3574_v63 = vpop.f32.mrb[52].mxu0  ;;  %v3990_v62 = vmul.f32 %v3926_v13, %v7705_v29 }
 0x554   : > { %v3575_v17 = vadd.f32 %v7651_v12, %v3574_v63  ;;  %v3576_v27 = vpop.f32.mrb[53].mxu0  ;;  %v4021_v36 = vadd.f32 %v3989_v22, %v3957_v46 }
 0x555   : > { %v3577_v56 = vpop.f32.mrb[54].mxu0  ;;  %v4022_v1 = vadd.f32 %v3990_v62, %v3958_v43 }
 0x556   : > { %v3671_v50 = vand.u32 2147483647, %v3575_v17  ;;  %v3578_v35 = vadd.f32 %v7651_v12, %v3577_v56  ;;  %v3579_v21 = vpop.f32.mrb[55].mxu0  ;;  %4053 = vst [vmem:[%s7707_s16 + $0x40] sm:$0xff] %v4021_v36  ;;  %vm3863_vm1 = vcmp.ge.f32.partialorder %v3575_v17, 0.0 }
 0x557   : > { %4054 = vst [vmem:[%s7707_s16 + $0x48] sm:$0xff] %v4022_v1 }
 0x558   : > { %v3703_v23 = vsub.f32 0.0, %v3671_v50  ;;  %v3672_v18 = vand.u32 2147483647, %v3578_v35  ;;  %vm3864_vm10 = vcmp.ge.f32.partialorder %v3578_v35, 0.0 }
 0x55a   : > { %v3745_v60 = vmul.f32 1.442695, %v3703_v23  ;;  %v3704_v15 = vsub.f32 0.0, %v3672_v18 }
 0x55c   : > { %4710 = vpow2.f32 %v3745_v60  ;;  %v3747_v4 = vmul.f32 1.442695, %v3704_v15 }
 0x55e   : > { %4712 = vpow2.f32 %v3747_v4 }
 0x566   : > { %v4711_v6 = vpop.eup %4710 }
 0x567   : > { %v3799_v2 = vadd.f32 1.0, %v4711_v6 }
 0x568   : > { %v4713_v54 = vpop.eup %4712 }
 0x569   : > { %4714 = vrcp.f32 %v3799_v2  ;;  %v3800_v29 = vadd.f32 1.0, %v4713_v54 }
 0x56b   : > { %4716 = vrcp.f32 %v3800_v29 }
 0x572   : > { %v3582_v16 = vpop.f32.mrb[56].mxu0 }
 0x573   : > { %v4715_v11 = vpop.eup %4714  ;;  %v3583_v19 = vadd.f32 %v7651_v12, %v3582_v16  ;;  %v3584_v57 = vpop.f32.mrb[57].mxu0 }
 0x574   : > { %v3895_v51 = vmul.f32 %v4715_v11, %v4711_v6  ;;  %v3585_v52 = vpop.f32.mrb[58].mxu0 }
 0x575   : > { %v4717_v7 = vpop.eup %4716  ;;  %v3673_v44 = vand.u32 2147483647, %v3583_v19  ;;  %v3587_v8 = vpop.f32.mrb[59].mxu0  ;;  %v3586_v25 = vadd.f32 %v7651_v12, %v3585_v52  ;;  %vm3865_vm15 = vcmp.ge.f32.partialorder %v3583_v19, 0.0 }
 0x576   : > { %v3927_v34 = vsel %vm3863_vm1, %v4715_v11, %v3895_v51  ;;  %v3896_v32 = vmul.f32 %v4717_v7, %v4713_v54 }
 0x577   : > { %v3991_v5 = vmul.f32 %v3927_v34, %v3575_v17  ;;  %v3705_v53 = vsub.f32 0.0, %v3673_v44  ;;  %v3674_v33 = vand.u32 2147483647, %v3586_v25  ;;  %vm3866_vm13 = vcmp.ge.f32.partialorder %v3586_v25, 0.0 }
 0x578   : > { %v3928_v59 = vsel %vm3864_vm10, %v4717_v7, %v3896_v32 }
 0x579   : > { %v4023_v0 = vadd.f32 %v3991_v5, %v3959_v37  ;;  %v3992_v58 = vmul.f32 %v3928_v59, %v3578_v35  ;;  %v3749_v38 = vmul.f32 1.442695, %v3705_v53  ;;  %v3706_v48 = vsub.f32 0.0, %v3674_v33 }
 0x57b   : > { %4055 = vst [vmem:[%s7707_s16 + $0x50] sm:$0xff] %v4023_v0  ;;  %v4024_v31 = vadd.f32 %v3992_v58, %v3960_v9  ;;  %4718 = vpow2.f32 %v3749_v38  ;;  %v3751_v14 = vmul.f32 1.442695, %v3706_v48 }
 0x57d   : > { %4056 = vst [vmem:[%s7707_s16 + $0x58] sm:$0xff] %v4024_v31  ;;  %4720 = vpow2.f32 %v3751_v14 }
 0x585   : > { %v4719_v28 = vpop.eup %4718 }
 0x586   : > { %v3801_v40 = vadd.f32 1.0, %v4719_v28 }
 0x587   : > { %v4721_v42 = vpop.eup %4720 }
 0x588   : > { %4722 = vrcp.f32 %v3801_v40  ;;  %v3802_v20 = vadd.f32 1.0, %v4721_v42  ;;  %v3963_v40 = vld [vmem:[%s5111_s11 + $0x70] sm:$0xff] }
 0x58a   : > { %4724 = vrcp.f32 %v3802_v20 }
 0x592   : > { %v4723_v45 = vpop.eup %4722 }
 0x593   : > { %v3897_v3 = vmul.f32 %v4723_v45, %v4719_v28 }
 0x594   : > { %v4725_v24 = vpop.eup %4724 }
 0x595   : > { %v3929_v39 = vsel %vm3865_vm15, %v4723_v45, %v3897_v3  ;;  %v3898_v30 = vmul.f32 %v4725_v24, %v4721_v42 }
 0x596   : > { %v3993_v49 = vmul.f32 %v3929_v39, %v3583_v19 }
 0x597   : > { %v3930_v41 = vsel %vm3866_vm13, %v4725_v24, %v3898_v30  ;;  %v3964_v24 = vld [vmem:[%s5111_s11 + $0x78] sm:$0xff] }
 0x598   : > { %v4025_v61 = vadd.f32 %v3993_v49, %v3961_v10  ;;  %v3994_v26 = vmul.f32 %v3930_v41, %v3586_v25 }
 0x59a   : > { %v3590_v46 = vpop.f32.mrb[60].mxu0  ;;  %4057 = vst [vmem:[%s7707_s16 + $0x60] sm:$0xff] %v4025_v61  ;;  %v4026_v63 = vadd.f32 %v3994_v26, %v3962_v47 }
 0x59b   : > { %v3591_v55 = vadd.f32 %v7651_v12, %v3590_v46  ;;  %v3592_v22 = vpop.f32.mrb[61].mxu0 }
 0x59c   : > { %v3593_v13 = vpop.f32.mrb[62].mxu0  ;;  %4058 = vst [vmem:[%s7707_s16 + $0x68] sm:$0xff] %v4026_v63 }
 0x59d   : > { %v3675_v43 = vand.u32 2147483647, %v3591_v55  ;;  %v7757_v17 = vadd.f32 %v7651_v12, %v3593_v13  ;;  %v3595_v27 = vpop.f32.mrb[63].mxu0  ;;  %vm3867_vm6 = vcmp.ge.f32.partialorder %v3591_v55, 0.0 }
 0x59f   : > { %v3707_v36 = vsub.f32 0.0, %v3675_v43  ;;  %v3676_v62 = vand.u32 2147483647, %v7757_v17  ;;  %vm3868_vm8 = vcmp.ge.f32.partialorder %v7757_v17, 0.0 }
 0x5a1   : > { %v3753_v56 = vmul.f32 1.442695, %v3707_v36  ;;  %v3708_v50 = vsub.f32 0.0, %v3676_v62 }
 0x5a3   : > { %4726 = vpow2.f32 %v3753_v56  ;;  %v3755_v35 = vmul.f32 1.442695, %v3708_v50 }
 0x5a5   : > { %4728 = vpow2.f32 %v3755_v35  ;;  %v3598_v21 = vpop.f32.mrb[64].mxu0 }
 0x5a6   : > { %v7762_v1 = vadd.f32 %v7651_v12, %v3598_v21  ;;  %v3600_v23 = vpop.f32.mrb[65].mxu0 }
 0x5a7   : > { %v3601_v18 = vpop.f32.mrb[66].mxu0  ;;  %v3965_v23 = vld [vmem:[%s5111_s11 + $0x80] sm:$0xff] }
 0x5a8   : > { %v3677_v60 = vand.u32 2147483647, %v7762_v1  ;;  %v7766_v15 = vadd.f32 %v7651_v12, %v3601_v18  ;;  %v3603_v4 = vpop.f32.mrb[67].mxu0  ;;  %vm3869_vm2 = vcmp.ge.f32.partialorder %v7762_v1, 0.0 }
 0x5aa   : > { %v3709_v6 = vsub.f32 0.0, %v3677_v60  ;;  %v3678_v2 = vand.u32 2147483647, %v7766_v15  ;;  %vm3870_vm0 = vcmp.ge.f32.partialorder %v7766_v15, 0.0 }
 0x5ac   : > { %v3757_v29 = vmul.f32 1.442695, %v3709_v6  ;;  %v3710_v11 = vsub.f32 0.0, %v3678_v2  ;;  %v3966_v2 = vld [vmem:[%s5111_s11 + $0x88] sm:$0xff] }
 0x5ad   : > { %v4727_v54 = vpop.eup %4726 }
 0x5ae   : > { %v3803_v16 = vadd.f32 1.0, %v4727_v54  ;;  %4730 = vpow2.f32 %v3757_v29  ;;  %v3759_v19 = vmul.f32 1.442695, %v3710_v11 }
 0x5af   : > { %v4729_v51 = vpop.eup %4728 }
 0x5b0   : > { %4732 = vrcp.f32 %v3803_v16  ;;  %v3804_v57 = vadd.f32 1.0, %v4729_v51 }
 0x5b1   : > { %4734 = vpow2.f32 %v3759_v19 }
 0x5b2   : > { %4736 = vrcp.f32 %v3804_v57  ;;  %v3606_v7 = vpop.f32.mrb[68].mxu0 }
 0x5b3   : > { %v7770_v52 = vadd.f32 %v7651_v12, %v3606_v7  ;;  %v3608_v34 = vpop.f32.mrb[69].mxu0 }
 0x5b4   : > { %v3609_v37 = vpop.f32.mrb[70].mxu0 }
 0x5b5   : > { %v3679_v32 = vand.u32 2147483647, %v7770_v52  ;;  %v7774_v44 = vadd.f32 %v7651_v12, %v3609_v37  ;;  %v3611_v8 = vpop.f32.mrb[71].mxu0  ;;  %vm3871_vm4 = vcmp.ge.f32.partialorder %v7770_v52, 0.0 }
 0x5b7   : > { %v3711_v5 = vsub.f32 0.0, %v3679_v32  ;;  %v3680_v25 = vand.u32 2147483647, %v7774_v44  ;;  %vm3872_vm14 = vcmp.ge.f32.partialorder %v7774_v44, 0.0 }
 0x5b8   : > { %v4731_v59 = vpop.eup %4730 }
 0x5b9   : > { %v3761_v9 = vmul.f32 1.442695, %v3711_v5  ;;  %v3712_v53 = vsub.f32 0.0, %v3680_v25  ;;  %v3805_v58 = vadd.f32 1.0, %v4731_v59 }
 0x5ba   : > { %v4733_v0 = vpop.eup %4732 }
 0x5bb   : > { %v4735_v33 = vpop.eup %4734  ;;  %v3899_v38 = vmul.f32 %v4733_v0, %v4727_v54  ;;  %4738 = vpow2.f32 %v3761_v9  ;;  %v3763_v31 = vmul.f32 1.442695, %v3712_v53 }
 0x5bc   : > { %v4737_v48 = vpop.eup %4736  ;;  %4740 = vrcp.f32 %v3805_v58  ;;  %v3806_v14 = vadd.f32 1.0, %v4735_v33 }
 0x5bd   : > { %v3931_v28 = vsel %vm3867_vm6, %v4733_v0, %v3899_v38  ;;  %v3900_v42 = vmul.f32 %v4737_v48, %v4729_v51  ;;  %4742 = vpow2.f32 %v3763_v31  ;;  %v3614_v45 = vpop.f32.mrb[72].mxu0  ;;  %v3967_v38 = vld [vmem:[%s5111_s11 + $0x90] sm:$0xff] }
 0x5be   : > { %v3995_v20 = vmul.f32 %v3931_v28, %v3591_v55  ;;  %4744 = vrcp.f32 %v3806_v14  ;;  %v7781_v39 = vadd.f32 %v7651_v12, %v3614_v45  ;;  %v3616_v10 = vpop.f32.mrb[73].mxu0 }
 0x5bf   : > { %v3932_v3 = vsel %vm3868_vm8, %v4737_v48, %v3900_v42  ;;  %v3617_v61 = vpop.f32.mrb[74].mxu0 }
 0x5c0   : > { %v4027_v49 = vadd.f32 %v3995_v20, %v3963_v40  ;;  %v3996_v30 = vmul.f32 %v3932_v3, %v7757_v17  ;;  %v3681_v41 = vand.u32 2147483647, %v7781_v39  ;;  %v7786_v47 = vadd.f32 %v7651_v12, %v3617_v61  ;;  %v3619_v26 = vpop.f32.mrb[75].mxu0  ;;  %v3968_v40 = vld [vmem:[%s5111_s11 + $0x98] sm:$0xff] }
 0x5c1   : > { %vm3873_vm9 = vcmp.ge.f32.partialorder %v7781_v39, 0.0 }
 0x5c2   : > { %4059 = vst [vmem:[%s7707_s16 + $0x70] sm:$0xff] %v4027_v49  ;;  %v4028_v46 = vadd.f32 %v3996_v30, %v3964_v24  ;;  %v3713_v55 = vsub.f32 0.0, %v3681_v41  ;;  %v3682_v22 = vand.u32 2147483647, %v7786_v47  ;;  %vm3874_vm5 = vcmp.ge.f32.partialorder %v7786_v47, 0.0 }
 0x5c4   : > { %4060 = vst [vmem:[%s7707_s16 + $0x78] sm:$0xff] %v4028_v46  ;;  %v3765_v13 = vmul.f32 1.442695, %v3713_v55  ;;  %v3714_v43 = vsub.f32 0.0, %v3682_v22 }
 0x5c5   : > { %v4739_v63 = vpop.eup %4738 }
 0x5c6   : > { %v4741_v27 = vpop.eup %4740  ;;  %v3807_v17 = vadd.f32 1.0, %v4739_v63  ;;  %4746 = vpow2.f32 %v3765_v13  ;;  %v3767_v56 = vmul.f32 1.442695, %v3714_v43 }
 0x5c7   : > { %v4743_v36 = vpop.eup %4742  ;;  %v3901_v62 = vmul.f32 %v4741_v27, %v4731_v59 }
 0x5c8   : > { %v4745_v50 = vpop.eup %4744  ;;  %4748 = vrcp.f32 %v3807_v17  ;;  %v3808_v35 = vadd.f32 1.0, %v4743_v36 }
 0x5c9   : > { %v3933_v21 = vsel %vm3869_vm2, %v4741_v27, %v3901_v62  ;;  %v3902_v18 = vmul.f32 %v4745_v50, %v4735_v33  ;;  %4750 = vpow2.f32 %v3767_v56  ;;  %v3969_v62 = vld [vmem:[%s5111_s11 + $0xa0] sm:$0xff] }
 0x5ca   : > { %v3997_v60 = vmul.f32 %v3933_v21, %v7762_v1  ;;  %4752 = vrcp.f32 %v3808_v35  ;;  %v3622_v4 = vpop.f32.mrb[76].mxu0 }
 0x5cb   : > { %v3934_v6 = vsel %vm3870_vm0, %v4745_v50, %v3902_v18  ;;  %v7797_v54 = vadd.f32 %v7651_v12, %v3622_v4  ;;  %v3624_v29 = vpop.f32.mrb[77].mxu0 }
 0x5cc   : > { %v4029_v11 = vadd.f32 %v3997_v60, %v3965_v23  ;;  %v3998_v16 = vmul.f32 %v3934_v6, %v7766_v15  ;;  %v3625_v51 = vpop.f32.mrb[78].mxu0  ;;  %v3970_v23 = vld [vmem:[%s5111_s11 + $0xa8] sm:$0xff] }
 0x5cd   : > { %v3683_v19 = vand.u32 2147483647, %v7797_v54  ;;  %v7802_v57 = vadd.f32 %v7651_v12, %v3625_v51  ;;  %v3627_v7 = vpop.f32.mrb[79].mxu0  ;;  %vm3875_vm11 = vcmp.ge.f32.partialorder %v7797_v54, 0.0 }
 0x5ce   : > { %4061 = vst [vmem:[%s7707_s16 + $0x80] sm:$0xff] %v4029_v11  ;;  %v4030_v1 = vadd.f32 %v3998_v16, %v3966_v2 }
 0x5cf   : > { %v3715_v34 = vsub.f32 0.0, %v3683_v19  ;;  %v3684_v37 = vand.u32 2147483647, %v7802_v57  ;;  %vm3876_vm12 = vcmp.ge.f32.partialorder %v7802_v57, 0.0 }
 0x5d0   : > { %4062 = vst [vmem:[%s7707_s16 + $0x88] sm:$0xff] %v4030_v1  ;;  %v4747_v32 = vpop.eup %4746 }
 0x5d1   : > { %v3769_v8 = vmul.f32 1.442695, %v3715_v34  ;;  %v3716_v5 = vsub.f32 0.0, %v3684_v37  ;;  %v3809_v15 = vadd.f32 1.0, %v4747_v32 }
 0x5d2   : > { %v4749_v25 = vpop.eup %4748 }
 0x5d3   : > { %v4751_v59 = vpop.eup %4750  ;;  %v3903_v9 = vmul.f32 %v4749_v25, %v4739_v63  ;;  %4754 = vpow2.f32 %v3769_v8  ;;  %v3771_v53 = vmul.f32 1.442695, %v3716_v5 }
 0x5d4   : > { %v4753_v0 = vpop.eup %4752  ;;  %4756 = vrcp.f32 %v3809_v15  ;;  %v3810_v58 = vadd.f32 1.0, %v4751_v59 }
 0x5d5   : > { %v3935_v33 = vsel %vm3871_vm4, %v4749_v25, %v3903_v9  ;;  %v3904_v31 = vmul.f32 %v4753_v0, %v4743_v36  ;;  %4758 = vpow2.f32 %v3771_v53  ;;  %v3630_v14 = vpop.f32.mrb[80].mxu0  ;;  %v3971_v9 = vld [vmem:[%s5111_s11 + $0xb0] sm:$0xff] }
 0x5d6   : > { %v3999_v48 = vmul.f32 %v3935_v33, %v7770_v52  ;;  %4760 = vrcp.f32 %v3810_v58  ;;  %v7813_v42 = vadd.f32 %v7651_v12, %v3630_v14  ;;  %v3632_v20 = vpop.f32.mrb[81].mxu0 }
 0x5d7   : > { %v3936_v28 = vsel %vm3872_vm14, %v4753_v0, %v3904_v31  ;;  %v3633_v24 = vpop.f32.mrb[82].mxu0 }
 0x5d8   : > { %v4031_v45 = vadd.f32 %v3999_v48, %v3967_v38  ;;  %v4000_v3 = vmul.f32 %v3936_v28, %v7774_v44  ;;  %v3685_v10 = vand.u32 2147483647, %v7813_v42  ;;  %v7818_v49 = vadd.f32 %v7651_v12, %v3633_v24  ;;  %v3635_v52 = vpop.f32.mrb[83].mxu0  ;;  %v3972_v38 = vld [vmem:[%s5111_s11 + $0xb8] sm:$0xff] }
 0x5d9   : > { %vm3877_vm3 = vcmp.ge.f32.partialorder %v7813_v42, 0.0 }
 0x5da   : > { %4063 = vst [vmem:[%s7707_s16 + $0x90] sm:$0xff] %v4031_v45  ;;  %v4032_v30 = vadd.f32 %v4000_v3, %v3968_v40  ;;  %v3717_v61 = vsub.f32 0.0, %v3685_v10  ;;  %v3686_v41 = vand.u32 2147483647, %v7818_v49  ;;  %vm3878_vm7 = vcmp.ge.f32.partialorder %v7818_v49, 0.0 }
 0x5dc   : > { %4064 = vst [vmem:[%s7707_s16 + $0x98] sm:$0xff] %v4032_v30  ;;  %v3773_v46 = vmul.f32 1.442695, %v3717_v61  ;;  %v3718_v55 = vsub.f32 0.0, %v3686_v41 }
 0x5dd   : > { %v4755_v26 = vpop.eup %4754 }
 0x5de   : > { %v4757_v22 = vpop.eup %4756  ;;  %v3811_v63 = vadd.f32 1.0, %v4755_v26  ;;  %4762 = vpow2.f32 %v3773_v46  ;;  %v3775_v43 = vmul.f32 1.442695, %v3718_v55 }
 0x5df   : > { %v4759_v44 = vpop.eup %4758  ;;  %v3905_v13 = vmul.f32 %v4757_v22, %v4747_v32 }
 0x5e0   : > { %v4761_v27 = vpop.eup %4760  ;;  %4764 = vrcp.f32 %v3811_v63  ;;  %v3812_v17 = vadd.f32 1.0, %v4759_v44 }
 0x5e1   : > { %v3937_v36 = vsel %vm3873_vm9, %v4757_v22, %v3905_v13  ;;  %v3906_v56 = vmul.f32 %v4761_v27, %v4751_v59  ;;  %4766 = vpow2.f32 %v3775_v43 }
 0x5e2   : > { %v4001_v50 = vmul.f32 %v3937_v36, %v7781_v39  ;;  %4768 = vrcp.f32 %v3812_v17  ;;  %v3638_v35 = vpop.f32.mrb[84].mxu0  ;;  %v3974_v17 = vld [vmem:[%s5111_s11 + $0xc8] sm:$0xff] }
 0x5e3   : > { %v3938_v21 = vsel %vm3874_vm5, %v4761_v27, %v3906_v56  ;;  %v7829_v18 = vadd.f32 %v7651_v12, %v3638_v35  ;;  %v3640_v60 = vpop.f32.mrb[85].mxu0 }
 0x5e4   : > { %v4033_v4 = vadd.f32 %v4001_v50, %v3969_v62  ;;  %v4002_v6 = vmul.f32 %v3938_v21, %v7786_v47  ;;  %v3641_v2 = vpop.f32.mrb[86].mxu0  ;;  %v4798_v21 = vld [vmem:[%s7948_s5] ss:$0 sm:$0xff] }
 0x5e5   : > { %v3687_v29 = vand.u32 2147483647, %v7829_v18  ;;  %v7834_v11 = vadd.f32 %v7651_v12, %v3641_v2  ;;  %v3643_v39 = vpop.f32.mrb[87].mxu0  ;;  %vm3879_vm1 = vcmp.ge.f32.partialorder %v7829_v18, 0.0 }
 0x5e6   : > { %4065 = vst [vmem:[%s7707_s16 + $0xa0] sm:$0xff] %v4033_v4  ;;  %v4034_v16 = vadd.f32 %v4002_v6, %v3970_v23 }
 0x5e7   : > { %v3719_v51 = vsub.f32 0.0, %v3687_v29  ;;  %v3688_v19 = vand.u32 2147483647, %v7834_v11  ;;  %vm3880_vm10 = vcmp.ge.f32.partialorder %v7834_v11, 0.0 }
 0x5e8   : > { %4066 = vst [vmem:[%s7707_s16 + $0xa8] sm:$0xff] %v4034_v16  ;;  %v4763_v7 = vpop.eup %4762 }
 0x5e9   : > { %v3777_v1 = vmul.f32 1.442695, %v3719_v51  ;;  %v3720_v34 = vsub.f32 0.0, %v3688_v19  ;;  %v3813_v32 = vadd.f32 1.0, %v4763_v7 }
 0x5ea   : > { %v4765_v37 = vpop.eup %4764 }
 0x5eb   : > { %v4767_v47 = vpop.eup %4766  ;;  %v3907_v8 = vmul.f32 %v4765_v37, %v4755_v26  ;;  %4770 = vpow2.f32 %v3777_v1  ;;  %v3779_v5 = vmul.f32 1.442695, %v3720_v34  ;;  %v3975_v1 = vld [vmem:[%s5111_s11 + $0xd0] sm:$0xff] }
 0x5ec   : > { %v4769_v25 = vpop.eup %4768  ;;  %4772 = vrcp.f32 %v3813_v32  ;;  %v3814_v15 = vadd.f32 1.0, %v4767_v47 }
 0x5ed   : > { %v3939_v59 = vsel %vm3875_vm11, %v4765_v37, %v3907_v8  ;;  %v3908_v53 = vmul.f32 %v4769_v25, %v4759_v44  ;;  %4774 = vpow2.f32 %v3779_v5  ;;  %v3646_v58 = vpop.f32.mrb[88].mxu0  ;;  %v3973_v44 = vld [vmem:[%s5111_s11 + $0xc0] sm:$0xff]  ;;  %v3976_v5 = vld [vmem:[%s5111_s11 + $0xd8] sm:$0xff] }
 0x5ee   : > { %v4003_v0 = vmul.f32 %v3939_v59, %v7797_v54  ;;  %4776 = vrcp.f32 %v3814_v15  ;;  %v7845_v31 = vadd.f32 %v7651_v12, %v3646_v58  ;;  %v3648_v48 = vpop.f32.mrb[89].mxu0 }
 0x5ef   : > { %v3940_v33 = vsel %vm3876_vm12, %v4769_v25, %v3908_v53  ;;  %v3649_v40 = vpop.f32.mrb[90].mxu0  ;;  %v3977_v48 = vld [vmem:[%s5111_s11 + $0xe0] sm:$0xff] }
 0x5f0   : > { %v4035_v14 = vadd.f32 %v4003_v0, %v3971_v9  ;;  %v4004_v28 = vmul.f32 %v3940_v33, %v7802_v57  ;;  %v3689_v20 = vand.u32 2147483647, %v7845_v31  ;;  %v7850_v45 = vadd.f32 %v7651_v12, %v3649_v40  ;;  %v3651_v54 = vpop.f32.mrb[91].mxu0 }
 0x5f1   : > { %vm3881_vm15 = vcmp.ge.f32.partialorder %v7845_v31, 0.0 }
 0x5f2   : > { %4067 = vst [vmem:[%s7707_s16 + $0xb0] sm:$0xff] %v4035_v14  ;;  %v4036_v3 = vadd.f32 %v4004_v28, %v3972_v38  ;;  %v3721_v24 = vsub.f32 0.0, %v3689_v20  ;;  %v3690_v10 = vand.u32 2147483647, %v7850_v45  ;;  %vm3882_vm13 = vcmp.ge.f32.partialorder %v7850_v45, 0.0  ;;  %v3978_v20 = vld [vmem:[%s5111_s11 + $0xe8] sm:$0xff] }
 0x5f4   : > { %4068 = vst [vmem:[%s7707_s16 + $0xb8] sm:$0xff] %v4036_v3  ;;  %v3781_v30 = vmul.f32 1.442695, %v3721_v24  ;;  %v3722_v61 = vsub.f32 0.0, %v3690_v10 }
 0x5f5   : > { %v4771_v52 = vpop.eup %4770 }
 0x5f6   : > { %v4773_v41 = vpop.eup %4772  ;;  %v3815_v26 = vadd.f32 1.0, %v4771_v52  ;;  %4778 = vpow2.f32 %v3781_v30  ;;  %v3783_v55 = vmul.f32 1.442695, %v3722_v61 }
 0x5f7   : > { %v4775_v57 = vpop.eup %4774  ;;  %v3909_v46 = vmul.f32 %v4773_v41, %v4763_v7 }
 0x5f8   : > { %v4777_v12 = vpop.eup %4776  ;;  %4780 = vrcp.f32 %v3815_v26  ;;  %v3816_v22 = vadd.f32 1.0, %v4775_v57 }
 0x5f9   : > { %v3941_v63 = vsel %vm3877_vm3, %v4773_v41, %v3909_v46  ;;  %v3910_v13 = vmul.f32 %v4777_v12, %v4767_v47  ;;  %4782 = vpow2.f32 %v3783_v55 }
 0x5fa   : > { %v4005_v43 = vmul.f32 %v3941_v63, %v7813_v42  ;;  %4784 = vrcp.f32 %v3816_v22 }
 0x5fb   : > { %v3942_v27 = vsel %vm3878_vm7, %v4777_v12, %v3910_v13  ;;  %v3980_v12 = vld [vmem:[%s5111_s11 + $0xf8] sm:$0xff] }
 0x5fc   : > { %v4037_v36 = vadd.f32 %v4005_v43, %v3973_v44  ;;  %v4006_v62 = vmul.f32 %v3942_v27, %v7818_v49 }
 0x5fe   : > { %4069 = vst [vmem:[%s7707_s16 + $0xc0] sm:$0xff] %v4037_v36  ;;  %v4038_v56 = vadd.f32 %v4006_v62, %v3974_v17 }
 0x5ff   : > { %v3654_v50 = vpop.f32.mrb[92].mxu0 }
 0x600   : > { %4070 = vst [vmem:[%s7707_s16 + $0xc8] sm:$0xff] %v4038_v56  ;;  %v4779_v35 = vpop.eup %4778  ;;  %v7866_v23 = vadd.f32 %v4798_v21, %v3654_v50  ;;  %v3656_v42 = vpop.f32.mrb[93].mxu0 }
 0x601   : > { %v3817_v4 = vadd.f32 1.0, %v4779_v35  ;;  %v3657_v6 = vpop.f32.mrb[94].mxu0 }
 0x602   : > { %v4781_v60 = vpop.eup %4780  ;;  %v3691_v49 = vand.u32 2147483647, %v7866_v23  ;;  %v3658_v39 = vadd.f32 %v4798_v21, %v3657_v6  ;;  %v3659_v16 = vpop.f32.mrb[95].mxu0  ;;  %vm3883_vm6 = vcmp.ge.f32.partialorder %v7866_v23, 0.0 }
 0x603   : > { %v4783_v2 = vpop.eup %4782  ;;  %v3911_v29 = vmul.f32 %v4781_v60, %v4771_v52  ;;  %4786 = vrcp.f32 %v3817_v4 }
 0x604   : > { %v4785_v51 = vpop.eup %4784  ;;  %v3818_v19 = vadd.f32 1.0, %v4783_v2  ;;  %v3723_v37 = vsub.f32 0.0, %v3691_v49  ;;  %v3692_v32 = vand.u32 2147483647, %v3658_v39  ;;  %vm3884_vm8 = vcmp.ge.f32.partialorder %v3658_v39, 0.0 }
 0x605   : > { %v3943_v7 = vsel %vm3879_vm1, %v4781_v60, %v3911_v29  ;;  %v3912_v34 = vmul.f32 %v4785_v51, %v4775_v57 }
 0x606   : > { %v4007_v47 = vmul.f32 %v3943_v7, %v7829_v18  ;;  %4788 = vrcp.f32 %v3818_v19  ;;  %v3785_v25 = vmul.f32 1.442695, %v3723_v37  ;;  %v3724_v15 = vsub.f32 0.0, %v3692_v32 }
 0x607   : > { %v3944_v8 = vsel %vm3880_vm10, %v4785_v51, %v3912_v34 }
 0x608   : > { %v4039_v59 = vadd.f32 %v4007_v47, %v3975_v1  ;;  %v4008_v9 = vmul.f32 %v3944_v8, %v7834_v11  ;;  %4790 = vpow2.f32 %v3785_v25  ;;  %v3787_v53 = vmul.f32 1.442695, %v3724_v15 }
 0x60a   : > { %4071 = vst [vmem:[%s7707_s16 + $0xd0] sm:$0xff] %v4039_v59  ;;  %v4040_v0 = vadd.f32 %v4008_v9, %v3976_v5  ;;  %4792 = vpow2.f32 %v3787_v53 }
 0x60c   : > { %4072 = vst [vmem:[%s7707_s16 + $0xd8] sm:$0xff] %v4040_v0 }
 0x60d   : > { %v4787_v58 = vpop.eup %4786 }
 0x60e   : > { %v3913_v18 = vmul.f32 %v4787_v58, %v4779_v35 }
 0x610   : > { %v4789_v33 = vpop.eup %4788  ;;  %v3945_v38 = vsel %vm3881_vm15, %v4787_v58, %v3913_v18 }
 0x611   : > { %v3914_v14 = vmul.f32 %v4789_v33, %v4783_v2  ;;  %v4009_v28 = vmul.f32 %v3945_v38, %v7845_v31 }
 0x612   : > { %v4791_v11 = vpop.eup %4790 }
 0x613   : > { %v3946_v40 = vsel %vm3882_vm13, %v4789_v33, %v3914_v14  ;;  %v4041_v54 = vadd.f32 %v4009_v28, %v3977_v48  ;;  %v3819_v24 = vadd.f32 1.0, %v4791_v11 }
 0x614   : > { %v4010_v3 = vmul.f32 %v3946_v40, %v7850_v45  ;;  %v4793_v10 = vpop.eup %4792  ;;  %v3979_v45 = vld [vmem:[%s5111_s11 + $0xf0] sm:$0xff]  ;;  %s4909_s11 = smov [#allocation7]  }
 0x615   : > { %4073 = vst [vmem:[%s7707_s16 + $0xe0] sm:$0xff] %v4041_v54  ;;  %4794 = vrcp.f32 %v3819_v24  ;;  %v3820_v30 = vadd.f32 1.0, %v4793_v10  ;;  %s4831_s9 = sshll.u32 %s4909_s11, 4  ;;  %s4832_s9 = int_to_ptr.vmem [resolvable:$false] %s4831_s9 }
 0x616   : > { %v4042_v52 = vadd.f32 %v4010_v3, %v3978_v20  ;;  %s4833_s29 = scalar_lea.vmem %s4832_s9, 8192  ;;  %p4834_p2 = scmp.lt.s32.totalorder %s7896_s20, %s4832_s9 }
 0x617   : > { %4796 = vrcp.f32 %v3820_v30  ;;  %p4835_p3 = scmp.lt.s32.totalorder %s4833_s29, %s4827_s14 }
 0x618   : > { %4074 = vst [vmem:[%s7707_s16 + $0xe8] sm:$0xff] %v4042_v52 }
 0x619   : > { %p4836_p4 = por %p4835_p3, %p4834_p2 }
 0x61b   : > { %p4837_p7 = pnand %p4836_p4, %p4830_p12 }
 0x61f   : > { %v4795_v31 = vpop.eup %4794 }
 0x620   : > { %v3915_v61 = vmul.f32 %v4795_v31, %v4791_v11 }
 0x621   : > { %v4797_v41 = vpop.eup %4796 }
 0x622   : > { %v3947_v26 = vsel %vm3883_vm6, %v4795_v31, %v3915_v61  ;;  %v3916_v57 = vmul.f32 %v4797_v41, %v4793_v10 }
 0x623   : > { %v4011_v46 = vmul.f32 %v3947_v26, %v7866_v23 }
 0x624   : > { %v3948_v55 = vsel %vm3884_vm8, %v4797_v41, %v3916_v57 }
 0x625   : > { %v4043_v22 = vadd.f32 %v4011_v46, %v3979_v45  ;;  %v4012_v63 = vmul.f32 %v3948_v55, %v3658_v39 }
 0x627   : > { %4075 = vst [vmem:[%s7707_s16 + $0xf0] sm:$0xff] %v4043_v22  ;;  %v4044_v44 = vadd.f32 %v4012_v63, %v3980_v12 }
 0x629   : > { %4076 = vst [vmem:[%s7707_s16 + $0xf8] sm:$0xff] %v4044_v44 }
 0x62a   : > { %4840 = shalt.err (!%p4837_p7)
}
 0x62b   : > { %s4841_s10 = scalar_lea.hbm %s7894_s13, 4096  ;;  %s4845_s16 = scalar_lea.hbm %s7949_s6, 8192 }
 0x62c   : > { %p4842_p8 = scmp.ne.s32.totalorder %s7894_s13, %s4841_s10  ;;  %p4846_p1 = scmp.lt.u32.totalorder %s7894_s13, %s7949_s6 }
 0x62d   : > { %p4847_p0 = scmp.lt.u32.totalorder %s4845_s16, %s4841_s10  ;;  %p4849_p6 = scmp.lt.u32.totalorder %s4841_s10, %s7894_s13 }
 0x62e   : > { %p4843_p11 = pnand %p4842_p8, %p8654_p9 }
 0x62f   : > { %p4848_p5 = por %p4847_p0, %p4846_p1 }
 0x630   : > { %p4844_p13 = pneg %p4843_p11 }
 0x631   : > { %p4850_p10 = por %p4849_p6, %p4848_p5 }
 0x633   : > { %p4851_p12 = pnand %p4850_p10, %p4844_p13 }
 0x635   : > { %4854 = shalt.err (!%p4851_p12)
}
 0x636   : > { %s4910_s19 = smov 128   ;;  %s4911_s26 = smov 8  }
 0x637   : > { %4492 = dma.vmem_to_hbm [thread:$0]  (%p8654_p9), %s7896_s20, 4096, %s7894_s13, %s7902_s25, %s4910_s19, %s4910_s19, %s4911_s26  }
 0x638 PF: > { %p4504_p2 = scmp.ge.s32.totalorder %s4893_s24, 2  ;;  %s4106_s28 = sand.u32 1, %s4881_s21  }
 0x639   : > { %p8655_p3 = scmp.ne.s32.totalorder %s8214_s8, 0  ;;  %s4107_s14 = scalar_lea.sflag [#allocation6], %s4106_s28 }
 0x63b   : > { %p4499_p4 = pnand %p4504_p2, %p8655_p3 }
 0x63d   : > { %4876 = dma.done.wait (!%p4499_p4), %s4107_s14, 4096  }
 0x63e   : > { %4878 = vsyncadd (!%p4499_p4), %s4107_s14, 4294963200  ;;  %p17_p7 = scmp.ge.s32.totalorder %s4972_s27, 4   ;;  %s8656_s21 = smov %s4885_s22 }
 0x63f   : > { %s8657_s22 = smov %s4889_s23  ;;  %s8658_s23 = smov %s4983_s30 }
 0x640   : > { %s8659_s24 = smov %s4972_s27  ;;  %19 = sbr.rel (!%p17_p7) target bundleno = 4 (0x4), region = 84 }
 0x647   :  { %4112 = vsyncpa [#allocation5], 1 }
 0x648   :  { %4114 = vsyncpa [#allocation5 + $0x1], 1 }
 0x649   :  { %4115 = vsyncpa [#allocation6], 1 }
 0x64a   :  { %4117 = vsyncpa [#allocation6 + $0x1], 1 }

</bundles_post_ra>
